<compile_context>
chip_gen: v7x
topology: tpu7x:2x2x1
jax: 0.10.0
libtpu: 0.0.40
codegen_flags: <defaults>
</compile_context>

<pallas_src>
import functools
import math

import jax
import jax.numpy as jnp
from jax.experimental import pallas as pl
from jax.experimental.pallas import tpu as pltpu  # noqa: F401  (template import; defaults suffice here)

# ----------------------------- small synthetic config -----------------------------
VOCAB = 100
HIDDEN = 128          # multiple of 128 -> lane-dense blocks
NUM_HEADS = 2         # head_dim = 64
FFN = 256             # multiple of 128
NUM_LAYERS = 2
SEQ = 8
BATCH = 2
NUM_LABELS = 2
LOGIT_PAD = 128       # logits padded to a full lane group inside the kernel
PAD_IDX = 1           # RoBERTa padding_idx (position ids are offset by PAD_IDX + 1)
LN_EPS = 1e-5


def _layer_norm(x, gamma, beta):
    """LayerNorm over the last (lane) axis in fp32."""
    mu = jnp.mean(x, axis=-1, keepdims=True)
    var = jnp.mean((x - mu) ** 2, axis=-1, keepdims=True)
    return (x - mu) * jax.lax.rsqrt(var + LN_EPS) * gamma + beta


def _softmax_lastaxis(s):
    """Numerically stable softmax; denominator reciprocal on the EUP."""
    m = jnp.max(s, axis=-1, keepdims=True)
    p = jnp.exp(s - m)
    return p * pl.reciprocal(jnp.sum(p, axis=-1, keepdims=True), approx=True)


# ------------------------------- fused forward kernel ------------------------------
def finetune_kernel(x_ref, bias_ref, embln_ref,
                    wqkv_ref, bqkv_ref, wo_ref, vecs_ref,
                    w1_ref, b1_ref, w2_ref,
                    headw_ref, headb_ref, wout_ref, bout_ref,
                    out_ref, *, batch, seq):
    num_layers, _, num_heads, hidden, hd = wqkv_ref.shape
    bs = batch * seq
    scale = 1.0 / math.sqrt(hd)
    f32 = jnp.float32
    bf16 = jnp.bfloat16

    # Fused embedding LayerNorm (embedding gather + sum happens in plain JAX outside).
    x = _layer_norm(x_ref[...].astype(f32), embln_ref[0], embln_ref[1])      # (B*S, H) fp32

    # Additive attention bias over the key axis, computed once for all layers/heads.
    bias = bias_ref[...].astype(f32)                                          # (B, 1, S)

    for l in range(num_layers):                       # static unroll over layers
        xb = x.astype(bf16)
        attn = jnp.zeros((bs, hidden), f32)
        for h in range(num_heads):                    # static unroll over heads (no lane slicing / concat)
            q = jnp.dot(xb, wqkv_ref[l, 0, h], preferred_element_type=f32) + bqkv_ref[l, 0, h]
            k = jnp.dot(xb, wqkv_ref[l, 1, h], preferred_element_type=f32) + bqkv_ref[l, 1, h]
            v = jnp.dot(xb, wqkv_ref[l, 2, h], preferred_element_type=f32) + bqkv_ref[l, 2, h]
            q3 = q.reshape(batch, seq, hd).astype(bf16)
            k3 = k.reshape(batch, seq, hd).astype(bf16)
            v3 = v.reshape(batch, seq, hd).astype(bf16)
            s = jnp.einsum("bqd,bkd->bqk", q3, k3,
                           preferred_element_type=f32) * scale + bias          # (B, S, S)
            p = _softmax_lastaxis(s).astype(bf16)
            ctx = jnp.einsum("bqk,bkd->bqd", p, v3, preferred_element_type=f32)
            ctx2 = ctx.reshape(bs, hd).astype(bf16)
            # Per-head output projection accumulated directly into (B*S, H); replaces concat.
            attn = attn + jnp.dot(ctx2, wo_ref[l, h], preferred_element_type=f32)
        attn = attn + vecs_ref[l, 0]                                           # output-proj bias
        h1 = _layer_norm(x + attn, vecs_ref[l, 1], vecs_ref[l, 2])

        ff = jnp.dot(h1.astype(bf16), w1_ref[l], preferred_element_type=f32) + b1_ref[l]
        # TODO(synk): HF RoBERTa uses exact erf GELU; tanh approximation used here for lowering.
        ff = jax.nn.gelu(ff, approximate=True)
        ff = jnp.dot(ff.astype(bf16), w2_ref[l], preferred_element_type=f32) + vecs_ref[l, 3]
        x = _layer_norm(h1 + ff, vecs_ref[l, 4], vecs_ref[l, 5])

    # CLS hidden state (row 0 of each sequence) -> pooler tanh(dense) -> classification head.
    # TODO(synk): nn.Dropout in .train() mode is skipped -> deterministic (eval) semantics.
    cls = x.reshape(batch, seq, hidden)[:, 0, :]                               # (B, H)
    pooled = jnp.tanh(jnp.dot(cls.astype(bf16), headw_ref[0],
                              preferred_element_type=f32) + headb_ref[0])
    hcls = jnp.tanh(jnp.dot(pooled.astype(bf16), headw_ref[1],
                            preferred_element_type=f32) + headb_ref[1])
    logits = jnp.dot(hcls.astype(bf16), wout_ref[...],
                     preferred_element_type=f32) + bout_ref[...]               # (B, LOGIT_PAD)
    out_ref[...] = logits.astype(out_ref.dtype)


# ----------------------------- parameter initialization ---------------------------
def init_params(key):
    L, H, F, NH, NL = NUM_LAYERS, HIDDEN, FFN, NUM_HEADS, NUM_LABELS
    HD = H // NH

    def dense(k, shape, dtype=jnp.bfloat16, scale=0.02):
        return (scale * jax.random.normal(k, shape, dtype=jnp.float32)).astype(dtype)

    keys = iter(jax.random.split(key, 16))
    ones = jnp.ones((L, 1, 1, H), jnp.float32)
    zeros = jnp.zeros((L, 1, 1, H), jnp.float32)

    # Classification output projection, padded on the lane axis (only first NL columns are real).
    w_out_real = dense(next(keys), (H, NL))
    w_out = jnp.zeros((H, LOGIT_PAD), jnp.bfloat16).at[:, :NL].set(w_out_real)

    return {
        # embedding tables stay fp32 (gather is done in plain JAX)
        "word_emb": dense(next(keys), (VOCAB, H), dtype=jnp.float32),
        "pos_emb": dense(next(keys), (SEQ + PAD_IDX + 1, H), dtype=jnp.float32),
        "type_emb": dense(next(keys), (1, H), dtype=jnp.float32),
        "emb_ln": jnp.concatenate([jnp.ones((1, 1, H), jnp.float32),
                                   jnp.zeros((1, 1, H), jnp.float32)], axis=0),      # (2,1,H) [gamma; beta]
        # per-layer transformer weights, stacked along a leading layer axis (bf16)
        "w_qkv": dense(next(keys), (L, 3, NH, H, HD)),        # q/k/v projection per head
        "b_qkv": jnp.zeros((L, 3, NH, 1, HD), jnp.float32),
        "w_o": dense(next(keys), (L, NH, HD, H)),             # per-head output projection
        # packed per-layer (1,H) vectors: [bo, ln1_g, ln1_b, b2, ln2_g, ln2_b]
        "vecs": jnp.concatenate([zeros, ones, zeros, zeros, ones, zeros], axis=1),   # (L,6,1,H)
        "w1": dense(next(keys), (L, H, F)),
        "b1": jnp.zeros((L, 1, F), jnp.float32),
        "w2": dense(next(keys), (L, F, H)),
        # pooler dense + classification-head dense, stacked: [w_pooler, w_head_dense]
        "head_w": dense(next(keys), (2, H, H)),
        "head_b": jnp.zeros((2, 1, H), jnp.float32),
        "w_out": w_out,                                       # (H, LOGIT_PAD), zero-padded
        "b_out": jnp.zeros((1, LOGIT_PAD), jnp.float32),
    }


# --------------------------------- full forward ------------------------------------
def finetune_forward(input_ids, attention_mask, params):
    B, S = input_ids.shape
    H = params["word_emb"].shape[-1]

    # TODO(synk): embedding lookup (gather) has no clean tiny-vocab Pallas equivalent; done in JAX.
    pos_ids = jnp.arange(S, dtype=jnp.int32) + PAD_IDX + 1     # RoBERTa position-id offset
    x = (params["word_emb"][input_ids]
         + params["pos_emb"][pos_ids][None, :, :]
         + params["type_emb"][0][None, None, :])
    x = x.reshape(B * S, H).astype(jnp.float32)                 # batch folded into rows

    # Additive key-mask bias (0 for keep, -1e9 for pad), computed once on the host side.
    attn_bias = ((attention_mask.astype(jnp.float32) - 1.0) * 1e9).reshape(B, 1, S)

    kernel = functools.partial(finetune_kernel, batch=B, seq=S)
    logits_padded = pl.pallas_call(
        kernel,
        out_shape=jax.ShapeDtypeStruct((B, LOGIT_PAD), jnp.float32),
    )(x, attn_bias, params["emb_ln"],
      params["w_qkv"], params["b_qkv"], params["w_o"], params["vecs"],
      params["w1"], params["b1"], params["w2"],
      params["head_w"], params["head_b"], params["w_out"], params["b_out"])
    return logits_padded[:, :NUM_LABELS]


if __name__ == "__main__":
    key = jax.random.PRNGKey(0)
    pkey, ikey = jax.random.split(key)
    params = init_params(pkey)

    input_ids = jax.random.randint(ikey, (BATCH, SEQ), minval=0, maxval=VOCAB, dtype=jnp.int32)
    attention_mask = jnp.ones((BATCH, SEQ), dtype=jnp.float32)

    logits = jax.jit(finetune_forward)(input_ids, attention_mask, params)
    jax.block_until_ready(logits)
    assert logits.shape == (BATCH, NUM_LABELS)
    assert bool(jnp.all(jnp.isfinite(logits)))
    print("KERNEL_OK")
</pallas_src>

<mosaic_0001>
module attributes {stable_mosaic.version = 11 : i64} {
  func.func @finetune_kernel(%arg0: memref<16x128xf32, #tpu.memory_space<vmem>>, %arg1: memref<2x1x8xf32, #tpu.memory_space<vmem>>, %arg2: memref<2x1x128xf32, #tpu.memory_space<vmem>>, %arg3: memref<2x3x2x128x64xbf16, #tpu.memory_space<vmem>>, %arg4: memref<2x3x2x1x64xf32, #tpu.memory_space<vmem>>, %arg5: memref<2x2x64x128xbf16, #tpu.memory_space<vmem>>, %arg6: memref<2x6x1x128xf32, #tpu.memory_space<vmem>>, %arg7: memref<2x128x256xbf16, #tpu.memory_space<vmem>>, %arg8: memref<2x1x256xf32, #tpu.memory_space<vmem>>, %arg9: memref<2x256x128xbf16, #tpu.memory_space<vmem>>, %arg10: memref<2x128x128xbf16, #tpu.memory_space<vmem>>, %arg11: memref<2x1x128xf32, #tpu.memory_space<vmem>>, %arg12: memref<128x128xbf16, #tpu.memory_space<vmem>>, %arg13: memref<1x128xf32, #tpu.memory_space<vmem>>, %arg14: memref<2x128xf32, #tpu.memory_space<vmem>>) attributes {dimension_semantics = [], scalar_prefetch = 0 : i64, scratch_operands = 0 : i64, tpu.core_type = #tpu.core_type<tc>} {
    %c0 = arith.constant 0 : index
    %c0_0 = arith.constant 0 : index
    %0 = vector.load %arg0[%c0, %c0_0] : memref<16x128xf32, #tpu.memory_space<vmem>>, vector<16x128xf32>
    %c0_1 = arith.constant 0 : index
    %c0_2 = arith.constant 0 : index
    %c0_3 = arith.constant 0 : index
    %1 = vector.load %arg2[%c0_1, %c0_2, %c0_3] : memref<2x1x128xf32, #tpu.memory_space<vmem>>, vector<1x1x128xf32>
    %2 = vector.shape_cast %1 : vector<1x1x128xf32> to vector<1x128xf32>
    %c1 = arith.constant 1 : index
    %c0_4 = arith.constant 0 : index
    %c0_5 = arith.constant 0 : index
    %3 = vector.load %arg2[%c1, %c0_4, %c0_5] : memref<2x1x128xf32, #tpu.memory_space<vmem>>, vector<1x1x128xf32>
    %4 = vector.shape_cast %3 : vector<1x1x128xf32> to vector<1x128xf32>
    %cst = arith.constant dense<0.000000e+00> : vector<16xf32>
    %5 = vector.multi_reduction <add>, %0, %cst [1] : vector<16x128xf32> to vector<16xf32>
    %6 = vector.shape_cast %5 : vector<16xf32> to vector<16x1xf32>
    %cst_6 = arith.constant 1.280000e+02 : f32
    %7 = vector.broadcast %cst_6 : f32 to vector<16x1xf32>
    %8 = arith.divf %6, %7 : vector<16x1xf32>
    %9 = vector.broadcast %8 : vector<16x1xf32> to vector<16x128xf32>
    %10 = arith.subf %0, %9 : vector<16x128xf32>
    %11 = arith.mulf %10, %10 : vector<16x128xf32>
    %cst_7 = arith.constant dense<0.000000e+00> : vector<16xf32>
    %12 = vector.multi_reduction <add>, %11, %cst_7 [1] : vector<16x128xf32> to vector<16xf32>
    %13 = vector.shape_cast %12 : vector<16xf32> to vector<16x1xf32>
    %cst_8 = arith.constant 1.280000e+02 : f32
    %14 = vector.broadcast %cst_8 : f32 to vector<16x1xf32>
    %15 = arith.divf %13, %14 : vector<16x1xf32>
    %16 = vector.broadcast %8 : vector<16x1xf32> to vector<16x128xf32>
    %17 = arith.subf %0, %16 : vector<16x128xf32>
    %cst_9 = arith.constant 9.99999974E-6 : f32
    %18 = vector.broadcast %cst_9 : f32 to vector<16x1xf32>
    %19 = arith.addf %15, %18 : vector<16x1xf32>
    %20 = math.rsqrt %19 : vector<16x1xf32>
    %21 = vector.broadcast %20 : vector<16x1xf32> to vector<16x128xf32>
    %22 = arith.mulf %17, %21 : vector<16x128xf32>
    %23 = vector.broadcast %2 : vector<1x128xf32> to vector<16x128xf32>
    %24 = arith.mulf %22, %23 : vector<16x128xf32>
    %25 = vector.broadcast %4 : vector<1x128xf32> to vector<16x128xf32>
    %26 = arith.addf %24, %25 : vector<16x128xf32>
    %c0_10 = arith.constant 0 : index
    %c0_11 = arith.constant 0 : index
    %c0_12 = arith.constant 0 : index
    %27 = vector.load %arg1[%c0_10, %c0_11, %c0_12] : memref<2x1x8xf32, #tpu.memory_space<vmem>>, vector<2x1x8xf32>
    %28 = arith.truncf %26 : vector<16x128xf32> to vector<16x128xbf16>
    %cst_13 = arith.constant 0.000000e+00 : f32
    %29 = vector.broadcast %cst_13 : f32 to vector<16x128xf32>
    %c0_14 = arith.constant 0 : index
    %c0_15 = arith.constant 0 : index
    %c0_16 = arith.constant 0 : index
    %c0_17 = arith.constant 0 : index
    %c0_18 = arith.constant 0 : index
    %30 = vector.load %arg3[%c0_14, %c0_15, %c0_16, %c0_17, %c0_18] : memref<2x3x2x128x64xbf16, #tpu.memory_space<vmem>>, vector<1x1x1x128x64xbf16>
    %31 = vector.shape_cast %30 : vector<1x1x1x128x64xbf16> to vector<128x64xbf16>
    %cst_19 = arith.constant dense<0.000000e+00> : vector<16x64xf32>
    %32 = tpu.matmul %28, %31, %cst_19 {dimension_numbers = #tpu.dot_dimension_numbers<[1], [0], [0], [1], [0, 0, 1, 1], [], []>} : vector<16x128xbf16>, vector<128x64xbf16>, vector<16x64xf32> -> vector<16x64xf32>
    %c0_20 = arith.constant 0 : index
    %c0_21 = arith.constant 0 : index
    %c0_22 = arith.constant 0 : index
    %c0_23 = arith.constant 0 : index
    %c0_24 = arith.constant 0 : index
    %33 = vector.load %arg4[%c0_20, %c0_21, %c0_22, %c0_23, %c0_24] : memref<2x3x2x1x64xf32, #tpu.memory_space<vmem>>, vector<1x1x1x1x64xf32>
    %34 = vector.shape_cast %33 : vector<1x1x1x1x64xf32> to vector<1x64xf32>
    %35 = vector.broadcast %34 : vector<1x64xf32> to vector<16x64xf32>
    %36 = arith.addf %32, %35 : vector<16x64xf32>
    %c0_25 = arith.constant 0 : index
    %c1_26 = arith.constant 1 : index
    %c0_27 = arith.constant 0 : index
    %c0_28 = arith.constant 0 : index
    %c0_29 = arith.constant 0 : index
    %37 = vector.load %arg3[%c0_25, %c1_26, %c0_27, %c0_28, %c0_29] : memref<2x3x2x128x64xbf16, #tpu.memory_space<vmem>>, vector<1x1x1x128x64xbf16>
    %38 = vector.shape_cast %37 : vector<1x1x1x128x64xbf16> to vector<128x64xbf16>
    %cst_30 = arith.constant dense<0.000000e+00> : vector<16x64xf32>
    %39 = tpu.matmul %28, %38, %cst_30 {dimension_numbers = #tpu.dot_dimension_numbers<[1], [0], [0], [1], [0, 0, 1, 1], [], []>} : vector<16x128xbf16>, vector<128x64xbf16>, vector<16x64xf32> -> vector<16x64xf32>
    %c0_31 = arith.constant 0 : index
    %c1_32 = arith.constant 1 : index
    %c0_33 = arith.constant 0 : index
    %c0_34 = arith.constant 0 : index
    %c0_35 = arith.constant 0 : index
    %40 = vector.load %arg4[%c0_31, %c1_32, %c0_33, %c0_34, %c0_35] : memref<2x3x2x1x64xf32, #tpu.memory_space<vmem>>, vector<1x1x1x1x64xf32>
    %41 = vector.shape_cast %40 : vector<1x1x1x1x64xf32> to vector<1x64xf32>
    %42 = vector.broadcast %41 : vector<1x64xf32> to vector<16x64xf32>
    %43 = arith.addf %39, %42 : vector<16x64xf32>
    %c0_36 = arith.constant 0 : index
    %c2 = arith.constant 2 : index
    %c0_37 = arith.constant 0 : index
    %c0_38 = arith.constant 0 : index
    %c0_39 = arith.constant 0 : index
    %44 = vector.load %arg3[%c0_36, %c2, %c0_37, %c0_38, %c0_39] : memref<2x3x2x128x64xbf16, #tpu.memory_space<vmem>>, vector<1x1x1x128x64xbf16>
    %45 = vector.shape_cast %44 : vector<1x1x1x128x64xbf16> to vector<128x64xbf16>
    %cst_40 = arith.constant dense<0.000000e+00> : vector<16x64xf32>
    %46 = tpu.matmul %28, %45, %cst_40 {dimension_numbers = #tpu.dot_dimension_numbers<[1], [0], [0], [1], [0, 0, 1, 1], [], []>} : vector<16x128xbf16>, vector<128x64xbf16>, vector<16x64xf32> -> vector<16x64xf32>
    %c0_41 = arith.constant 0 : index
    %c2_42 = arith.constant 2 : index
    %c0_43 = arith.constant 0 : index
    %c0_44 = arith.constant 0 : index
    %c0_45 = arith.constant 0 : index
    %47 = vector.load %arg4[%c0_41, %c2_42, %c0_43, %c0_44, %c0_45] : memref<2x3x2x1x64xf32, #tpu.memory_space<vmem>>, vector<1x1x1x1x64xf32>
    %48 = vector.shape_cast %47 : vector<1x1x1x1x64xf32> to vector<1x64xf32>
    %49 = vector.broadcast %48 : vector<1x64xf32> to vector<16x64xf32>
    %50 = arith.addf %46, %49 : vector<16x64xf32>
    %51 = vector.shape_cast %36 : vector<16x64xf32> to vector<2x8x64xf32>
    %52 = arith.truncf %51 : vector<2x8x64xf32> to vector<2x8x64xbf16>
    %53 = vector.shape_cast %43 : vector<16x64xf32> to vector<2x8x64xf32>
    %54 = arith.truncf %53 : vector<2x8x64xf32> to vector<2x8x64xbf16>
    %55 = vector.shape_cast %50 : vector<16x64xf32> to vector<2x8x64xf32>
    %56 = arith.truncf %55 : vector<2x8x64xf32> to vector<2x8x64xbf16>
    "tpu.trace_start"() <{level = 10 : i32, message = "bqd,bkd->bqk"}> : () -> ()
    %cst_46 = arith.constant dense<0.000000e+00> : vector<2x8x8xf32>
    %57 = tpu.matmul %52, %54, %cst_46 {dimension_numbers = #tpu.dot_dimension_numbers<[2], [2], [1], [1], [0, 0, 0, 1, 1, 1], [0], [0]>} : vector<2x8x64xbf16>, vector<2x8x64xbf16>, vector<2x8x8xf32> -> vector<2x8x8xf32>
    "tpu.trace_stop"() : () -> ()
    %cst_47 = arith.constant 1.250000e-01 : f32
    %58 = vector.broadcast %cst_47 : f32 to vector<2x8x8xf32>
    %59 = arith.mulf %57, %58 : vector<2x8x8xf32>
    %60 = vector.broadcast %27 : vector<2x1x8xf32> to vector<2x8x8xf32>
    %61 = arith.addf %59, %60 : vector<2x8x8xf32>
    %cst_48 = arith.constant dense<0xFF800000> : vector<2x8xf32>
    %62 = vector.multi_reduction <maximumf>, %61, %cst_48 [2] : vector<2x8x8xf32> to vector<2x8xf32>
    %63 = vector.shape_cast %62 : vector<2x8xf32> to vector<2x8x1xf32>
    %64 = vector.broadcast %63 : vector<2x8x1xf32> to vector<2x8x8xf32>
    %65 = arith.subf %61, %64 : vector<2x8x8xf32>
    %66 = math.exp %65 : vector<2x8x8xf32>
    %cst_49 = arith.constant dense<0.000000e+00> : vector<2x8xf32>
    %67 = vector.multi_reduction <add>, %66, %cst_49 [2] : vector<2x8x8xf32> to vector<2x8xf32>
    %68 = vector.shape_cast %67 : vector<2x8xf32> to vector<2x8x1xf32>
    %69 = tpu.reciprocal %68 {approx = true} : vector<2x8x1xf32> -> vector<2x8x1xf32>
    %70 = vector.broadcast %69 : vector<2x8x1xf32> to vector<2x8x8xf32>
    %71 = arith.mulf %66, %70 : vector<2x8x8xf32>
    %72 = arith.truncf %71 : vector<2x8x8xf32> to vector<2x8x8xbf16>
    "tpu.trace_start"() <{level = 10 : i32, message = "bqk,bkd->bqd"}> : () -> ()
    %cst_50 = arith.constant dense<0.000000e+00> : vector<2x8x64xf32>
    %73 = tpu.matmul %72, %56, %cst_50 {dimension_numbers = #tpu.dot_dimension_numbers<[2], [1], [1], [2], [0, 0, 0, 1, 1, 2], [0], [0]>} : vector<2x8x8xbf16>, vector<2x8x64xbf16>, vector<2x8x64xf32> -> vector<2x8x64xf32>
    "tpu.trace_stop"() : () -> ()
    %74 = vector.shape_cast %73 : vector<2x8x64xf32> to vector<16x64xf32>
    %75 = arith.truncf %74 : vector<16x64xf32> to vector<16x64xbf16>
    %c0_51 = arith.constant 0 : index
    %c0_52 = arith.constant 0 : index
    %c0_53 = arith.constant 0 : index
    %c0_54 = arith.constant 0 : index
    %76 = vector.load %arg5[%c0_51, %c0_52, %c0_53, %c0_54] : memref<2x2x64x128xbf16, #tpu.memory_space<vmem>>, vector<1x1x64x128xbf16>
    %77 = vector.shape_cast %76 : vector<1x1x64x128xbf16> to vector<64x128xbf16>
    %cst_55 = arith.constant dense<0.000000e+00> : vector<16x128xf32>
    %78 = tpu.matmul %75, %77, %cst_55 {dimension_numbers = #tpu.dot_dimension_numbers<[1], [0], [0], [1], [0, 0, 1, 1], [], []>} : vector<16x64xbf16>, vector<64x128xbf16>, vector<16x128xf32> -> vector<16x128xf32>
    %79 = arith.addf %29, %78 : vector<16x128xf32>
    %c0_56 = arith.constant 0 : index
    %c0_57 = arith.constant 0 : index
    %c1_58 = arith.constant 1 : index
    %c0_59 = arith.constant 0 : index
    %c0_60 = arith.constant 0 : index
    %80 = vector.load %arg3[%c0_56, %c0_57, %c1_58, %c0_59, %c0_60] : memref<2x3x2x128x64xbf16, #tpu.memory_space<vmem>>, vector<1x1x1x128x64xbf16>
    %81 = vector.shape_cast %80 : vector<1x1x1x128x64xbf16> to vector<128x64xbf16>
    %cst_61 = arith.constant dense<0.000000e+00> : vector<16x64xf32>
    %82 = tpu.matmul %28, %81, %cst_61 {dimension_numbers = #tpu.dot_dimension_numbers<[1], [0], [0], [1], [0, 0, 1, 1], [], []>} : vector<16x128xbf16>, vector<128x64xbf16>, vector<16x64xf32> -> vector<16x64xf32>
    %c0_62 = arith.constant 0 : index
    %c0_63 = arith.constant 0 : index
    %c1_64 = arith.constant 1 : index
    %c0_65 = arith.constant 0 : index
    %c0_66 = arith.constant 0 : index
    %83 = vector.load %arg4[%c0_62, %c0_63, %c1_64, %c0_65, %c0_66] : memref<2x3x2x1x64xf32, #tpu.memory_space<vmem>>, vector<1x1x1x1x64xf32>
    %84 = vector.shape_cast %83 : vector<1x1x1x1x64xf32> to vector<1x64xf32>
    %85 = vector.broadcast %84 : vector<1x64xf32> to vector<16x64xf32>
    %86 = arith.addf %82, %85 : vector<16x64xf32>
    %c0_67 = arith.constant 0 : index
    %c1_68 = arith.constant 1 : index
    %c1_69 = arith.constant 1 : index
    %c0_70 = arith.constant 0 : index
    %c0_71 = arith.constant 0 : index
    %87 = vector.load %arg3[%c0_67, %c1_68, %c1_69, %c0_70, %c0_71] : memref<2x3x2x128x64xbf16, #tpu.memory_space<vmem>>, vector<1x1x1x128x64xbf16>
    %88 = vector.shape_cast %87 : vector<1x1x1x128x64xbf16> to vector<128x64xbf16>
    %cst_72 = arith.constant dense<0.000000e+00> : vector<16x64xf32>
    %89 = tpu.matmul %28, %88, %cst_72 {dimension_numbers = #tpu.dot_dimension_numbers<[1], [0], [0], [1], [0, 0, 1, 1], [], []>} : vector<16x128xbf16>, vector<128x64xbf16>, vector<16x64xf32> -> vector<16x64xf32>
    %c0_73 = arith.constant 0 : index
    %c1_74 = arith.constant 1 : index
    %c1_75 = arith.constant 1 : index
    %c0_76 = arith.constant 0 : index
    %c0_77 = arith.constant 0 : index
    %90 = vector.load %arg4[%c0_73, %c1_74, %c1_75, %c0_76, %c0_77] : memref<2x3x2x1x64xf32, #tpu.memory_space<vmem>>, vector<1x1x1x1x64xf32>
    %91 = vector.shape_cast %90 : vector<1x1x1x1x64xf32> to vector<1x64xf32>
    %92 = vector.broadcast %91 : vector<1x64xf32> to vector<16x64xf32>
    %93 = arith.addf %89, %92 : vector<16x64xf32>
    %c0_78 = arith.constant 0 : index
    %c2_79 = arith.constant 2 : index
    %c1_80 = arith.constant 1 : index
    %c0_81 = arith.constant 0 : index
    %c0_82 = arith.constant 0 : index
    %94 = vector.load %arg3[%c0_78, %c2_79, %c1_80, %c0_81, %c0_82] : memref<2x3x2x128x64xbf16, #tpu.memory_space<vmem>>, vector<1x1x1x128x64xbf16>
    %95 = vector.shape_cast %94 : vector<1x1x1x128x64xbf16> to vector<128x64xbf16>
    %cst_83 = arith.constant dense<0.000000e+00> : vector<16x64xf32>
    %96 = tpu.matmul %28, %95, %cst_83 {dimension_numbers = #tpu.dot_dimension_numbers<[1], [0], [0], [1], [0, 0, 1, 1], [], []>} : vector<16x128xbf16>, vector<128x64xbf16>, vector<16x64xf32> -> vector<16x64xf32>
    %c0_84 = arith.constant 0 : index
    %c2_85 = arith.constant 2 : index
    %c1_86 = arith.constant 1 : index
    %c0_87 = arith.constant 0 : index
    %c0_88 = arith.constant 0 : index
    %97 = vector.load %arg4[%c0_84, %c2_85, %c1_86, %c0_87, %c0_88] : memref<2x3x2x1x64xf32, #tpu.memory_space<vmem>>, vector<1x1x1x1x64xf32>
    %98 = vector.shape_cast %97 : vector<1x1x1x1x64xf32> to vector<1x64xf32>
    %99 = vector.broadcast %98 : vector<1x64xf32> to vector<16x64xf32>
    %100 = arith.addf %96, %99 : vector<16x64xf32>
    %101 = vector.shape_cast %86 : vector<16x64xf32> to vector<2x8x64xf32>
    %102 = arith.truncf %101 : vector<2x8x64xf32> to vector<2x8x64xbf16>
    %103 = vector.shape_cast %93 : vector<16x64xf32> to vector<2x8x64xf32>
    %104 = arith.truncf %103 : vector<2x8x64xf32> to vector<2x8x64xbf16>
    %105 = vector.shape_cast %100 : vector<16x64xf32> to vector<2x8x64xf32>
    %106 = arith.truncf %105 : vector<2x8x64xf32> to vector<2x8x64xbf16>
    "tpu.trace_start"() <{level = 10 : i32, message = "bqd,bkd->bqk"}> : () -> ()
    %cst_89 = arith.constant dense<0.000000e+00> : vector<2x8x8xf32>
    %107 = tpu.matmul %102, %104, %cst_89 {dimension_numbers = #tpu.dot_dimension_numbers<[2], [2], [1], [1], [0, 0, 0, 1, 1, 1], [0], [0]>} : vector<2x8x64xbf16>, vector<2x8x64xbf16>, vector<2x8x8xf32> -> vector<2x8x8xf32>
    "tpu.trace_stop"() : () -> ()
    %cst_90 = arith.constant 1.250000e-01 : f32
    %108 = vector.broadcast %cst_90 : f32 to vector<2x8x8xf32>
    %109 = arith.mulf %107, %108 : vector<2x8x8xf32>
    %110 = vector.broadcast %27 : vector<2x1x8xf32> to vector<2x8x8xf32>
    %111 = arith.addf %109, %110 : vector<2x8x8xf32>
    %cst_91 = arith.constant dense<0xFF800000> : vector<2x8xf32>
    %112 = vector.multi_reduction <maximumf>, %111, %cst_91 [2] : vector<2x8x8xf32> to vector<2x8xf32>
    %113 = vector.shape_cast %112 : vector<2x8xf32> to vector<2x8x1xf32>
    %114 = vector.broadcast %113 : vector<2x8x1xf32> to vector<2x8x8xf32>
    %115 = arith.subf %111, %114 : vector<2x8x8xf32>
    %116 = math.exp %115 : vector<2x8x8xf32>
    %cst_92 = arith.constant dense<0.000000e+00> : vector<2x8xf32>
    %117 = vector.multi_reduction <add>, %116, %cst_92 [2] : vector<2x8x8xf32> to vector<2x8xf32>
    %118 = vector.shape_cast %117 : vector<2x8xf32> to vector<2x8x1xf32>
    %119 = tpu.reciprocal %118 {approx = true} : vector<2x8x1xf32> -> vector<2x8x1xf32>
    %120 = vector.broadcast %119 : vector<2x8x1xf32> to vector<2x8x8xf32>
    %121 = arith.mulf %116, %120 : vector<2x8x8xf32>
    %122 = arith.truncf %121 : vector<2x8x8xf32> to vector<2x8x8xbf16>
    "tpu.trace_start"() <{level = 10 : i32, message = "bqk,bkd->bqd"}> : () -> ()
    %cst_93 = arith.constant dense<0.000000e+00> : vector<2x8x64xf32>
    %123 = tpu.matmul %122, %106, %cst_93 {dimension_numbers = #tpu.dot_dimension_numbers<[2], [1], [1], [2], [0, 0, 0, 1, 1, 2], [0], [0]>} : vector<2x8x8xbf16>, vector<2x8x64xbf16>, vector<2x8x64xf32> -> vector<2x8x64xf32>
    "tpu.trace_stop"() : () -> ()
    %124 = vector.shape_cast %123 : vector<2x8x64xf32> to vector<16x64xf32>
    %125 = arith.truncf %124 : vector<16x64xf32> to vector<16x64xbf16>
    %c0_94 = arith.constant 0 : index
    %c1_95 = arith.constant 1 : index
    %c0_96 = arith.constant 0 : index
    %c0_97 = arith.constant 0 : index
    %126 = vector.load %arg5[%c0_94, %c1_95, %c0_96, %c0_97] : memref<2x2x64x128xbf16, #tpu.memory_space<vmem>>, vector<1x1x64x128xbf16>
    %127 = vector.shape_cast %126 : vector<1x1x64x128xbf16> to vector<64x128xbf16>
    %cst_98 = arith.constant dense<0.000000e+00> : vector<16x128xf32>
    %128 = tpu.matmul %125, %127, %cst_98 {dimension_numbers = #tpu.dot_dimension_numbers<[1], [0], [0], [1], [0, 0, 1, 1], [], []>} : vector<16x64xbf16>, vector<64x128xbf16>, vector<16x128xf32> -> vector<16x128xf32>
    %129 = arith.addf %79, %128 : vector<16x128xf32>
    %c0_99 = arith.constant 0 : index
    %c0_100 = arith.constant 0 : index
    %c0_101 = arith.constant 0 : index
    %c0_102 = arith.constant 0 : index
    %130 = vector.load %arg6[%c0_99, %c0_100, %c0_101, %c0_102] : memref<2x6x1x128xf32, #tpu.memory_space<vmem>>, vector<1x1x1x128xf32>
    %131 = vector.shape_cast %130 : vector<1x1x1x128xf32> to vector<1x128xf32>
    %132 = vector.broadcast %131 : vector<1x128xf32> to vector<16x128xf32>
    %133 = arith.addf %129, %132 : vector<16x128xf32>
    %134 = arith.addf %26, %133 : vector<16x128xf32>
    %c0_103 = arith.constant 0 : index
    %c1_104 = arith.constant 1 : index
    %c0_105 = arith.constant 0 : index
    %c0_106 = arith.constant 0 : index
    %135 = vector.load %arg6[%c0_103, %c1_104, %c0_105, %c0_106] : memref<2x6x1x128xf32, #tpu.memory_space<vmem>>, vector<1x1x1x128xf32>
    %136 = vector.shape_cast %135 : vector<1x1x1x128xf32> to vector<1x128xf32>
    %c0_107 = arith.constant 0 : index
    %c2_108 = arith.constant 2 : index
    %c0_109 = arith.constant 0 : index
    %c0_110 = arith.constant 0 : index
    %137 = vector.load %arg6[%c0_107, %c2_108, %c0_109, %c0_110] : memref<2x6x1x128xf32, #tpu.memory_space<vmem>>, vector<1x1x1x128xf32>
    %138 = vector.shape_cast %137 : vector<1x1x1x128xf32> to vector<1x128xf32>
    %cst_111 = arith.constant dense<0.000000e+00> : vector<16xf32>
    %139 = vector.multi_reduction <add>, %134, %cst_111 [1] : vector<16x128xf32> to vector<16xf32>
    %140 = vector.shape_cast %139 : vector<16xf32> to vector<16x1xf32>
    %cst_112 = arith.constant 1.280000e+02 : f32
    %141 = vector.broadcast %cst_112 : f32 to vector<16x1xf32>
    %142 = arith.divf %140, %141 : vector<16x1xf32>
    %143 = vector.broadcast %142 : vector<16x1xf32> to vector<16x128xf32>
    %144 = arith.subf %134, %143 : vector<16x128xf32>
    %145 = arith.mulf %144, %144 : vector<16x128xf32>
    %cst_113 = arith.constant dense<0.000000e+00> : vector<16xf32>
    %146 = vector.multi_reduction <add>, %145, %cst_113 [1] : vector<16x128xf32> to vector<16xf32>
    %147 = vector.shape_cast %146 : vector<16xf32> to vector<16x1xf32>
    %cst_114 = arith.constant 1.280000e+02 : f32
    %148 = vector.broadcast %cst_114 : f32 to vector<16x1xf32>
    %149 = arith.divf %147, %148 : vector<16x1xf32>
    %150 = vector.broadcast %142 : vector<16x1xf32> to vector<16x128xf32>
    %151 = arith.subf %134, %150 : vector<16x128xf32>
    %cst_115 = arith.constant 9.99999974E-6 : f32
    %152 = vector.broadcast %cst_115 : f32 to vector<16x1xf32>
    %153 = arith.addf %149, %152 : vector<16x1xf32>
    %154 = math.rsqrt %153 : vector<16x1xf32>
    %155 = vector.broadcast %154 : vector<16x1xf32> to vector<16x128xf32>
    %156 = arith.mulf %151, %155 : vector<16x128xf32>
    %157 = vector.broadcast %136 : vector<1x128xf32> to vector<16x128xf32>
    %158 = arith.mulf %156, %157 : vector<16x128xf32>
    %159 = vector.broadcast %138 : vector<1x128xf32> to vector<16x128xf32>
    %160 = arith.addf %158, %159 : vector<16x128xf32>
    %161 = arith.truncf %160 : vector<16x128xf32> to vector<16x128xbf16>
    %c0_116 = arith.constant 0 : index
    %c0_117 = arith.constant 0 : index
    %c0_118 = arith.constant 0 : index
    %162 = vector.load %arg7[%c0_116, %c0_117, %c0_118] : memref<2x128x256xbf16, #tpu.memory_space<vmem>>, vector<1x128x256xbf16>
    %163 = vector.shape_cast %162 : vector<1x128x256xbf16> to vector<128x256xbf16>
    %cst_119 = arith.constant dense<0.000000e+00> : vector<16x256xf32>
    %164 = tpu.matmul %161, %163, %cst_119 {dimension_numbers = #tpu.dot_dimension_numbers<[1], [0], [0], [1], [0, 0, 1, 1], [], []>} : vector<16x128xbf16>, vector<128x256xbf16>, vector<16x256xf32> -> vector<16x256xf32>
    %c0_120 = arith.constant 0 : index
    %c0_121 = arith.constant 0 : index
    %c0_122 = arith.constant 0 : index
    %165 = vector.load %arg8[%c0_120, %c0_121, %c0_122] : memref<2x1x256xf32, #tpu.memory_space<vmem>>, vector<1x1x256xf32>
    %166 = vector.shape_cast %165 : vector<1x1x256xf32> to vector<1x256xf32>
    %167 = vector.broadcast %166 : vector<1x256xf32> to vector<16x256xf32>
    %168 = arith.addf %164, %167 : vector<16x256xf32>
    %169 = arith.mulf %168, %168 : vector<16x256xf32>
    %170 = arith.mulf %168, %169 : vector<16x256xf32>
    %cst_123 = arith.constant 4.471500e-02 : f32
    %171 = vector.broadcast %cst_123 : f32 to vector<16x256xf32>
    %172 = arith.mulf %171, %170 : vector<16x256xf32>
    %173 = arith.addf %168, %172 : vector<16x256xf32>
    %cst_124 = arith.constant 0.797884583 : f32
    %174 = vector.broadcast %cst_124 : f32 to vector<16x256xf32>
    %175 = arith.mulf %174, %173 : vector<16x256xf32>
    %176 = math.tanh %175 : vector<16x256xf32>
    %cst_125 = arith.constant 1.000000e+00 : f32
    %177 = vector.broadcast %cst_125 : f32 to vector<16x256xf32>
    %178 = arith.addf %177, %176 : vector<16x256xf32>
    %cst_126 = arith.constant 5.000000e-01 : f32
    %179 = vector.broadcast %cst_126 : f32 to vector<16x256xf32>
    %180 = arith.mulf %179, %178 : vector<16x256xf32>
    %181 = arith.mulf %168, %180 : vector<16x256xf32>
    %182 = arith.truncf %181 : vector<16x256xf32> to vector<16x256xbf16>
    %c0_127 = arith.constant 0 : index
    %c0_128 = arith.constant 0 : index
    %c0_129 = arith.constant 0 : index
    %183 = vector.load %arg9[%c0_127, %c0_128, %c0_129] : memref<2x256x128xbf16, #tpu.memory_space<vmem>>, vector<1x256x128xbf16>
    %184 = vector.shape_cast %183 : vector<1x256x128xbf16> to vector<256x128xbf16>
    %cst_130 = arith.constant dense<0.000000e+00> : vector<16x128xf32>
    %185 = tpu.matmul %182, %184, %cst_130 {dimension_numbers = #tpu.dot_dimension_numbers<[1], [0], [0], [1], [0, 0, 1, 1], [], []>} : vector<16x256xbf16>, vector<256x128xbf16>, vector<16x128xf32> -> vector<16x128xf32>
    %c0_131 = arith.constant 0 : index
    %c3 = arith.constant 3 : index
    %c0_132 = arith.constant 0 : index
    %c0_133 = arith.constant 0 : index
    %186 = vector.load %arg6[%c0_131, %c3, %c0_132, %c0_133] : memref<2x6x1x128xf32, #tpu.memory_space<vmem>>, vector<1x1x1x128xf32>
    %187 = vector.shape_cast %186 : vector<1x1x1x128xf32> to vector<1x128xf32>
    %188 = vector.broadcast %187 : vector<1x128xf32> to vector<16x128xf32>
    %189 = arith.addf %185, %188 : vector<16x128xf32>
    %190 = arith.addf %160, %189 : vector<16x128xf32>
    %c0_134 = arith.constant 0 : index
    %c4 = arith.constant 4 : index
    %c0_135 = arith.constant 0 : index
    %c0_136 = arith.constant 0 : index
    %191 = vector.load %arg6[%c0_134, %c4, %c0_135, %c0_136] : memref<2x6x1x128xf32, #tpu.memory_space<vmem>>, vector<1x1x1x128xf32>
    %192 = vector.shape_cast %191 : vector<1x1x1x128xf32> to vector<1x128xf32>
    %c0_137 = arith.constant 0 : index
    %c5 = arith.constant 5 : index
    %c0_138 = arith.constant 0 : index
    %c0_139 = arith.constant 0 : index
    %193 = vector.load %arg6[%c0_137, %c5, %c0_138, %c0_139] : memref<2x6x1x128xf32, #tpu.memory_space<vmem>>, vector<1x1x1x128xf32>
    %194 = vector.shape_cast %193 : vector<1x1x1x128xf32> to vector<1x128xf32>
    %cst_140 = arith.constant dense<0.000000e+00> : vector<16xf32>
    %195 = vector.multi_reduction <add>, %190, %cst_140 [1] : vector<16x128xf32> to vector<16xf32>
    %196 = vector.shape_cast %195 : vector<16xf32> to vector<16x1xf32>
    %cst_141 = arith.constant 1.280000e+02 : f32
    %197 = vector.broadcast %cst_141 : f32 to vector<16x1xf32>
    %198 = arith.divf %196, %197 : vector<16x1xf32>
    %199 = vector.broadcast %198 : vector<16x1xf32> to vector<16x128xf32>
    %200 = arith.subf %190, %199 : vector<16x128xf32>
    %201 = arith.mulf %200, %200 : vector<16x128xf32>
    %cst_142 = arith.constant dense<0.000000e+00> : vector<16xf32>
    %202 = vector.multi_reduction <add>, %201, %cst_142 [1] : vector<16x128xf32> to vector<16xf32>
    %203 = vector.shape_cast %202 : vector<16xf32> to vector<16x1xf32>
    %cst_143 = arith.constant 1.280000e+02 : f32
    %204 = vector.broadcast %cst_143 : f32 to vector<16x1xf32>
    %205 = arith.divf %203, %204 : vector<16x1xf32>
    %206 = vector.broadcast %198 : vector<16x1xf32> to vector<16x128xf32>
    %207 = arith.subf %190, %206 : vector<16x128xf32>
    %cst_144 = arith.constant 9.99999974E-6 : f32
    %208 = vector.broadcast %cst_144 : f32 to vector<16x1xf32>
    %209 = arith.addf %205, %208 : vector<16x1xf32>
    %210 = math.rsqrt %209 : vector<16x1xf32>
    %211 = vector.broadcast %210 : vector<16x1xf32> to vector<16x128xf32>
    %212 = arith.mulf %207, %211 : vector<16x128xf32>
    %213 = vector.broadcast %192 : vector<1x128xf32> to vector<16x128xf32>
    %214 = arith.mulf %212, %213 : vector<16x128xf32>
    %215 = vector.broadcast %194 : vector<1x128xf32> to vector<16x128xf32>
    %216 = arith.addf %214, %215 : vector<16x128xf32>
    %217 = arith.truncf %216 : vector<16x128xf32> to vector<16x128xbf16>
    %cst_145 = arith.constant 0.000000e+00 : f32
    %218 = vector.broadcast %cst_145 : f32 to vector<16x128xf32>
    %c1_146 = arith.constant 1 : index
    %c0_147 = arith.constant 0 : index
    %c0_148 = arith.constant 0 : index
    %c0_149 = arith.constant 0 : index
    %c0_150 = arith.constant 0 : index
    %219 = vector.load %arg3[%c1_146, %c0_147, %c0_148, %c0_149, %c0_150] : memref<2x3x2x128x64xbf16, #tpu.memory_space<vmem>>, vector<1x1x1x128x64xbf16>
    %220 = vector.shape_cast %219 : vector<1x1x1x128x64xbf16> to vector<128x64xbf16>
    %cst_151 = arith.constant dense<0.000000e+00> : vector<16x64xf32>
    %221 = tpu.matmul %217, %220, %cst_151 {dimension_numbers = #tpu.dot_dimension_numbers<[1], [0], [0], [1], [0, 0, 1, 1], [], []>} : vector<16x128xbf16>, vector<128x64xbf16>, vector<16x64xf32> -> vector<16x64xf32>
    %c1_152 = arith.constant 1 : index
    %c0_153 = arith.constant 0 : index
    %c0_154 = arith.constant 0 : index
    %c0_155 = arith.constant 0 : index
    %c0_156 = arith.constant 0 : index
    %222 = vector.load %arg4[%c1_152, %c0_153, %c0_154, %c0_155, %c0_156] : memref<2x3x2x1x64xf32, #tpu.memory_space<vmem>>, vector<1x1x1x1x64xf32>
    %223 = vector.shape_cast %222 : vector<1x1x1x1x64xf32> to vector<1x64xf32>
    %224 = vector.broadcast %223 : vector<1x64xf32> to vector<16x64xf32>
    %225 = arith.addf %221, %224 : vector<16x64xf32>
    %c1_157 = arith.constant 1 : index
    %c1_158 = arith.constant 1 : index
    %c0_159 = arith.constant 0 : index
    %c0_160 = arith.constant 0 : index
    %c0_161 = arith.constant 0 : index
    %226 = vector.load %arg3[%c1_157, %c1_158, %c0_159, %c0_160, %c0_161] : memref<2x3x2x128x64xbf16, #tpu.memory_space<vmem>>, vector<1x1x1x128x64xbf16>
    %227 = vector.shape_cast %226 : vector<1x1x1x128x64xbf16> to vector<128x64xbf16>
    %cst_162 = arith.constant dense<0.000000e+00> : vector<16x64xf32>
    %228 = tpu.matmul %217, %227, %cst_162 {dimension_numbers = #tpu.dot_dimension_numbers<[1], [0], [0], [1], [0, 0, 1, 1], [], []>} : vector<16x128xbf16>, vector<128x64xbf16>, vector<16x64xf32> -> vector<16x64xf32>
    %c1_163 = arith.constant 1 : index
    %c1_164 = arith.constant 1 : index
    %c0_165 = arith.constant 0 : index
    %c0_166 = arith.constant 0 : index
    %c0_167 = arith.constant 0 : index
    %229 = vector.load %arg4[%c1_163, %c1_164, %c0_165, %c0_166, %c0_167] : memref<2x3x2x1x64xf32, #tpu.memory_space<vmem>>, vector<1x1x1x1x64xf32>
    %230 = vector.shape_cast %229 : vector<1x1x1x1x64xf32> to vector<1x64xf32>
    %231 = vector.broadcast %230 : vector<1x64xf32> to vector<16x64xf32>
    %232 = arith.addf %228, %231 : vector<16x64xf32>
    %c1_168 = arith.constant 1 : index
    %c2_169 = arith.constant 2 : index
    %c0_170 = arith.constant 0 : index
    %c0_171 = arith.constant 0 : index
    %c0_172 = arith.constant 0 : index
    %233 = vector.load %arg3[%c1_168, %c2_169, %c0_170, %c0_171, %c0_172] : memref<2x3x2x128x64xbf16, #tpu.memory_space<vmem>>, vector<1x1x1x128x64xbf16>
    %234 = vector.shape_cast %233 : vector<1x1x1x128x64xbf16> to vector<128x64xbf16>
    %cst_173 = arith.constant dense<0.000000e+00> : vector<16x64xf32>
    %235 = tpu.matmul %217, %234, %cst_173 {dimension_numbers = #tpu.dot_dimension_numbers<[1], [0], [0], [1], [0, 0, 1, 1], [], []>} : vector<16x128xbf16>, vector<128x64xbf16>, vector<16x64xf32> -> vector<16x64xf32>
    %c1_174 = arith.constant 1 : index
    %c2_175 = arith.constant 2 : index
    %c0_176 = arith.constant 0 : index
    %c0_177 = arith.constant 0 : index
    %c0_178 = arith.constant 0 : index
    %236 = vector.load %arg4[%c1_174, %c2_175, %c0_176, %c0_177, %c0_178] : memref<2x3x2x1x64xf32, #tpu.memory_space<vmem>>, vector<1x1x1x1x64xf32>
    %237 = vector.shape_cast %236 : vector<1x1x1x1x64xf32> to vector<1x64xf32>
    %238 = vector.broadcast %237 : vector<1x64xf32> to vector<16x64xf32>
    %239 = arith.addf %235, %238 : vector<16x64xf32>
    %240 = vector.shape_cast %225 : vector<16x64xf32> to vector<2x8x64xf32>
    %241 = arith.truncf %240 : vector<2x8x64xf32> to vector<2x8x64xbf16>
    %242 = vector.shape_cast %232 : vector<16x64xf32> to vector<2x8x64xf32>
    %243 = arith.truncf %242 : vector<2x8x64xf32> to vector<2x8x64xbf16>
    %244 = vector.shape_cast %239 : vector<16x64xf32> to vector<2x8x64xf32>
    %245 = arith.truncf %244 : vector<2x8x64xf32> to vector<2x8x64xbf16>
    "tpu.trace_start"() <{level = 10 : i32, message = "bqd,bkd->bqk"}> : () -> ()
    %cst_179 = arith.constant dense<0.000000e+00> : vector<2x8x8xf32>
    %246 = tpu.matmul %241, %243, %cst_179 {dimension_numbers = #tpu.dot_dimension_numbers<[2], [2], [1], [1], [0, 0, 0, 1, 1, 1], [0], [0]>} : vector<2x8x64xbf16>, vector<2x8x64xbf16>, vector<2x8x8xf32> -> vector<2x8x8xf32>
    "tpu.trace_stop"() : () -> ()
    %cst_180 = arith.constant 1.250000e-01 : f32
    %247 = vector.broadcast %cst_180 : f32 to vector<2x8x8xf32>
    %248 = arith.mulf %246, %247 : vector<2x8x8xf32>
    %249 = vector.broadcast %27 : vector<2x1x8xf32> to vector<2x8x8xf32>
    %250 = arith.addf %248, %249 : vector<2x8x8xf32>
    %cst_181 = arith.constant dense<0xFF800000> : vector<2x8xf32>
    %251 = vector.multi_reduction <maximumf>, %250, %cst_181 [2] : vector<2x8x8xf32> to vector<2x8xf32>
    %252 = vector.shape_cast %251 : vector<2x8xf32> to vector<2x8x1xf32>
    %253 = vector.broadcast %252 : vector<2x8x1xf32> to vector<2x8x8xf32>
    %254 = arith.subf %250, %253 : vector<2x8x8xf32>
    %255 = math.exp %254 : vector<2x8x8xf32>
    %cst_182 = arith.constant dense<0.000000e+00> : vector<2x8xf32>
    %256 = vector.multi_reduction <add>, %255, %cst_182 [2] : vector<2x8x8xf32> to vector<2x8xf32>
    %257 = vector.shape_cast %256 : vector<2x8xf32> to vector<2x8x1xf32>
    %258 = tpu.reciprocal %257 {approx = true} : vector<2x8x1xf32> -> vector<2x8x1xf32>
    %259 = vector.broadcast %258 : vector<2x8x1xf32> to vector<2x8x8xf32>
    %260 = arith.mulf %255, %259 : vector<2x8x8xf32>
    %261 = arith.truncf %260 : vector<2x8x8xf32> to vector<2x8x8xbf16>
    "tpu.trace_start"() <{level = 10 : i32, message = "bqk,bkd->bqd"}> : () -> ()
    %cst_183 = arith.constant dense<0.000000e+00> : vector<2x8x64xf32>
    %262 = tpu.matmul %261, %245, %cst_183 {dimension_numbers = #tpu.dot_dimension_numbers<[2], [1], [1], [2], [0, 0, 0, 1, 1, 2], [0], [0]>} : vector<2x8x8xbf16>, vector<2x8x64xbf16>, vector<2x8x64xf32> -> vector<2x8x64xf32>
    "tpu.trace_stop"() : () -> ()
    %263 = vector.shape_cast %262 : vector<2x8x64xf32> to vector<16x64xf32>
    %264 = arith.truncf %263 : vector<16x64xf32> to vector<16x64xbf16>
    %c1_184 = arith.constant 1 : index
    %c0_185 = arith.constant 0 : index
    %c0_186 = arith.constant 0 : index
    %c0_187 = arith.constant 0 : index
    %265 = vector.load %arg5[%c1_184, %c0_185, %c0_186, %c0_187] : memref<2x2x64x128xbf16, #tpu.memory_space<vmem>>, vector<1x1x64x128xbf16>
    %266 = vector.shape_cast %265 : vector<1x1x64x128xbf16> to vector<64x128xbf16>
    %cst_188 = arith.constant dense<0.000000e+00> : vector<16x128xf32>
    %267 = tpu.matmul %264, %266, %cst_188 {dimension_numbers = #tpu.dot_dimension_numbers<[1], [0], [0], [1], [0, 0, 1, 1], [], []>} : vector<16x64xbf16>, vector<64x128xbf16>, vector<16x128xf32> -> vector<16x128xf32>
    %268 = arith.addf %218, %267 : vector<16x128xf32>
    %c1_189 = arith.constant 1 : index
    %c0_190 = arith.constant 0 : index
    %c1_191 = arith.constant 1 : index
    %c0_192 = arith.constant 0 : index
    %c0_193 = arith.constant 0 : index
    %269 = vector.load %arg3[%c1_189, %c0_190, %c1_191, %c0_192, %c0_193] : memref<2x3x2x128x64xbf16, #tpu.memory_space<vmem>>, vector<1x1x1x128x64xbf16>
    %270 = vector.shape_cast %269 : vector<1x1x1x128x64xbf16> to vector<128x64xbf16>
    %cst_194 = arith.constant dense<0.000000e+00> : vector<16x64xf32>
    %271 = tpu.matmul %217, %270, %cst_194 {dimension_numbers = #tpu.dot_dimension_numbers<[1], [0], [0], [1], [0, 0, 1, 1], [], []>} : vector<16x128xbf16>, vector<128x64xbf16>, vector<16x64xf32> -> vector<16x64xf32>
    %c1_195 = arith.constant 1 : index
    %c0_196 = arith.constant 0 : index
    %c1_197 = arith.constant 1 : index
    %c0_198 = arith.constant 0 : index
    %c0_199 = arith.constant 0 : index
    %272 = vector.load %arg4[%c1_195, %c0_196, %c1_197, %c0_198, %c0_199] : memref<2x3x2x1x64xf32, #tpu.memory_space<vmem>>, vector<1x1x1x1x64xf32>
    %273 = vector.shape_cast %272 : vector<1x1x1x1x64xf32> to vector<1x64xf32>
    %274 = vector.broadcast %273 : vector<1x64xf32> to vector<16x64xf32>
    %275 = arith.addf %271, %274 : vector<16x64xf32>
    %c1_200 = arith.constant 1 : index
    %c1_201 = arith.constant 1 : index
    %c1_202 = arith.constant 1 : index
    %c0_203 = arith.constant 0 : index
    %c0_204 = arith.constant 0 : index
    %276 = vector.load %arg3[%c1_200, %c1_201, %c1_202, %c0_203, %c0_204] : memref<2x3x2x128x64xbf16, #tpu.memory_space<vmem>>, vector<1x1x1x128x64xbf16>
    %277 = vector.shape_cast %276 : vector<1x1x1x128x64xbf16> to vector<128x64xbf16>
    %cst_205 = arith.constant dense<0.000000e+00> : vector<16x64xf32>
    %278 = tpu.matmul %217, %277, %cst_205 {dimension_numbers = #tpu.dot_dimension_numbers<[1], [0], [0], [1], [0, 0, 1, 1], [], []>} : vector<16x128xbf16>, vector<128x64xbf16>, vector<16x64xf32> -> vector<16x64xf32>
    %c1_206 = arith.constant 1 : index
    %c1_207 = arith.constant 1 : index
    %c1_208 = arith.constant 1 : index
    %c0_209 = arith.constant 0 : index
    %c0_210 = arith.constant 0 : index
    %279 = vector.load %arg4[%c1_206, %c1_207, %c1_208, %c0_209, %c0_210] : memref<2x3x2x1x64xf32, #tpu.memory_space<vmem>>, vector<1x1x1x1x64xf32>
    %280 = vector.shape_cast %279 : vector<1x1x1x1x64xf32> to vector<1x64xf32>
    %281 = vector.broadcast %280 : vector<1x64xf32> to vector<16x64xf32>
    %282 = arith.addf %278, %281 : vector<16x64xf32>
    %c1_211 = arith.constant 1 : index
    %c2_212 = arith.constant 2 : index
    %c1_213 = arith.constant 1 : index
    %c0_214 = arith.constant 0 : index
    %c0_215 = arith.constant 0 : index
    %283 = vector.load %arg3[%c1_211, %c2_212, %c1_213, %c0_214, %c0_215] : memref<2x3x2x128x64xbf16, #tpu.memory_space<vmem>>, vector<1x1x1x128x64xbf16>
    %284 = vector.shape_cast %283 : vector<1x1x1x128x64xbf16> to vector<128x64xbf16>
    %cst_216 = arith.constant dense<0.000000e+00> : vector<16x64xf32>
    %285 = tpu.matmul %217, %284, %cst_216 {dimension_numbers = #tpu.dot_dimension_numbers<[1], [0], [0], [1], [0, 0, 1, 1], [], []>} : vector<16x128xbf16>, vector<128x64xbf16>, vector<16x64xf32> -> vector<16x64xf32>
    %c1_217 = arith.constant 1 : index
    %c2_218 = arith.constant 2 : index
    %c1_219 = arith.constant 1 : index
    %c0_220 = arith.constant 0 : index
    %c0_221 = arith.constant 0 : index
    %286 = vector.load %arg4[%c1_217, %c2_218, %c1_219, %c0_220, %c0_221] : memref<2x3x2x1x64xf32, #tpu.memory_space<vmem>>, vector<1x1x1x1x64xf32>
    %287 = vector.shape_cast %286 : vector<1x1x1x1x64xf32> to vector<1x64xf32>
    %288 = vector.broadcast %287 : vector<1x64xf32> to vector<16x64xf32>
    %289 = arith.addf %285, %288 : vector<16x64xf32>
    %290 = vector.shape_cast %275 : vector<16x64xf32> to vector<2x8x64xf32>
    %291 = arith.truncf %290 : vector<2x8x64xf32> to vector<2x8x64xbf16>
    %292 = vector.shape_cast %282 : vector<16x64xf32> to vector<2x8x64xf32>
    %293 = arith.truncf %292 : vector<2x8x64xf32> to vector<2x8x64xbf16>
    %294 = vector.shape_cast %289 : vector<16x64xf32> to vector<2x8x64xf32>
    %295 = arith.truncf %294 : vector<2x8x64xf32> to vector<2x8x64xbf16>
    "tpu.trace_start"() <{level = 10 : i32, message = "bqd,bkd->bqk"}> : () -> ()
    %cst_222 = arith.constant dense<0.000000e+00> : vector<2x8x8xf32>
    %296 = tpu.matmul %291, %293, %cst_222 {dimension_numbers = #tpu.dot_dimension_numbers<[2], [2], [1], [1], [0, 0, 0, 1, 1, 1], [0], [0]>} : vector<2x8x64xbf16>, vector<2x8x64xbf16>, vector<2x8x8xf32> -> vector<2x8x8xf32>
    "tpu.trace_stop"() : () -> ()
    %cst_223 = arith.constant 1.250000e-01 : f32
    %297 = vector.broadcast %cst_223 : f32 to vector<2x8x8xf32>
    %298 = arith.mulf %296, %297 : vector<2x8x8xf32>
    %299 = vector.broadcast %27 : vector<2x1x8xf32> to vector<2x8x8xf32>
    %300 = arith.addf %298, %299 : vector<2x8x8xf32>
    %cst_224 = arith.constant dense<0xFF800000> : vector<2x8xf32>
    %301 = vector.multi_reduction <maximumf>, %300, %cst_224 [2] : vector<2x8x8xf32> to vector<2x8xf32>
    %302 = vector.shape_cast %301 : vector<2x8xf32> to vector<2x8x1xf32>
    %303 = vector.broadcast %302 : vector<2x8x1xf32> to vector<2x8x8xf32>
    %304 = arith.subf %300, %303 : vector<2x8x8xf32>
    %305 = math.exp %304 : vector<2x8x8xf32>
    %cst_225 = arith.constant dense<0.000000e+00> : vector<2x8xf32>
    %306 = vector.multi_reduction <add>, %305, %cst_225 [2] : vector<2x8x8xf32> to vector<2x8xf32>
    %307 = vector.shape_cast %306 : vector<2x8xf32> to vector<2x8x1xf32>
    %308 = tpu.reciprocal %307 {approx = true} : vector<2x8x1xf32> -> vector<2x8x1xf32>
    %309 = vector.broadcast %308 : vector<2x8x1xf32> to vector<2x8x8xf32>
    %310 = arith.mulf %305, %309 : vector<2x8x8xf32>
    %311 = arith.truncf %310 : vector<2x8x8xf32> to vector<2x8x8xbf16>
    "tpu.trace_start"() <{level = 10 : i32, message = "bqk,bkd->bqd"}> : () -> ()
    %cst_226 = arith.constant dense<0.000000e+00> : vector<2x8x64xf32>
    %312 = tpu.matmul %311, %295, %cst_226 {dimension_numbers = #tpu.dot_dimension_numbers<[2], [1], [1], [2], [0, 0, 0, 1, 1, 2], [0], [0]>} : vector<2x8x8xbf16>, vector<2x8x64xbf16>, vector<2x8x64xf32> -> vector<2x8x64xf32>
    "tpu.trace_stop"() : () -> ()
    %313 = vector.shape_cast %312 : vector<2x8x64xf32> to vector<16x64xf32>
    %314 = arith.truncf %313 : vector<16x64xf32> to vector<16x64xbf16>
    %c1_227 = arith.constant 1 : index
    %c1_228 = arith.constant 1 : index
    %c0_229 = arith.constant 0 : index
    %c0_230 = arith.constant 0 : index
    %315 = vector.load %arg5[%c1_227, %c1_228, %c0_229, %c0_230] : memref<2x2x64x128xbf16, #tpu.memory_space<vmem>>, vector<1x1x64x128xbf16>
    %316 = vector.shape_cast %315 : vector<1x1x64x128xbf16> to vector<64x128xbf16>
    %cst_231 = arith.constant dense<0.000000e+00> : vector<16x128xf32>
    %317 = tpu.matmul %314, %316, %cst_231 {dimension_numbers = #tpu.dot_dimension_numbers<[1], [0], [0], [1], [0, 0, 1, 1], [], []>} : vector<16x64xbf16>, vector<64x128xbf16>, vector<16x128xf32> -> vector<16x128xf32>
    %318 = arith.addf %268, %317 : vector<16x128xf32>
    %c1_232 = arith.constant 1 : index
    %c0_233 = arith.constant 0 : index
    %c0_234 = arith.constant 0 : index
    %c0_235 = arith.constant 0 : index
    %319 = vector.load %arg6[%c1_232, %c0_233, %c0_234, %c0_235] : memref<2x6x1x128xf32, #tpu.memory_space<vmem>>, vector<1x1x1x128xf32>
    %320 = vector.shape_cast %319 : vector<1x1x1x128xf32> to vector<1x128xf32>
    %321 = vector.broadcast %320 : vector<1x128xf32> to vector<16x128xf32>
    %322 = arith.addf %318, %321 : vector<16x128xf32>
    %323 = arith.addf %216, %322 : vector<16x128xf32>
    %c1_236 = arith.constant 1 : index
    %c1_237 = arith.constant 1 : index
    %c0_238 = arith.constant 0 : index
    %c0_239 = arith.constant 0 : index
    %324 = vector.load %arg6[%c1_236, %c1_237, %c0_238, %c0_239] : memref<2x6x1x128xf32, #tpu.memory_space<vmem>>, vector<1x1x1x128xf32>
    %325 = vector.shape_cast %324 : vector<1x1x1x128xf32> to vector<1x128xf32>
    %c1_240 = arith.constant 1 : index
    %c2_241 = arith.constant 2 : index
    %c0_242 = arith.constant 0 : index
    %c0_243 = arith.constant 0 : index
    %326 = vector.load %arg6[%c1_240, %c2_241, %c0_242, %c0_243] : memref<2x6x1x128xf32, #tpu.memory_space<vmem>>, vector<1x1x1x128xf32>
    %327 = vector.shape_cast %326 : vector<1x1x1x128xf32> to vector<1x128xf32>
    %cst_244 = arith.constant dense<0.000000e+00> : vector<16xf32>
    %328 = vector.multi_reduction <add>, %323, %cst_244 [1] : vector<16x128xf32> to vector<16xf32>
    %329 = vector.shape_cast %328 : vector<16xf32> to vector<16x1xf32>
    %cst_245 = arith.constant 1.280000e+02 : f32
    %330 = vector.broadcast %cst_245 : f32 to vector<16x1xf32>
    %331 = arith.divf %329, %330 : vector<16x1xf32>
    %332 = vector.broadcast %331 : vector<16x1xf32> to vector<16x128xf32>
    %333 = arith.subf %323, %332 : vector<16x128xf32>
    %334 = arith.mulf %333, %333 : vector<16x128xf32>
    %cst_246 = arith.constant dense<0.000000e+00> : vector<16xf32>
    %335 = vector.multi_reduction <add>, %334, %cst_246 [1] : vector<16x128xf32> to vector<16xf32>
    %336 = vector.shape_cast %335 : vector<16xf32> to vector<16x1xf32>
    %cst_247 = arith.constant 1.280000e+02 : f32
    %337 = vector.broadcast %cst_247 : f32 to vector<16x1xf32>
    %338 = arith.divf %336, %337 : vector<16x1xf32>
    %339 = vector.broadcast %331 : vector<16x1xf32> to vector<16x128xf32>
    %340 = arith.subf %323, %339 : vector<16x128xf32>
    %cst_248 = arith.constant 9.99999974E-6 : f32
    %341 = vector.broadcast %cst_248 : f32 to vector<16x1xf32>
    %342 = arith.addf %338, %341 : vector<16x1xf32>
    %343 = math.rsqrt %342 : vector<16x1xf32>
    %344 = vector.broadcast %343 : vector<16x1xf32> to vector<16x128xf32>
    %345 = arith.mulf %340, %344 : vector<16x128xf32>
    %346 = vector.broadcast %325 : vector<1x128xf32> to vector<16x128xf32>
    %347 = arith.mulf %345, %346 : vector<16x128xf32>
    %348 = vector.broadcast %327 : vector<1x128xf32> to vector<16x128xf32>
    %349 = arith.addf %347, %348 : vector<16x128xf32>
    %350 = arith.truncf %349 : vector<16x128xf32> to vector<16x128xbf16>
    %c1_249 = arith.constant 1 : index
    %c0_250 = arith.constant 0 : index
    %c0_251 = arith.constant 0 : index
    %351 = vector.load %arg7[%c1_249, %c0_250, %c0_251] : memref<2x128x256xbf16, #tpu.memory_space<vmem>>, vector<1x128x256xbf16>
    %352 = vector.shape_cast %351 : vector<1x128x256xbf16> to vector<128x256xbf16>
    %cst_252 = arith.constant dense<0.000000e+00> : vector<16x256xf32>
    %353 = tpu.matmul %350, %352, %cst_252 {dimension_numbers = #tpu.dot_dimension_numbers<[1], [0], [0], [1], [0, 0, 1, 1], [], []>} : vector<16x128xbf16>, vector<128x256xbf16>, vector<16x256xf32> -> vector<16x256xf32>
    %c1_253 = arith.constant 1 : index
    %c0_254 = arith.constant 0 : index
    %c0_255 = arith.constant 0 : index
    %354 = vector.load %arg8[%c1_253, %c0_254, %c0_255] : memref<2x1x256xf32, #tpu.memory_space<vmem>>, vector<1x1x256xf32>
    %355 = vector.shape_cast %354 : vector<1x1x256xf32> to vector<1x256xf32>
    %356 = vector.broadcast %355 : vector<1x256xf32> to vector<16x256xf32>
    %357 = arith.addf %353, %356 : vector<16x256xf32>
    %358 = arith.mulf %357, %357 : vector<16x256xf32>
    %359 = arith.mulf %357, %358 : vector<16x256xf32>
    %cst_256 = arith.constant 4.471500e-02 : f32
    %360 = vector.broadcast %cst_256 : f32 to vector<16x256xf32>
    %361 = arith.mulf %360, %359 : vector<16x256xf32>
    %362 = arith.addf %357, %361 : vector<16x256xf32>
    %cst_257 = arith.constant 0.797884583 : f32
    %363 = vector.broadcast %cst_257 : f32 to vector<16x256xf32>
    %364 = arith.mulf %363, %362 : vector<16x256xf32>
    %365 = math.tanh %364 : vector<16x256xf32>
    %cst_258 = arith.constant 1.000000e+00 : f32
    %366 = vector.broadcast %cst_258 : f32 to vector<16x256xf32>
    %367 = arith.addf %366, %365 : vector<16x256xf32>
    %cst_259 = arith.constant 5.000000e-01 : f32
    %368 = vector.broadcast %cst_259 : f32 to vector<16x256xf32>
    %369 = arith.mulf %368, %367 : vector<16x256xf32>
    %370 = arith.mulf %357, %369 : vector<16x256xf32>
    %371 = arith.truncf %370 : vector<16x256xf32> to vector<16x256xbf16>
    %c1_260 = arith.constant 1 : index
    %c0_261 = arith.constant 0 : index
    %c0_262 = arith.constant 0 : index
    %372 = vector.load %arg9[%c1_260, %c0_261, %c0_262] : memref<2x256x128xbf16, #tpu.memory_space<vmem>>, vector<1x256x128xbf16>
    %373 = vector.shape_cast %372 : vector<1x256x128xbf16> to vector<256x128xbf16>
    %cst_263 = arith.constant dense<0.000000e+00> : vector<16x128xf32>
    %374 = tpu.matmul %371, %373, %cst_263 {dimension_numbers = #tpu.dot_dimension_numbers<[1], [0], [0], [1], [0, 0, 1, 1], [], []>} : vector<16x256xbf16>, vector<256x128xbf16>, vector<16x128xf32> -> vector<16x128xf32>
    %c1_264 = arith.constant 1 : index
    %c3_265 = arith.constant 3 : index
    %c0_266 = arith.constant 0 : index
    %c0_267 = arith.constant 0 : index
    %375 = vector.load %arg6[%c1_264, %c3_265, %c0_266, %c0_267] : memref<2x6x1x128xf32, #tpu.memory_space<vmem>>, vector<1x1x1x128xf32>
    %376 = vector.shape_cast %375 : vector<1x1x1x128xf32> to vector<1x128xf32>
    %377 = vector.broadcast %376 : vector<1x128xf32> to vector<16x128xf32>
    %378 = arith.addf %374, %377 : vector<16x128xf32>
    %379 = arith.addf %349, %378 : vector<16x128xf32>
    %c1_268 = arith.constant 1 : index
    %c4_269 = arith.constant 4 : index
    %c0_270 = arith.constant 0 : index
    %c0_271 = arith.constant 0 : index
    %380 = vector.load %arg6[%c1_268, %c4_269, %c0_270, %c0_271] : memref<2x6x1x128xf32, #tpu.memory_space<vmem>>, vector<1x1x1x128xf32>
    %381 = vector.shape_cast %380 : vector<1x1x1x128xf32> to vector<1x128xf32>
    %c1_272 = arith.constant 1 : index
    %c5_273 = arith.constant 5 : index
    %c0_274 = arith.constant 0 : index
    %c0_275 = arith.constant 0 : index
    %382 = vector.load %arg6[%c1_272, %c5_273, %c0_274, %c0_275] : memref<2x6x1x128xf32, #tpu.memory_space<vmem>>, vector<1x1x1x128xf32>
    %383 = vector.shape_cast %382 : vector<1x1x1x128xf32> to vector<1x128xf32>
    %cst_276 = arith.constant dense<0.000000e+00> : vector<16xf32>
    %384 = vector.multi_reduction <add>, %379, %cst_276 [1] : vector<16x128xf32> to vector<16xf32>
    %385 = vector.shape_cast %384 : vector<16xf32> to vector<16x1xf32>
    %cst_277 = arith.constant 1.280000e+02 : f32
    %386 = vector.broadcast %cst_277 : f32 to vector<16x1xf32>
    %387 = arith.divf %385, %386 : vector<16x1xf32>
    %388 = vector.broadcast %387 : vector<16x1xf32> to vector<16x128xf32>
    %389 = arith.subf %379, %388 : vector<16x128xf32>
    %390 = arith.mulf %389, %389 : vector<16x128xf32>
    %cst_278 = arith.constant dense<0.000000e+00> : vector<16xf32>
    %391 = vector.multi_reduction <add>, %390, %cst_278 [1] : vector<16x128xf32> to vector<16xf32>
    %392 = vector.shape_cast %391 : vector<16xf32> to vector<16x1xf32>
    %cst_279 = arith.constant 1.280000e+02 : f32
    %393 = vector.broadcast %cst_279 : f32 to vector<16x1xf32>
    %394 = arith.divf %392, %393 : vector<16x1xf32>
    %395 = vector.broadcast %387 : vector<16x1xf32> to vector<16x128xf32>
    %396 = arith.subf %379, %395 : vector<16x128xf32>
    %cst_280 = arith.constant 9.99999974E-6 : f32
    %397 = vector.broadcast %cst_280 : f32 to vector<16x1xf32>
    %398 = arith.addf %394, %397 : vector<16x1xf32>
    %399 = math.rsqrt %398 : vector<16x1xf32>
    %400 = vector.broadcast %399 : vector<16x1xf32> to vector<16x128xf32>
    %401 = arith.mulf %396, %400 : vector<16x128xf32>
    %402 = vector.broadcast %381 : vector<1x128xf32> to vector<16x128xf32>
    %403 = arith.mulf %401, %402 : vector<16x128xf32>
    %404 = vector.broadcast %383 : vector<1x128xf32> to vector<16x128xf32>
    %405 = arith.addf %403, %404 : vector<16x128xf32>
    %406 = vector.shape_cast %405 : vector<16x128xf32> to vector<2x8x128xf32>
    %407 = vector.extract_strided_slice %406 {offsets = [0, 0, 0], sizes = [2, 1, 128], strides = [1, 1, 1]} : vector<2x8x128xf32> to vector<2x1x128xf32>
    %408 = vector.shape_cast %407 : vector<2x1x128xf32> to vector<2x128xf32>
    %409 = arith.truncf %408 : vector<2x128xf32> to vector<2x128xbf16>
    %c0_281 = arith.constant 0 : index
    %c0_282 = arith.constant 0 : index
    %c0_283 = arith.constant 0 : index
    %410 = vector.load %arg10[%c0_281, %c0_282, %c0_283] : memref<2x128x128xbf16, #tpu.memory_space<vmem>>, vector<1x128x128xbf16>
    %411 = vector.shape_cast %410 : vector<1x128x128xbf16> to vector<128x128xbf16>
    %cst_284 = arith.constant dense<0.000000e+00> : vector<2x128xf32>
    %412 = tpu.matmul %409, %411, %cst_284 {dimension_numbers = #tpu.dot_dimension_numbers<[1], [0], [0], [1], [0, 0, 1, 1], [], []>} : vector<2x128xbf16>, vector<128x128xbf16>, vector<2x128xf32> -> vector<2x128xf32>
    %c0_285 = arith.constant 0 : index
    %c0_286 = arith.constant 0 : index
    %c0_287 = arith.constant 0 : index
    %413 = vector.load %arg11[%c0_285, %c0_286, %c0_287] : memref<2x1x128xf32, #tpu.memory_space<vmem>>, vector<1x1x128xf32>
    %414 = vector.shape_cast %413 : vector<1x1x128xf32> to vector<1x128xf32>
    %415 = vector.broadcast %414 : vector<1x128xf32> to vector<2x128xf32>
    %416 = arith.addf %412, %415 : vector<2x128xf32>
    %417 = math.tanh %416 : vector<2x128xf32>
    %418 = arith.truncf %417 : vector<2x128xf32> to vector<2x128xbf16>
    %c1_288 = arith.constant 1 : index
    %c0_289 = arith.constant 0 : index
    %c0_290 = arith.constant 0 : index
    %419 = vector.load %arg10[%c1_288, %c0_289, %c0_290] : memref<2x128x128xbf16, #tpu.memory_space<vmem>>, vector<1x128x128xbf16>
    %420 = vector.shape_cast %419 : vector<1x128x128xbf16> to vector<128x128xbf16>
    %cst_291 = arith.constant dense<0.000000e+00> : vector<2x128xf32>
    %421 = tpu.matmul %418, %420, %cst_291 {dimension_numbers = #tpu.dot_dimension_numbers<[1], [0], [0], [1], [0, 0, 1, 1], [], []>} : vector<2x128xbf16>, vector<128x128xbf16>, vector<2x128xf32> -> vector<2x128xf32>
    %c1_292 = arith.constant 1 : index
    %c0_293 = arith.constant 0 : index
    %c0_294 = arith.constant 0 : index
    %422 = vector.load %arg11[%c1_292, %c0_293, %c0_294] : memref<2x1x128xf32, #tpu.memory_space<vmem>>, vector<1x1x128xf32>
    %423 = vector.shape_cast %422 : vector<1x1x128xf32> to vector<1x128xf32>
    %424 = vector.broadcast %423 : vector<1x128xf32> to vector<2x128xf32>
    %425 = arith.addf %421, %424 : vector<2x128xf32>
    %426 = math.tanh %425 : vector<2x128xf32>
    %427 = arith.truncf %426 : vector<2x128xf32> to vector<2x128xbf16>
    %c0_295 = arith.constant 0 : index
    %c0_296 = arith.constant 0 : index
    %428 = vector.load %arg12[%c0_295, %c0_296] : memref<128x128xbf16, #tpu.memory_space<vmem>>, vector<128x128xbf16>
    %cst_297 = arith.constant dense<0.000000e+00> : vector<2x128xf32>
    %429 = tpu.matmul %427, %428, %cst_297 {dimension_numbers = #tpu.dot_dimension_numbers<[1], [0], [0], [1], [0, 0, 1, 1], [], []>} : vector<2x128xbf16>, vector<128x128xbf16>, vector<2x128xf32> -> vector<2x128xf32>
    %c0_298 = arith.constant 0 : index
    %c0_299 = arith.constant 0 : index
    %430 = vector.load %arg13[%c0_298, %c0_299] : memref<1x128xf32, #tpu.memory_space<vmem>>, vector<1x128xf32>
    %431 = vector.broadcast %430 : vector<1x128xf32> to vector<2x128xf32>
    %432 = arith.addf %429, %431 : vector<2x128xf32>
    %c0_300 = arith.constant 0 : index
    %c0_301 = arith.constant 0 : index
    %433 = vector.load %arg14[%c0_300, %c0_301] : memref<2x128xf32, #tpu.memory_space<vmem>>, vector<2x128xf32>
    tpu.vector_store %arg14[%c0_300, %c0_301], %432 {strides = array<i32>} : memref<2x128xf32, #tpu.memory_space<vmem>>, vector<2x128xf32>,
    return
  }
}

</mosaic_0001>

<bundles_post_ra>
// kernel: finetune_forward.1
= control target key start
LH: loop header
LB: loop body
LE: loop exit
PB: predicated region body
PF: predicated region fallthrough
CT: control target
= control target key end

     0   :  { %v5491_v4 = vmov 0.0   ;;  %s6697_s0 = inlined_call_operand.vmem [shape: f32[16,128], index: 0, kind: input, shape index: {}]   ;;  %s6698_s1 = inlined_call_operand.vmem [shape: f32[2,1,8], index: 1, kind: input, shape index: {}]   ;;  %s6699_s2 = inlined_call_operand.vmem [shape: f32[2,1,128], index: 2, kind: input, shape index: {}]   ;;  %s6700_s3 = inlined_call_operand.vmem [shape: bf16[2,3,2,128,64], index: 3, kind: input, shape index: {}]   ;;  %s6701_s4 = inlined_call_operand.vmem [shape: f32[2,3,2,1,64], index: 4, kind: input, shape index: {}]   ;;  %s6702_s5 = inlined_call_operand.vmem [shape: bf16[2,2,64,128], index: 5, kind: input, shape index: {}]   ;;  %s6703_s6 = inlined_call_operand.vmem [shape: f32[2,6,1,128], index: 6, kind: input, shape index: {}]   ;;  %s6704_s7 = inlined_call_operand.vmem [shape: bf16[2,128,256], index: 7, kind: input, shape index: {}]   ;;  %s6705_s8 = inlined_call_operand.vmem [shape: f32[2,1,256], index: 8, kind: input, shape index: {}]   ;;  %s6706_s9 = inlined_call_operand.vmem [shape: bf16[2,256,128], index: 9, kind: input, shape index: {}]   ;;  %s6707_s10 = inlined_call_operand.vmem [shape: bf16[2,128,128], index: 10, kind: input, shape index: {}]   ;;  %s6708_s11 = inlined_call_operand.vmem [shape: f32[2,1,128], index: 11, kind: input, shape index: {}]   ;;  %s6709_s12 = inlined_call_operand.vmem [shape: bf16[128,128], index: 12, kind: input, shape index: {}]   ;;  %s6710_s13 = inlined_call_operand.vmem [shape: f32[1,128], index: 13, kind: input, shape index: {}]   ;;  %s6711_s14 = inlined_call_operand.hbm [shape: f32[2,128], index: 14, kind: output, shape index: {}]  }
   0x1   :  { %v49_v0 = vld [vmem:[%s6697_s0] sm:$0xff]  ;;  %v50_v1 = vld [vmem:[%s6697_s0 + $0x8] sm:$0xff]  ;;  %4729 = vmatprep.subr.bf16.mxu0 %v5491_v4  ;;  %4749 = vmatprep.subr.bf16.mxu1 %v5491_v4 }
   0x2   :  { %54 = vadd.xlane.f32.xlu0 %v49_v0  ;;  %v5177_v2 = vld [vmem:[%s6700_s3] sm:$0xff]   ;;  %v5179_v5 = vld [vmem:[%s6700_s3 + $0x8] sm:$0xff]  }
   0x3   :  { %v5178_v3 = vld [vmem:[%s6700_s3 + $0x80] sm:$0xff]   ;;  %4730 = vmatpush3.bf16.msra.mxu0 %v5177_v2 }
   0x4   :  { %4750 = vmatpush3.bf16.msra.mxu1 %v5178_v3  ;;  %4731 = vmatprep.subr.bf16.mxu0 %v5491_v4 }
   0x5   :  { %4751 = vmatprep.subr.bf16.mxu1 %v5491_v4 }
   0x6   :  { %56 = vadd.xlane.f32.xlu0 %v50_v1 }
   0x7   :  { %4732 = vmatpush3.bf16.msra.mxu0 %v5179_v5 }
   0x8   :  { %4733 = vmatprep.subr.bf16.mxu0 %v5491_v4 }
   0x9   :  { %19 = vsyncpa [#allocation3], 0  ;;  %v5180_v14 = vld [vmem:[%s6700_s3 + $0x88] sm:$0xff]   ;;  %v5181_v15 = vld [vmem:[%s6700_s3 + $0x10] sm:$0xff]   ;;  %vm5492_vm0 = vmmov 0   ;;  %vm442_vm1 = vcmask 523264  }
   0xa   :  { %4752 = vmatpush3.bf16.msra.mxu1 %v5180_v14  ;;  %v5182_v16 = vld [vmem:[%s6700_s3 + $0x90] sm:$0xff]   ;;  %v5183_v17 = vld [vmem:[%s6700_s3 + $0x18] sm:$0xff]   ;;  %v5185_v19 = vld [vmem:[%s6700_s3 + $0x20] sm:$0xff]   ;;  %4745 = vmatprep.mubr.msk.bf16.mxu0 %vm5492_vm0, %v5491_v4  ;;  %vm579_vm2 = vcmask 1043456   ;;  %vm551_vm3 = vcmask 64512   ;;  %vm3623_vm4 = vcmask 1041409  }
   0xb   :  { %4753 = vmatprep.subr.bf16.mxu1 %v5491_v4  ;;  %4734 = vmatpush3.bf16.msra.mxu0 %v5181_v15  ;;  %v5184_v18 = vld [vmem:[%s6700_s3 + $0x98] sm:$0xff]   ;;  %v5186_v20 = vld [vmem:[%s6700_s3 + $0xa0] sm:$0xff]   ;;  %v5187_v21 = vld [vmem:[%s6700_s3 + $0x28] sm:$0xff]   ;;  %s5494_s16 = smov [#allocation2]  }
   0xc   :  { %4735 = vmatprep.subr.bf16.mxu0 %v5491_v4  ;;  %v5188_v22 = vld [vmem:[%s6700_s3 + $0xa8] sm:$0xff]   ;;  %v5189_v23 = vld [vmem:[%s6700_s3 + $0x30] sm:$0xff]   ;;  %v5191_v25 = vld [vmem:[%s6700_s3 + $0x38] sm:$0xff]   ;;  %4765 = vmatprep.mubr.msk.bf16.mxu1 %vm5492_vm0, %v5491_v4 }
   0xd   :  { %v5190_v24 = vld [vmem:[%s6700_s3 + $0xb0] sm:$0xff]   ;;  %v5192_v26 = vld [vmem:[%s6700_s3 + $0xb8] sm:$0xff]   ;;  %v3959_v35 = vld [vmem:[%s6699_s2] ss:$0 sm:$0xff] }
   0xe   :  { %4754 = vmatpush3.bf16.msra.mxu1 %v5182_v16  ;;  %v3960_v39 = vld [vmem:[%s6699_s2 + $0x1] ss:$0 sm:$0xff]  ;;  %v5194_v45 = vld [vmem:[%s6700_s3 + $0x108] sm:$0xff]   ;;  %v5195_v46 = vld [vmem:[%s6700_s3 + $0x110] sm:$0xff]  }
   0xf   :  { %4755 = vmatprep.subr.bf16.mxu1 %v5491_v4  ;;  %4736 = vmatpush3.bf16.msra.mxu0 %v5183_v17  ;;  %v5193_v43 = vld [vmem:[%s6700_s3 + $0x100] sm:$0xff]   ;;  %v5196_v47 = vld [vmem:[%s6700_s3 + $0x118] sm:$0xff]   ;;  %v5198_v49 = vld [vmem:[%s6700_s3 + $0x128] sm:$0xff]  }
  0x10   :  { %4737 = vmatprep.subr.bf16.mxu0 %v5491_v4  ;;  %v5197_v48 = vld [vmem:[%s6700_s3 + $0x120] sm:$0xff]   ;;  %v5199_v50 = vld [vmem:[%s6700_s3 + $0x130] sm:$0xff]   ;;  %v5200_v51 = vld [vmem:[%s6700_s3 + $0x138] sm:$0xff]  }
  0x11   :  { %v5201_v52 = vld [vmem:[%s6700_s3 + $0x40] sm:$0xff]   ;;  %v5202_v53 = vld [vmem:[%s6700_s3 + $0x48] sm:$0xff]   ;;  %v5203_v54 = vld [vmem:[%s6700_s3 + $0x50] sm:$0xff]  }
  0x12   :  { %4756 = vmatpush3.bf16.msra.mxu1 %v5184_v18  ;;  %v5204_v55 = vld [vmem:[%s6700_s3 + $0x58] sm:$0xff]   ;;  %v5205_v56 = vld [vmem:[%s6700_s3 + $0x60] sm:$0xff]   ;;  %v5206_v57 = vld [vmem:[%s6700_s3 + $0x68] sm:$0xff]  }
  0x13   :  { %4757 = vmatprep.subr.bf16.mxu1 %v5491_v4  ;;  %4738 = vmatpush3.bf16.msra.mxu0 %v5185_v19  ;;  %v5207_v58 = vld [vmem:[%s6700_s3 + $0x70] sm:$0xff]   ;;  %v5208_v59 = vld [vmem:[%s6700_s3 + $0x78] sm:$0xff]   ;;  %v5209_v60 = vld [vmem:[%s6700_s3 + $0x140] sm:$0xff]  }
  0x14   :  { %4739 = vmatprep.subr.bf16.mxu0 %v5491_v4  ;;  %v5210_v61 = vld [vmem:[%s6700_s3 + $0x148] sm:$0xff]   ;;  %v5211_v62 = vld [vmem:[%s6700_s3 + $0x150] sm:$0xff]   ;;  %v5212_v63 = vld [vmem:[%s6700_s3 + $0x158] sm:$0xff]  }
  0x15   :  { %v5215_v2 = vld [vmem:[%s6700_s3 + $0x170] sm:$0xff]   ;;  %v5216_v3 = vld [vmem:[%s6700_s3 + $0x178] sm:$0xff]   ;;  %v3987_v5 = vld [vmem:[%s6701_s4 + $0x2] ss:$0 sm:$0xff] }
  0x16   :  { %4758 = vmatpush3.bf16.msra.mxu1 %v5186_v20  ;;  %v3961_v16 = vld [vmem:[%s6701_s4] ss:$0 sm:$0xff] }
  0x17   :  { %4759 = vmatprep.subr.bf16.mxu1 %v5491_v4  ;;  %4740 = vmatpush3.bf16.msra.mxu0 %v5187_v21 }
  0x18   :  { %4741 = vmatprep.subr.bf16.mxu0 %v5491_v4 }
  0x1a   :  { %4760 = vmatpush3.bf16.msra.mxu1 %v5188_v22 }
  0x1b   :  { %4761 = vmatprep.subr.bf16.mxu1 %v5491_v4  ;;  %4742 = vmatpush3.bf16.msra.mxu0 %v5189_v23 }
  0x1c   :  { %4743 = vmatprep.subr.bf16.mxu0 %v5491_v4 }
  0x1e   :  { %4762 = vmatpush3.bf16.msra.mxu1 %v5190_v24 }
  0x1f   :  { %4763 = vmatprep.subr.bf16.mxu1 %v5491_v4  ;;  %4744 = vmatpush3.bf16.msra.mxu0 %v5191_v25  ;;  %v4013_v25 = vld [vmem:[%s6701_s4 + $0x4] ss:$0 sm:$0xff] }
  0x20   :  { %4769 = vmatprep.subr.bf16.mxu0 %v5491_v4 }
  0x22   :  { %4764 = vmatpush3.bf16.msra.mxu1 %v5192_v26 }
  0x23   :  { %4789 = vmatprep.subr.bf16.mxu1 %v5491_v4 }
  0x8f   :  { %v55_v6 = vpop.xlane.xlu0 %54 }
  0x90   :  { %v59_v7 = vmul.f32 0.0078125, %v55_v6 }
  0x92   :  { %v61_v8 = vsub.f32 %v49_v0, %v59_v7  ;;  %v5213_v0 = vld [vmem:[%s6700_s3 + $0x160] sm:$0xff]  }
  0x93   :  { %v57_v9 = vpop.xlane.xlu0 %56 }
  0x94   :  { %v60_v10 = vmul.f32 0.0078125, %v57_v9  ;;  %v63_v11 = vmul.f32 %v61_v8, %v61_v8 }
  0x96   :  { %v62_v12 = vsub.f32 %v50_v1, %v60_v10  ;;  %65 = vadd.xlane.f32.xlu1 %v63_v11  ;;  %v5214_v1 = vld [vmem:[%s6700_s3 + $0x168] sm:$0xff]  }
  0x98   :  { %v64_v13 = vmul.f32 %v62_v12, %v62_v12 }
  0x9a   :  { %67 = vadd.xlane.f32.xlu1 %v64_v13 }
 0x123   :  { %v66_v27 = vpop.xlane.xlu1 %65 }
 0x124   :  { %v69_v28 = vmul.f32 0.0078125, %v66_v27 }
 0x126   :  { %v71_v29 = vadd.f32 1e-05, %v69_v28 }
 0x127   :  { %v68_v30 = vpop.xlane.xlu1 %67 }
 0x128   :  { %5393 = vrsqrt.f32 %v71_v29  ;;  %v70_v31 = vmul.f32 0.0078125, %v68_v30 }
 0x12a   :  { %v72_v32 = vadd.f32 1e-05, %v70_v31 }
 0x12c   :  { %5395 = vrsqrt.f32 %v72_v32 }
 0x132   :  { %v5394_v33 = vpop.eup %5393 }
 0x133   :  { %v75_v34 = vmul.f32 %v5394_v33, %v61_v8 }
 0x135   :  { %v83_v37 = vmul.f32 %v3959_v35, %v75_v34 }
 0x136   :  { %v5396_v36 = vpop.eup %5395 }
 0x137   :  { %v76_v38 = vmul.f32 %v5396_v36, %v62_v12  ;;  %v5652_v41 = vadd.f32 %v3960_v39, %v83_v37 }
 0x139   :  { %v84_v40 = vmul.f32 %v3959_v35, %v76_v38 }
 0x13b   :  { %v5654_v42 = vadd.f32 %v3960_v39, %v84_v40  ;;  %v5798_v40 = vld [vmem:[%s6701_s4 + $0x5] ss:$0 sm:$0xff] }
 0x13d   :  { %v5661_v44 = vpack.c.bf16 %v5654_v42, %v5652_v41 }
 0x13f   :  { %4746 = vmatmul.mubr.bf16.vlgmr.msra.gmra.mrb[0].mxu0 %v5661_v44  ;;  %4766 = vmatmul.mubr.bf16.vlgmr.msra.gmra.mrb[0].mxu1 %v5661_v44 }
 0x140   :  { %4770 = vmatpush3.bf16.msra.mxu0 %v5193_v43  ;;  %4785 = vmatprep.mubr.msk.bf16.mxu0 %vm5492_vm0, %v5491_v4 }
 0x141   :  { %4771 = vmatprep.subr.bf16.mxu0 %v5491_v4  ;;  %4791 = vmatprep.mubr.msk.bf16.mxu1 %vm5492_vm0, %v5491_v4 }
 0x144   :  { %4772 = vmatpush3.bf16.msra.mxu0 %v5194_v45 }
 0x145   :  { %4773 = vmatprep.subr.bf16.mxu0 %v5491_v4 }
 0x148   :  { %4774 = vmatpush3.bf16.msra.mxu0 %v5195_v46 }
 0x149   :  { %4775 = vmatprep.subr.bf16.mxu0 %v5491_v4 }
 0x14c   :  { %4776 = vmatpush3.bf16.msra.mxu0 %v5196_v47 }
 0x14d   :  { %4777 = vmatprep.subr.bf16.mxu0 %v5491_v4 }
 0x150   :  { %4778 = vmatpush3.bf16.msra.mxu0 %v5197_v48  ;;  %v5806_v48 = vld [vmem:[%s6698_s1] ss:$0 sm:$0xff] }
 0x151   :  { %4779 = vmatprep.subr.bf16.mxu0 %v5491_v4 }
 0x154   :  { %4780 = vmatpush3.bf16.msra.mxu0 %v5198_v49 }
 0x155   :  { %4781 = vmatprep.subr.bf16.mxu0 %v5491_v4 }
 0x158   :  { %4782 = vmatpush3.bf16.msra.mxu0 %v5199_v50 }
 0x159   :  { %4783 = vmatprep.subr.bf16.mxu0 %v5491_v4 }
 0x15c   :  { %4784 = vmatpush3.bf16.msra.mxu0 %v5200_v51 }
 0x15d   :  { %4813 = vmatprep.subr.bf16.mxu0 %v5491_v4 }
 0x15f   :  { %4786 = vmatmul.mubr.bf16.vlgmr.msra.gmra.mrb[4].mxu0 %v5661_v44 }
 0x160   :  { %4814 = vmatpush3.bf16.msra.mxu0 %v5201_v52  ;;  %4829 = vmatprep.mubr.msk.bf16.mxu0 %vm5492_vm0, %v5491_v4 }
 0x161   :  { %4815 = vmatprep.subr.bf16.mxu0 %v5491_v4 }
 0x164   :  { %4816 = vmatpush3.bf16.msra.mxu0 %v5202_v53 }
 0x165   :  { %4817 = vmatprep.subr.bf16.mxu0 %v5491_v4 }
 0x168   :  { %4818 = vmatpush3.bf16.msra.mxu0 %v5203_v54 }
 0x169   :  { %4819 = vmatprep.subr.bf16.mxu0 %v5491_v4 }
 0x16c   :  { %4820 = vmatpush3.bf16.msra.mxu0 %v5204_v55 }
 0x16d   :  { %4821 = vmatprep.subr.bf16.mxu0 %v5491_v4 }
 0x170   :  { %4822 = vmatpush3.bf16.msra.mxu0 %v5205_v56  ;;  %v5813_v56 = vld [vmem:[%s6698_s1 + $0x1] ss:$0 sm:$0xff] }
 0x171   :  { %4823 = vmatprep.subr.bf16.mxu0 %v5491_v4 }
 0x174   :  { %4824 = vmatpush3.bf16.msra.mxu0 %v5206_v57 }
 0x175   :  { %4825 = vmatprep.subr.bf16.mxu0 %v5491_v4 }
 0x178   :  { %4826 = vmatpush3.bf16.msra.mxu0 %v5207_v58 }
 0x179   :  { %4827 = vmatprep.subr.bf16.mxu0 %v5491_v4 }
 0x17c   :  { %4828 = vmatpush3.bf16.msra.mxu0 %v5208_v59 }
 0x17d   :  { %4853 = vmatprep.subr.bf16.mxu0 %v5491_v4 }
 0x17f   :  { %4830 = vmatmul.mubr.bf16.vlgmr.msra.gmra.mrb[8].mxu0 %v5661_v44 }
 0x180   :  { %4854 = vmatpush3.bf16.msra.mxu0 %v5209_v60  ;;  %4869 = vmatprep.mubr.msk.bf16.mxu0 %vm5492_vm0, %v5491_v4 }
 0x181   :  { %4855 = vmatprep.subr.bf16.mxu0 %v5491_v4 }
 0x184   :  { %4856 = vmatpush3.bf16.msra.mxu0 %v5210_v61 }
 0x185   :  { %4857 = vmatprep.subr.bf16.mxu0 %v5491_v4 }
 0x188   :  { %4858 = vmatpush3.bf16.msra.mxu0 %v5211_v62 }
 0x189   :  { %4859 = vmatprep.subr.bf16.mxu0 %v5491_v4 }
 0x18c   :  { %4860 = vmatpush3.bf16.msra.mxu0 %v5212_v63 }
 0x18d   :  { %4861 = vmatprep.subr.bf16.mxu0 %v5491_v4 }
 0x190   :  { %4862 = vmatpush3.bf16.msra.mxu0 %v5213_v0 }
 0x191   :  { %4863 = vmatprep.subr.bf16.mxu0 %v5491_v4 }
 0x194   :  { %4864 = vmatpush3.bf16.msra.mxu0 %v5214_v1 }
 0x195   :  { %4865 = vmatprep.subr.bf16.mxu0 %v5491_v4 }
 0x198   :  { %4866 = vmatpush3.bf16.msra.mxu0 %v5215_v2 }
 0x199   :  { %4867 = vmatprep.subr.bf16.mxu0 %v5491_v4 }
 0x19c   :  { %4868 = vmatpush3.bf16.msra.mxu0 %v5216_v3 }
 0x19f   :  { %4870 = vmatmul.mubr.bf16.vlgmr.msra.gmra.mrb[12].mxu0 %v5661_v44 }
 0x212   :  { %v201_v6 = vpop.f32.mrb[0].mxu0  ;;  %v315_v7 = vpop.f32.mrb[0].mxu1 }
 0x213   :  { %v316_v8 = vadd.f32 %v3987_v5, %v315_v7  ;;  %v4747_v9 = vpop.f32.mrb[1].mxu0  ;;  %v4767_v10 = vpop.f32.mrb[1].mxu1  ;;  %v202_v19 = vadd.f32 %v3961_v16, %v201_v6 }
 0x214   :  { %v204_v11 = vpop.f32.mrb[2].mxu0  ;;  %v318_v12 = vpop.f32.mrb[2].mxu1 }
 0x215   :  { %v438_v13 = vpack.c.bf16 %v316_v8, %v316_v8  ;;  %v4748_v14 = vpop.f32.mrb[3].mxu0  ;;  %v4768_v15 = vpop.f32.mrb[3].mxu1  ;;  %v319_v18 = vadd.f32 %v3987_v5, %v318_v12  ;;  %v436_v21 = vpack.c.bf16 %v202_v19, %v202_v19  ;;  %v205_v23 = vadd.f32 %v3961_v16, %v204_v11  ;;  %v5217_v19 = vld [vmem:[%s6700_s3 + $0xc0] sm:$0xff]  }
 0x217   :  { %v447_v17 = vsel %vm442_vm1, %v438_v13, 0  ;;  %v439_v20 = vpack.c.bf16 %v319_v18, %v319_v18  ;;  %v437_v24 = vpack.c.bf16 %v205_v23, %v205_v23  ;;  %v5220_v23 = vld [vmem:[%s6700_s3 + $0xd8] sm:$0xff]  }
 0x218   :  { %4790 = vmatpush3.bf16.xpose.msra.mxu1 %v447_v17 }
 0x219   :  { %4795 = vmatprep.subr.bf16.mxu1 %v5491_v4  ;;  %v493_v22 = vsel %vm442_vm1, %v439_v20, 0 }
 0x21f   :  { %4792 = vmatmul.mubr.msk.bf16.vlgmr.msra.gmra.mrb[4].mxu1 %vm442_vm1, %v436_v21  ;;  %v5218_v21 = vld [vmem:[%s6700_s3 + $0xc8] sm:$0xff]  }
 0x220   :  { %4796 = vmatpush3.bf16.xpose.msra.mxu1 %v493_v22  ;;  %4797 = vmatprep.mubr.msk.bf16.mxu1 %vm5492_vm0, %v5491_v4  ;;  %v5219_v22 = vld [vmem:[%s6700_s3 + $0xd0] sm:$0xff]  }
 0x221   :  { %4801 = vmatprep.subr.bf16.mxu1 %v5491_v4 }
 0x227   :  { %4798 = vmatmul.mubr.msk.bf16.vlgmr.msra.gmra.mrb[8].mxu1 %vm442_vm1, %v437_v24  ;;  %v5221_v24 = vld [vmem:[%s6700_s3 + $0xe0] sm:$0xff]  }
 0x228   :  { %4803 = vmatprep.mubr.msk.bf16.mxu1 %vm5492_vm0, %v5491_v4 }
 0x232   :  { %v429_v26 = vpop.f32.mrb[4].mxu0 }
 0x233   :  { %v430_v27 = vadd.f32 %v4013_v25, %v429_v26  ;;  %v4787_v28 = vpop.f32.mrb[5].mxu0  ;;  %v5223_v26 = vld [vmem:[%s6700_s3 + $0xf0] sm:$0xff]  }
 0x234   :  { %v432_v29 = vpop.f32.mrb[6].mxu0 }
 0x235   :  { %v440_v30 = vpack.c.bf16 %v430_v27, %v430_v27  ;;  %v433_v31 = vadd.f32 %v4013_v25, %v432_v29  ;;  %v4788_v32 = vpop.f32.mrb[7].mxu0  ;;  %v5222_v25 = vld [vmem:[%s6700_s3 + $0xe8] sm:$0xff]   ;;  %v5224_v27 = vld [vmem:[%s6700_s3 + $0xf8] sm:$0xff]  }
 0x237   :  { %v581_v33 = vsel %vm579_vm2, %v440_v30, 0  ;;  %v441_v13 = vpack.c.bf16 %v433_v31, %v433_v31 }
 0x238   :  { %4802 = vmatpush3.bf16.msra.mxu1 %v581_v33 }
 0x239   :  { %4807 = vmatprep.subr.bf16.mxu1 %v5491_v4  ;;  %v627_v16 = vsel %vm579_vm2, %v441_v13, 0 }
 0x252   :  { %v5789_v34 = vpop.f32.mrb[8].mxu0 }
 0x253   :  { %v4831_v35 = vpop.f32.mrb[9].mxu0 }
 0x254   :  { %v5791_v36 = vpop.f32.mrb[10].mxu0 }
 0x255   :  { %v4832_v37 = vpop.f32.mrb[11].mxu0 }
 0x272   :  { %v5793_v38 = vpop.f32.mrb[12].mxu0 }
 0x273   :  { %v4871_v39 = vpop.f32.mrb[13].mxu0 }
 0x274   :  { %v1016_v43 = vpop.f32.mrb[14].mxu0 }
 0x275   :  { %v5801_v45 = vadd.f32 %v5798_v40, %v1016_v43  ;;  %v4872_v46 = vpop.f32.mrb[15].mxu0 }
 0x2f2   :  { %v483_v47 = vpop.f32.mrb[4].mxu1 }
 0x2f3   :  { %v535_v49 = vmul.f32 0.125, %v483_v47  ;;  %v4793_v50 = vpop.f32.mrb[5].mxu1 }
 0x2f4   :  { %v486_v51 = vpop.f32.mrb[6].mxu1 }
 0x2f5   :  { %v4794_v52 = vpop.f32.mrb[7].mxu1  ;;  %v549_v53 = vadd.f32 %v5806_v48, %v535_v49 }
 0x2f6   :  { %v4045_v52 = vld [vmem:[%s6701_s4 + $0x1] ss:$0 sm:$0xff] }
 0x2f7   :  { %v552_v54 = vsel %vm551_vm3, %v549_v53, -inf }
 0x2f8   :  { %553 = vmax.xlane.f32.xlu0 %v552_v54 }
 0x2fa   :  { %v529_v55 = vpop.f32.mrb[8].mxu1 }
 0x2fb   :  { %v536_v57 = vmul.f32 0.125, %v529_v55  ;;  %v4799_v58 = vpop.f32.mrb[9].mxu1  ;;  %v786_v55 = vadd.f32 %v4045_v52, %v5789_v34 }
 0x2fc   :  { %v532_v59 = vpop.f32.mrb[10].mxu1 }
 0x2fd   :  { %v4800_v60 = vpop.f32.mrb[11].mxu1  ;;  %v550_v61 = vadd.f32 %v5813_v56, %v536_v57  ;;  %v1020_v58 = vpack.c.bf16 %v786_v55, %v786_v55  ;;  %v1014_v59 = vadd.f32 %v5798_v40, %v5793_v38  ;;  %v5231_v55 = vld [vmem:[%s6702_s5 + $0x10] sm:$0xff]  }
 0x2ff   :  { %v555_v62 = vsel %vm551_vm3, %v550_v61, -inf  ;;  %v1024_v34 = vpack.c.bf16 %v1014_v59, %v1014_v59 }
 0x300   :  { %556 = vmax.xlane.f32.xlu1 %v555_v62 }
 0x385   :  { %v554_v63 = vpop.xlane.xlu0 %553 }
 0x386   :  { %v558_v0 = vsub.f32 %v549_v53, %v554_v63  ;;  %v1150_v63 = vsel %vm579_vm2, %v1024_v34, 0 }
 0x388   :  { %v560_v1 = vmul.f32 1.442695, %v558_v0 }
 0x38a   :  { %5397 = vpow2.f32 %v560_v1 }
 0x38d   :  { %v557_v2 = vpop.xlane.xlu1 %556 }
 0x38e   :  { %v559_v3 = vsub.f32 %v550_v61, %v557_v2  ;;  %v789_v61 = vadd.f32 %v4045_v52, %v5791_v36 }
 0x390   :  { %v562_v5 = vmul.f32 1.442695, %v559_v3  ;;  %v1021_v62 = vpack.c.bf16 %v789_v61, %v789_v61 }
 0x392   :  { %5399 = vpow2.f32 %v562_v5 }
 0x394   :  { %v5398_v6 = vpop.eup %5397 }
 0x395   :  { %v564_v7 = vsel %vm551_vm3, %v5398_v6, 0.0 }
 0x396   :  { %565 = vadd.xlane.f32.xlu0 %v564_v7 }
 0x39c   :  { %v5400_v8 = vpop.eup %5399 }
 0x39d   :  { %v567_v9 = vsel %vm551_vm3, %v5400_v8, 0.0 }
 0x39e   :  { %568 = vadd.xlane.f32.xlu1 %v567_v9 }
 0x423   :  { %v566_v10 = vpop.xlane.xlu0 %565 }
 0x424   :  { %5401 = vrcp.f32 %v566_v10 }
 0x42b   :  { %v569_v11 = vpop.xlane.xlu1 %568 }
 0x42c   :  { %5403 = vrcp.f32 %v569_v11 }
 0x42e   :  { %v5402_v12 = vpop.eup %5401 }
 0x42f   :  { %v572_v14 = vmul.f32 %v5402_v12, %v5398_v6 }
 0x431   :  { %v574_v15 = vpack.c.bf16 %v572_v14, %v572_v14 }
 0x433   :  { %4804 = vmatmul.mubr.msk.bf16.vlgmr.msra.gmra.mrb[12].mxu1 %vm551_vm3, %v574_v15 }
 0x434   :  { %4808 = vmatpush3.bf16.msra.mxu1 %v627_v16  ;;  %4809 = vmatprep.mubr.msk.bf16.mxu1 %vm5492_vm0, %v5491_v4 }
 0x435   :  { %4833 = vmatprep.subr.bf16.mxu1 %v5491_v4 }
 0x436   :  { %v5404_v17 = vpop.eup %5403 }
 0x437   :  { %v573_v18 = vmul.f32 %v5404_v17, %v5400_v8 }
 0x439   :  { %v575_v20 = vpack.c.bf16 %v573_v18, %v573_v18 }
 0x43b   :  { %4810 = vmatmul.mubr.msk.bf16.vlgmr.msra.gmra.mrb[16].mxu1 %vm551_vm3, %v575_v20 }
 0x43c   :  { %4834 = vmatpush3.bf16.msra.mxu1 %v5217_v19  ;;  %4849 = vmatprep.mubr.msk.bf16.mxu1 %vm5492_vm0, %v5491_v4 }
 0x43d   :  { %4835 = vmatprep.subr.bf16.mxu1 %v5491_v4 }
 0x440   :  { %4836 = vmatpush3.bf16.msra.mxu1 %v5218_v21 }
 0x441   :  { %4837 = vmatprep.subr.bf16.mxu1 %v5491_v4 }
 0x444   :  { %4838 = vmatpush3.bf16.msra.mxu1 %v5219_v22 }
 0x445   :  { %4839 = vmatprep.subr.bf16.mxu1 %v5491_v4 }
 0x448   :  { %4840 = vmatpush3.bf16.msra.mxu1 %v5220_v23  ;;  %v1025_v23 = vpack.c.bf16 %v5801_v45, %v5801_v45  ;;  %v5226_v45 = vld [vmem:[%s6702_s5 + $0x28] sm:$0xff]  }
 0x449   :  { %4841 = vmatprep.subr.bf16.mxu1 %v5491_v4 }
 0x44c   :  { %4842 = vmatpush3.bf16.msra.mxu1 %v5221_v24 }
 0x44d   :  { %4843 = vmatprep.subr.bf16.mxu1 %v5491_v4 }
 0x450   :  { %4844 = vmatpush3.bf16.msra.mxu1 %v5222_v25 }
 0x451   :  { %4845 = vmatprep.subr.bf16.mxu1 %v5491_v4 }
 0x454   :  { %4846 = vmatpush3.bf16.msra.mxu1 %v5223_v26  ;;  %v1196_v26 = vsel %vm579_vm2, %v1025_v23, 0  ;;  %v5493_v23 = vmov 0  }
 0x455   :  { %4847 = vmatprep.subr.bf16.mxu1 %v5491_v4  ;;  %1578 = vmatprep.mubr.bf16.mxu0 %v5493_v23 }
 0x458   :  { %4848 = vmatpush3.bf16.msra.mxu1 %v5224_v27 }
 0x459   :  { %4873 = vmatprep.subr.bf16.mxu1 %v5491_v4 }
 0x45b   :  { %4850 = vmatmul.mubr.bf16.vlgmr.msra.gmra.mrb[20].mxu1 %v5661_v44  ;;  %v4071_v44 = vld [vmem:[%s6701_s4 + $0x3] ss:$0 sm:$0xff] }
 0x45c   :  { %4875 = vmatprep.mubr.msk.bf16.mxu1 %vm5492_vm0, %v5491_v4 }
 0x506   :  { %v5862_v28 = vpop.f32.mrb[12].mxu1 }
 0x507   :  { %v4805_v29 = vpop.f32.mrb[13].mxu1 }
 0x508   :  { %v620_v30 = vpop.f32.mrb[14].mxu1 }
 0x509   :  { %v4806_v31 = vpop.f32.mrb[15].mxu1  ;;  %v5225_v30 = vld [vmem:[%s6702_s5 + $0x20] sm:$0xff]  }
 0x50e   :  { %v5864_v32 = vpop.f32.mrb[16].mxu1 }
 0x50f   :  { %v669_v33 = vpack.c.bf16 %v5864_v32, %v5862_v28  ;;  %v4811_v35 = vpop.f32.mrb[17].mxu1 }
 0x510   :  { %v666_v37 = vpop.f32.mrb[18].mxu1  ;;  %v5227_v35 = vld [vmem:[%s6702_s5 + $0x30] sm:$0xff]  }
 0x511   :  { %v4812_v39 = vpop.f32.mrb[19].mxu1  ;;  %v5228_v37 = vld [vmem:[%s6702_s5 + $0x38] sm:$0xff]  }
 0x52e   :  { %v899_v43 = vpop.f32.mrb[20].mxu1 }
 0x52f   :  { %v900_v46 = vadd.f32 %v4071_v44, %v899_v43  ;;  %v4851_v47 = vpop.f32.mrb[21].mxu1 }
 0x530   :  { %v902_v49 = vpop.f32.mrb[22].mxu1 }
 0x531   :  { %v1022_v50 = vpack.c.bf16 %v900_v46, %v900_v46  ;;  %v4852_v51 = vpop.f32.mrb[23].mxu1  ;;  %v903_v54 = vadd.f32 %v4071_v44, %v902_v49  ;;  %v5229_v49 = vld [vmem:[%s6702_s5] sm:$0xff]  }
 0x533   :  { %v1030_v53 = vsel %vm442_vm1, %v1022_v50, 0  ;;  %v1023_v57 = vpack.c.bf16 %v903_v54, %v903_v54  ;;  %v5230_v54 = vld [vmem:[%s6702_s5 + $0x8] sm:$0xff]  }
 0x534   :  { %4874 = vmatpush3.bf16.xpose.msra.mxu1 %v1030_v53 }
 0x535   :  { %4879 = vmatprep.subr.bf16.mxu1 %v5491_v4  ;;  %v1076_v60 = vsel %vm442_vm1, %v1023_v57, 0  ;;  %v5232_v57 = vld [vmem:[%s6702_s5 + $0x18] sm:$0xff]  }
 0x53b   :  { %4876 = vmatmul.mubr.msk.bf16.vlgmr.msra.gmra.mrb[24].mxu1 %vm442_vm1, %v1020_v58 }
 0x53c   :  { %4880 = vmatpush3.bf16.xpose.msra.mxu1 %v1076_v60  ;;  %4881 = vmatprep.mubr.msk.bf16.mxu1 %vm5492_vm0, %v5491_v4 }
 0x53d   :  { %4885 = vmatprep.subr.bf16.mxu1 %v5491_v4 }
 0x543   :  { %4882 = vmatmul.mubr.msk.bf16.vlgmr.msra.gmra.mrb[28].mxu1 %vm442_vm1, %v1021_v62  ;;  %v4128_v62 = vld [vmem:[%s6703_s6] ss:$0 sm:$0xff] }
 0x544   :  { %4886 = vmatpush3.bf16.msra.mxu1 %v1150_v63  ;;  %4887 = vmatprep.mubr.msk.bf16.mxu1 %vm5492_vm0, %v5491_v4 }
 0x545   :  { %4891 = vmatprep.subr.bf16.mxu1 %v5491_v4 }
 0x60e   :  { %v1066_v38 = vpop.f32.mrb[24].mxu1 }
 0x60f   :  { %v1118_v40 = vmul.f32 0.125, %v1066_v38  ;;  %v4877_v0 = vpop.f32.mrb[25].mxu1 }
 0x610   :  { %v1069_v1 = vpop.f32.mrb[26].mxu1 }
 0x611   :  { %v4878_v2 = vpop.f32.mrb[27].mxu1  ;;  %v1120_v36 = vadd.f32 %v5806_v48, %v1118_v40 }
 0x613   :  { %v1122_v3 = vsel %vm551_vm3, %v1120_v36, -inf }
 0x614   :  { %1123 = vmax.xlane.f32.xlu0 %v1122_v3  ;;  %v5235_v3 = vld [vmem:[%s6704_s7 + $0x4] ss:$8 sps:$4 sm:$0xff]  }
 0x615   :  { %1546 = vmatprep.subr.bf16.mxu0 %v5235_v3 }
 0x616   :  { %v1112_v5 = vpop.f32.mrb[28].mxu1 }
 0x617   :  { %v1119_v6 = vmul.f32 0.125, %v1112_v5  ;;  %v4883_v7 = vpop.f32.mrb[29].mxu1  ;;  %v5238_v5 = vld [vmem:[%s6704_s7 + $0x14] ss:$8 sps:$4 sm:$0xff]  }
 0x618   :  { %v1115_v8 = vpop.f32.mrb[30].mxu1 }
 0x619   :  { %v4884_v9 = vpop.f32.mrb[31].mxu1  ;;  %v1121_v10 = vadd.f32 %v5813_v56, %v1119_v6 }
 0x61b   :  { %v1125_v11 = vsel %vm551_vm3, %v1121_v10, -inf }
 0x61c   :  { %1126 = vmax.xlane.f32.xlu1 %v1125_v11 }
 0x6a1   :  { %v1124_v12 = vpop.xlane.xlu0 %1123 }
 0x6a2   :  { %v1128_v13 = vsub.f32 %v1120_v36, %v1124_v12 }
 0x6a4   :  { %v1130_v14 = vmul.f32 1.442695, %v1128_v13  ;;  %v5241_v13 = vld [vmem:[%s6704_s7 + $0x24] ss:$8 sps:$4 sm:$0xff]  }
 0x6a6   :  { %5405 = vpow2.f32 %v1130_v14  ;;  %v5239_v14 = vld [vmem:[%s6704_s7 + $0x20] ss:$8 sps:$4 sm:$0xff]  }
 0x6a9   :  { %v1127_v15 = vpop.xlane.xlu1 %1126 }
 0x6aa   :  { %v1129_v16 = vsub.f32 %v1121_v10, %v1127_v15  ;;  %v5244_v15 = vld [vmem:[%s6704_s7 + $0x34] ss:$8 sps:$4 sm:$0xff]  }
 0x6ac   :  { %v1132_v48 = vmul.f32 1.442695, %v1129_v16  ;;  %v5242_v16 = vld [vmem:[%s6704_s7 + $0x30] ss:$8 sps:$4 sm:$0xff]  }
 0x6ae   :  { %5407 = vpow2.f32 %v1132_v48  ;;  %v5247_v48 = vld [vmem:[%s6704_s7 + $0x44] ss:$8 sps:$4 sm:$0xff]  }
 0x6b0   :  { %v5406_v17 = vpop.eup %5405 }
 0x6b1   :  { %v1134_v18 = vsel %vm551_vm3, %v5406_v17, 0.0 }
 0x6b2   :  { %1135 = vadd.xlane.f32.xlu0 %v1134_v18  ;;  %v5250_v18 = vld [vmem:[%s6704_s7 + $0x54] ss:$8 sps:$4 sm:$0xff]  }
 0x6b8   :  { %v5408_v19 = vpop.eup %5407 }
 0x6b9   :  { %v1137_v20 = vsel %vm551_vm3, %v5408_v19, 0.0 }
 0x6ba   :  { %1138 = vadd.xlane.f32.xlu1 %v1137_v20  ;;  %v5253_v20 = vld [vmem:[%s6704_s7 + $0x64] ss:$8 sps:$4 sm:$0xff]  }
 0x73f   :  { %v1136_v56 = vpop.xlane.xlu0 %1135 }
 0x740   :  { %5409 = vrcp.f32 %v1136_v56  ;;  %v5251_v56 = vld [vmem:[%s6704_s7 + $0x60] ss:$8 sps:$4 sm:$0xff]  }
 0x747   :  { %v1139_v21 = vpop.xlane.xlu1 %1138 }
 0x748   :  { %5411 = vrcp.f32 %v1139_v21  ;;  %v5256_v21 = vld [vmem:[%s6704_s7 + $0x74] ss:$8 sps:$4 sm:$0xff]  }
 0x74a   :  { %v5410_v22 = vpop.eup %5409 }
 0x74b   :  { %v1142_v24 = vmul.f32 %v5410_v22, %v5406_v17  ;;  %v5245_v17 = vld [vmem:[%s6704_s7 + $0x40] ss:$8 sps:$4 sm:$0xff]   ;;  %v5254_v22 = vld [vmem:[%s6704_s7 + $0x70] ss:$8 sps:$4 sm:$0xff]  }
 0x74d   :  { %v1144_v25 = vpack.c.bf16 %v1142_v24, %v1142_v24 }
 0x74f   :  { %4888 = vmatmul.mubr.msk.bf16.vlgmr.msra.gmra.mrb[32].mxu1 %vm551_vm3, %v1144_v25 }
 0x750   :  { %4892 = vmatpush3.bf16.msra.mxu1 %v1196_v26  ;;  %4893 = vmatprep.mubr.msk.bf16.mxu1 %vm5492_vm0, %v5491_v4 }
 0x751   :  { %4897 = vmatprep.subr.bf16.mxu1 %v5491_v4 }
 0x752   :  { %v5412_v27 = vpop.eup %5411 }
 0x753   :  { %v1143_v29 = vmul.f32 %v5412_v27, %v5408_v19  ;;  %v5248_v19 = vld [vmem:[%s6704_s7 + $0x50] ss:$8 sps:$4 sm:$0xff]  }
 0x755   :  { %v1145_v31 = vpack.c.bf16 %v1143_v29, %v1143_v29 }
 0x757   :  { %4894 = vmatmul.mubr.msk.bf16.vlgmr.msra.gmra.mrb[36].mxu1 %vm551_vm3, %v1145_v31 }
 0x758   :  { %4898 = vmatpush3.bf16.msra.mxu1 %v5225_v30  ;;  %4905 = vmatprep.mubr.msk.bf16.mxu1 %vm5492_vm0, %v5491_v4 }
 0x759   :  { %4899 = vmatprep.subr.bf16.mxu1 %v5491_v4 }
 0x75c   :  { %4900 = vmatpush3.bf16.msra.mxu1 %v5226_v45  ;;  %v4131_v45 = vld [vmem:[%s6703_s6 + $0x1] ss:$0 sm:$0xff] }
 0x75d   :  { %4901 = vmatprep.subr.bf16.mxu1 %v5491_v4 }
 0x760   :  { %4902 = vmatpush3.bf16.msra.mxu1 %v5227_v35 }
 0x761   :  { %4903 = vmatprep.subr.bf16.mxu1 %v5491_v4 }
 0x764   :  { %4904 = vmatpush3.bf16.msra.mxu1 %v5228_v37 }
 0x765   :  { %4909 = vmatprep.subr.bf16.mxu1 %v5491_v4 }
 0x822   :  { %v1186_v39 = vpop.f32.mrb[32].mxu1 }
 0x823   :  { %v4889_v44 = vpop.f32.mrb[33].mxu1 }
 0x824   :  { %v1189_v43 = vpop.f32.mrb[34].mxu1 }
 0x825   :  { %v4890_v46 = vpop.f32.mrb[35].mxu1  ;;  %v4132_v43 = vld [vmem:[%s6703_s6 + $0x2] ss:$0 sm:$0xff] }
 0x82a   :  { %v1232_v47 = vpop.f32.mrb[36].mxu1 }
 0x82b   :  { %v1238_v50 = vpack.c.bf16 %v1232_v47, %v1186_v39  ;;  %v4895_v51 = vpop.f32.mrb[37].mxu1 }
 0x82c   :  { %v1235_v52 = vpop.f32.mrb[38].mxu1  ;;  %v5257_v51 = vld [vmem:[%s6706_s9 + $0x40] sm:$0xff]  }
 0x82d   :  { %v4896_v53 = vpop.f32.mrb[39].mxu1  ;;  %4906 = vmatmul.mubr.msk.bf16.vlgmr.msra.gmra.mrb[40].mxu1 %vm442_vm1, %v1238_v50  ;;  %v5258_v52 = vld [vmem:[%s6706_s9] sm:$0xff]  }
 0x82e   :  { %4910 = vmatpush3.bf16.msra.mxu1 %v5229_v49  ;;  %4917 = vmatprep.mubr.msk.bf16.mxu1 %vm5492_vm0, %v5491_v4  ;;  %v5259_v53 = vld [vmem:[%s6706_s9 + $0x48] sm:$0xff]  }
 0x82f   :  { %4911 = vmatprep.subr.bf16.mxu1 %v5491_v4 }
 0x832   :  { %4912 = vmatpush3.bf16.msra.mxu1 %v5230_v54  ;;  %v5260_v54 = vld [vmem:[%s6706_s9 + $0x8] sm:$0xff]  }
 0x833   :  { %4913 = vmatprep.subr.bf16.mxu1 %v5491_v4 }
 0x836   :  { %4914 = vmatpush3.bf16.msra.mxu1 %v5231_v55  ;;  %v5261_v55 = vld [vmem:[%s6706_s9 + $0x50] sm:$0xff]  }
 0x837   :  { %4915 = vmatprep.subr.bf16.mxu1 %v5491_v4 }
 0x83a   :  { %4916 = vmatpush3.bf16.msra.mxu1 %v5232_v57  ;;  %v5262_v57 = vld [vmem:[%s6706_s9 + $0x10] sm:$0xff]  }
 0x83b   :  { %4578 = vmatprep.subr.bf16.mxu1 %v5257_v51 }
 0x83d   :  { %4918 = vmatmul.mubr.msk.bf16.vlgmr.msra.gmra.mrb[44].mxu1 %vm442_vm1, %v669_v33  ;;  %v5233_v33 = vld [vmem:[%s6704_s7] ss:$8 sps:$4 sm:$0xff]  }
 0x83e   :  { %1547 = vmatpush1.bf16.msra.mxu0 %v5233_v33  ;;  %4579 = vmatpush3.bf16.msra.mxu1 %v5258_v52 }
 0x83f   :  { %1548 = vmatprep.subr.bf16.mxu0 %v5238_v5  ;;  %4580 = vmatprep.subr.bf16.mxu1 %v5259_v53 }
 0x842   :  { %4581 = vmatpush3.bf16.msra.mxu1 %v5260_v54 }
 0x843   :  { %4582 = vmatprep.subr.bf16.mxu1 %v5261_v55 }
 0x846   :  { %4583 = vmatpush3.bf16.msra.mxu1 %v5262_v57 }
 0x900   :  { %v1309_v58 = vpop.f32.mrb[40].mxu1 }
 0x901   :  { %v4907_v59 = vpop.f32.mrb[41].mxu1 }
 0x902   :  { %v1312_v60 = vpop.f32.mrb[42].mxu1  ;;  %v5264_v59 = vld [vmem:[%s6706_s9 + $0x18] sm:$0xff]  }
 0x903   :  { %v4908_v61 = vpop.f32.mrb[43].mxu1 }
 0x904   :  { %v5266_v61 = vld [vmem:[%s6706_s9 + $0x20] sm:$0xff]  }
 0x910   :  { %v1377_v34 = vpop.f32.mrb[44].mxu1 }
 0x911   :  { %v1378_v63 = vadd.f32 %v1377_v34, %v1309_v58  ;;  %v4919_v38 = vpop.f32.mrb[45].mxu1  ;;  %v5263_v58 = vld [vmem:[%s6706_s9 + $0x58] sm:$0xff]   ;;  %v5267_v34 = vld [vmem:[%s6706_s9 + $0x68] sm:$0xff]  }
 0x912   :  { %v1380_v40 = vpop.f32.mrb[46].mxu1  ;;  %4584 = vmatprep.subr.bf16.mxu1 %v5263_v58  ;;  %v5270_v38 = vld [vmem:[%s6706_s9 + $0x30] sm:$0xff]  }
 0x913   :  { %v1391_v0 = vadd.f32 %v4128_v62, %v1378_v63  ;;  %v1381_v1 = vadd.f32 %v1380_v40, %v1312_v60  ;;  %v4920_v2 = vpop.f32.mrb[47].mxu1  ;;  %4585 = vmatpush3.bf16.msra.mxu1 %v5264_v59  ;;  %v5265_v60 = vld [vmem:[%s6706_s9 + $0x60] sm:$0xff]   ;;  %v5269_v63 = vld [vmem:[%s6706_s9 + $0x70] sm:$0xff]   ;;  %v5271_v40 = vld [vmem:[%s6706_s9 + $0x78] sm:$0xff]  }
 0x914   :  { %4586 = vmatprep.subr.bf16.mxu1 %v5265_v60 }
 0x915   :  { %v1392_v36 = vadd.f32 %v4128_v62, %v1381_v1  ;;  %v1393_v28 = vadd.f32 %v1391_v0, %v5652_v41  ;;  %v5236_v41 = vld [vmem:[%s6704_s7 + $0x10] ss:$8 sps:$4 sm:$0xff]   ;;  %v5268_v62 = vld [vmem:[%s6706_s9 + $0x28] sm:$0xff]   ;;  %v1456_v1 = vlaneseq }
 0x916   :  { %1549 = vmatpush1.bf16.msra.mxu0 %v5236_v41  ;;  %v5272_v0 = vld [vmem:[%s6706_s9 + $0x38] sm:$0xff]  }
 0x917   :  { %1399 = vadd.xlane.f32.xlu0 %v1393_v28  ;;  %v1394_v32 = vadd.f32 %v1392_v36, %v5654_v42  ;;  %1550 = vmatprep.subr.bf16.mxu0 %v5241_v13  ;;  %v6062_v2 = vshrl.u32 %v1456_v1, 7 }
 0x918   :  { %4587 = vmatpush3.bf16.msra.mxu1 %v5266_v61 }
 0x919   :  { %1401 = vadd.xlane.f32.xlu1 %v1394_v32  ;;  %4588 = vmatprep.subr.bf16.mxu1 %v5267_v34  ;;  %v1458_v36 = vsub.s32 0, %v6062_v2  ;;  %v4150_v34 = vld [vmem:[%s6703_s6 + $0x3] ss:$0 sm:$0xff] }
 0x91a   :  { %1551 = vmatpush1.bf16.msra.mxu0 %v5239_v14 }
 0x91b   :  { %1552 = vmatprep.subr.bf16.mxu0 %v5244_v15 }
 0x91c   :  { %4589 = vmatpush3.bf16.msra.mxu1 %v5268_v62 }
 0x91d   :  { %4590 = vmatprep.subr.bf16.mxu1 %v5269_v63 }
 0x91e   :  { %1553 = vmatpush1.bf16.msra.mxu0 %v5242_v16 }
 0x91f   :  { %1554 = vmatprep.subr.bf16.mxu0 %v5247_v48 }
 0x920   :  { %4591 = vmatpush3.bf16.msra.mxu1 %v5270_v38 }
 0x921   :  { %4592 = vmatprep.subr.bf16.mxu1 %v5271_v40 }
 0x922   :  { %1555 = vmatpush1.bf16.msra.mxu0 %v5245_v17 }
 0x923   :  { %1556 = vmatprep.subr.bf16.mxu0 %v5250_v18 }
 0x924   :  { %4593 = vmatpush3.bf16.msra.mxu1 %v5272_v0 }
 0x925   :  { %4941 = vmatprep.subr.bf16.mxu1 %v5491_v4 }
 0x926   :  { %1557 = vmatpush1.bf16.msra.mxu0 %v5248_v19 }
 0x927   :  { %1558 = vmatprep.subr.bf16.mxu0 %v5253_v20 }
 0x92a   :  { %1559 = vmatpush1.bf16.msra.mxu0 %v5251_v56 }
 0x92b   :  { %1560 = vmatprep.subr.bf16.mxu0 %v5256_v21 }
 0x92e   :  { %1561 = vmatpush1.bf16.msra.mxu0 %v5254_v22 }
 0x92f   :  { %4921 = vmatprep.subr.bf16.mxu0 %v5491_v4 }
 0x9a4   :  { %v1400_v42 = vpop.xlane.xlu0 %1399 }
 0x9a5   :  { %v1403_v6 = vmul.f32 0.0078125, %v1400_v42 }
 0x9a6   :  { %v1402_v7 = vpop.xlane.xlu1 %1401 }
 0x9a7   :  { %v1405_v8 = vsub.f32 %v1393_v28, %v1403_v6  ;;  %v1404_v9 = vmul.f32 0.0078125, %v1402_v7  ;;  %v1454_v28 = vld [vmem:[%s6705_s8] sm:$0x3] }
 0x9a8   :  { %v1459_v33 = vrot.slane %v1454_v28, %v1458_v36 }
 0x9a9   :  { %v1406_v10 = vsub.f32 %v1394_v32, %v1404_v9  ;;  %v1407_v11 = vmul.f32 %v1405_v8, %v1405_v8  ;;  %v1462_v32 = vsub.s32 1, %v6062_v2 }
 0x9ab   :  { %1409 = vadd.xlane.f32.xlu0 %v1407_v11  ;;  %v1408_v12 = vmul.f32 %v1406_v10, %v1406_v10  ;;  %v1463_v3 = vrot.slane %v1454_v28, %v1462_v32 }
 0x9ad   :  { %1411 = vadd.xlane.f32.xlu1 %v1408_v12 }
 0xa38   :  { %v1410_v24 = vpop.xlane.xlu0 %1409 }
 0xa39   :  { %v1413_v25 = vmul.f32 0.0078125, %v1410_v24 }
 0xa3a   :  { %v1412_v26 = vpop.xlane.xlu1 %1411 }
 0xa3b   :  { %v1415_v27 = vadd.f32 1e-05, %v1413_v25  ;;  %v1414_v29 = vmul.f32 0.0078125, %v1412_v26 }
 0xa3d   :  { %5413 = vrsqrt.f32 %v1415_v27  ;;  %v1416_v30 = vadd.f32 1e-05, %v1414_v29 }
 0xa3f   :  { %5415 = vrsqrt.f32 %v1416_v30 }
 0xa47   :  { %v5414_v31 = vpop.eup %5413 }
 0xa48   :  { %v1419_v35 = vmul.f32 %v5414_v31, %v1405_v8 }
 0xa49   :  { %v5416_v37 = vpop.eup %5415 }
 0xa4a   :  { %v1420_v39 = vmul.f32 %v5416_v37, %v1406_v10  ;;  %v1427_v44 = vmul.f32 %v4131_v45, %v1419_v35 }
 0xa4c   :  { %v1428_v46 = vmul.f32 %v4131_v45, %v1420_v39  ;;  %v6005_v47 = vadd.f32 %v4132_v43, %v1427_v44 }
 0xa4e   :  { %v6007_v49 = vadd.f32 %v4132_v43, %v1428_v46 }
 0xa50   :  { %v1437_v50 = vpack.c.bf16 %v6007_v49, %v6005_v47 }
 0xa52   :  { %1579 = vmatmul.mubr.bf16.vlgmr.msra.gmra.mrb[16].mxu0 %v1437_v50 }
 0xa53   :  { %4937 = vmatprep.mubr.msk.bf16.mxu0 %vm5492_vm0, %v5491_v4 }
 0xb25   :  { %v1580_v5 = vpop.f32.mrb[16].mxu0 }
 0xb26   :  { %v1581_v41 = vadd.f32 %v1580_v5, %v1459_v33  ;;  %v1582_v42 = vpop.f32.mrb[17].mxu0  ;;  %v5273_v5 = vld [vmem:[%s6700_s3 + $0x180] sm:$0xff]  }
 0xb27   :  { %v1583_v6 = vadd.f32 %v1582_v42, %v1463_v3  ;;  %v1584_v7 = vpop.f32.mrb[18].mxu0  ;;  %4922 = vmatpush3.bf16.msra.mxu0 %v5273_v5  ;;  %v5275_v42 = vld [vmem:[%s6700_s3 + $0x188] sm:$0xff]   ;;  %v5307_v5 = vld [vmem:[%s6700_s3 + $0x2d0] sm:$0xff]  }
 0xb28   :  { %v1589_v8 = vmul.f32 %v1581_v41, %v1581_v41  ;;  %v1585_v9 = vadd.f32 %v1584_v7, %v1459_v33  ;;  %v1586_v10 = vpop.f32.mrb[19].mxu0  ;;  %4923 = vmatprep.subr.bf16.mxu0 %v5491_v4 }
 0xb29   :  { %v1590_v11 = vmul.f32 %v1583_v6, %v1583_v6  ;;  %v1587_v12 = vadd.f32 %v1586_v10, %v1463_v3 }
 0xb2a   :  { %v1593_v13 = vmul.f32 %v1589_v8, %v1581_v41  ;;  %v1591_v14 = vmul.f32 %v1585_v9, %v1585_v9 }
 0xb2b   :  { %v1594_v15 = vmul.f32 %v1590_v11, %v1583_v6  ;;  %v1592_v16 = vmul.f32 %v1587_v12, %v1587_v12  ;;  %4924 = vmatpush3.bf16.msra.mxu0 %v5275_v42  ;;  %v5309_v42 = vld [vmem:[%s6700_s3 + $0x2e0] sm:$0xff]  }
 0xb2c   :  { %v1597_v48 = vmul.f32 0.044715, %v1593_v13  ;;  %v1595_v17 = vmul.f32 %v1591_v14, %v1585_v9  ;;  %4925 = vmatprep.subr.bf16.mxu0 %v5491_v4  ;;  %v5277_v13 = vld [vmem:[%s6700_s3 + $0x190] sm:$0xff]  }
 0xb2d   :  { %v1598_v18 = vmul.f32 0.044715, %v1594_v15  ;;  %v1596_v19 = vmul.f32 %v1592_v16, %v1587_v12  ;;  %v5278_v14 = vld [vmem:[%s6700_s3 + $0x210] sm:$0xff]   ;;  %v5279_v15 = vld [vmem:[%s6700_s3 + $0x198] sm:$0xff]  }
 0xb2e   :  { %v1601_v20 = vadd.f32 %v1597_v48, %v1581_v41  ;;  %v1599_v56 = vmul.f32 0.044715, %v1595_v17  ;;  %v5280_v16 = vld [vmem:[%s6700_s3 + $0x218] sm:$0xff]   ;;  %v5281_v48 = vld [vmem:[%s6700_s3 + $0x1a0] sm:$0xff]  }
 0xb2f   :  { %v1602_v21 = vadd.f32 %v1598_v18, %v1583_v6  ;;  %v1600_v22 = vmul.f32 0.044715, %v1596_v19  ;;  %4926 = vmatpush3.bf16.msra.mxu0 %v5277_v13  ;;  %v5282_v17 = vld [vmem:[%s6700_s3 + $0x220] sm:$0xff]   ;;  %v5283_v18 = vld [vmem:[%s6700_s3 + $0x1a8] sm:$0xff]  }
 0xb30   :  { %v1605_v24 = vmul.f32 0.7978846, %v1601_v20  ;;  %v1603_v25 = vadd.f32 %v1599_v56, %v1585_v9  ;;  %4927 = vmatprep.subr.bf16.mxu0 %v5491_v4  ;;  %v5284_v19 = vld [vmem:[%s6700_s3 + $0x228] sm:$0xff]   ;;  %v5285_v20 = vld [vmem:[%s6700_s3 + $0x1b0] sm:$0xff]  }
 0xb31   :  { %v1606_v26 = vmul.f32 0.7978846, %v1602_v21  ;;  %v1604_v27 = vadd.f32 %v1600_v22, %v1587_v12  ;;  %v5286_v56 = vld [vmem:[%s6700_s3 + $0x230] sm:$0xff]   ;;  %v5287_v21 = vld [vmem:[%s6700_s3 + $0x1b8] sm:$0xff]  }
 0xb32   :  { %5417 = vtanh.f32 %v1605_v24  ;;  %v1607_v29 = vmul.f32 0.7978846, %v1603_v25  ;;  %v5288_v22 = vld [vmem:[%s6700_s3 + $0x238] sm:$0xff]  }
 0xb33   :  { %5419 = vtanh.f32 %v1606_v26  ;;  %v1608_v30 = vmul.f32 0.7978846, %v1604_v27  ;;  %4928 = vmatpush3.bf16.msra.mxu0 %v5279_v15 }
 0xb34   :  { %5421 = vtanh.f32 %v1607_v29  ;;  %4929 = vmatprep.subr.bf16.mxu0 %v5491_v4 }
 0xb35   :  { %5423 = vtanh.f32 %v1608_v30 }
 0xb37   :  { %4930 = vmatpush3.bf16.msra.mxu0 %v5281_v48 }
 0xb38   :  { %4931 = vmatprep.subr.bf16.mxu0 %v5491_v4 }
 0xb3b   :  { %4932 = vmatpush3.bf16.msra.mxu0 %v5283_v18 }
 0xb3c   :  { %v5418_v31 = vpop.eup %5417  ;;  %4933 = vmatprep.subr.bf16.mxu0 %v5491_v4 }
 0xb3d   :  { %v5420_v45 = vpop.eup %5419  ;;  %v1613_v35 = vadd.f32 1.0, %v5418_v31 }
 0xb3e   :  { %v5422_v37 = vpop.eup %5421  ;;  %v1614_v39 = vadd.f32 1.0, %v5420_v45  ;;  %v4169_v45 = vld [vmem:[%s6703_s6 + $0x4] ss:$0 sm:$0xff] }
 0xb3f   :  { %v5424_v44 = vpop.eup %5423  ;;  %v1617_v43 = vmul.f32 0.5, %v1613_v35  ;;  %v1615_v46 = vadd.f32 1.0, %v5422_v37  ;;  %4934 = vmatpush3.bf16.msra.mxu0 %v5285_v20 }
 0xb40   :  { %v1616_v50 = vadd.f32 1.0, %v5424_v44  ;;  %v1618_v51 = vmul.f32 0.5, %v1614_v39  ;;  %4935 = vmatprep.subr.bf16.mxu0 %v5491_v4 }
 0xb41   :  { %v1619_v52 = vmul.f32 0.5, %v1615_v46  ;;  %v1621_v54 = vmul.f32 %v1617_v43, %v1581_v41  ;;  %v5274_v41 = vld [vmem:[%s6700_s3 + $0x200] sm:$0xff]  }
 0xb42   :  { %v1620_v53 = vmul.f32 0.5, %v1616_v50  ;;  %v1622_v57 = vmul.f32 %v1618_v51, %v1583_v6  ;;  %v4170_v43 = vld [vmem:[%s6703_s6 + $0x5] ss:$0 sm:$0xff] }
 0xb43   :  { %v1623_v55 = vmul.f32 %v1619_v52, %v1585_v9  ;;  %4936 = vmatpush3.bf16.msra.mxu0 %v5287_v21  ;;  %v5289_v52 = vld [vmem:[%s6700_s3 + $0x280] sm:$0xff]  }
 0xb44   :  { %v1624_v58 = vmul.f32 %v1620_v53, %v1587_v12  ;;  %4961 = vmatprep.subr.bf16.mxu0 %v5491_v4 }
 0xb45   :  { %v1625_v59 = vpack.c.bf16 %v1623_v55, %v1621_v54  ;;  %v5290_v54 = vld [vmem:[%s6700_s3 + $0x288] sm:$0xff]   ;;  %v5291_v55 = vld [vmem:[%s6700_s3 + $0x290] sm:$0xff]  }
 0xb46   :  { %v1626_v60 = vpack.c.bf16 %v1624_v58, %v1622_v57  ;;  %v5292_v57 = vld [vmem:[%s6700_s3 + $0x298] sm:$0xff]   ;;  %v5293_v58 = vld [vmem:[%s6700_s3 + $0x2a0] sm:$0xff]  }
 0xb48   :  { %1795 = vmatprep.mubr.bf16.mxu1 %v1626_v60  ;;  %v5295_v60 = vld [vmem:[%s6700_s3 + $0x2b0] sm:$0xff]  }
 0xb49   :  { %1796 = vmatmul.mubr.bf16.vlgmr.msra.gmra.mrb[48].mxu1 %v1625_v59  ;;  %v5294_v59 = vld [vmem:[%s6700_s3 + $0x2a8] sm:$0xff]  }
 0xb4a   :  { %4957 = vmatprep.mubr.msk.bf16.mxu1 %vm5492_vm0, %v5491_v4  ;;  %4942 = vmatpush3.bf16.msra.mxu1 %v5274_v41  ;;  %v5308_v41 = vld [vmem:[%s6700_s3 + $0x2d8] sm:$0xff]  }
 0xb4b   :  { %4943 = vmatprep.subr.bf16.mxu1 %v5491_v4 }
 0xc1c   :  { %v4594_v61 = vpop.f32.mrb[48].mxu1 }
 0xc1d   :  { %v4595_v62 = vpop.f32.mrb[49].mxu1 }
 0xc1e   :  { %v4596_v63 = vadd.f32 %v4595_v62, %v4594_v61  ;;  %v4597_v38 = vpop.f32.mrb[50].mxu1  ;;  %v5296_v61 = vld [vmem:[%s6700_s3 + $0x2b8] sm:$0xff]   ;;  %v5298_v62 = vld [vmem:[%s6700_s3 + $0x1c8] sm:$0xff]  }
 0xc1f   :  { %v4598_v40 = vpop.f32.mrb[51].mxu1 }
 0xc20   :  { %v1798_v0 = vadd.f32 %v4596_v63, %v4150_v34  ;;  %v4599_v1 = vadd.f32 %v4598_v40, %v4597_v38  ;;  %v5299_v63 = vld [vmem:[%s6700_s3 + $0x1d0] sm:$0xff]   ;;  %v5300_v38 = vld [vmem:[%s6700_s3 + $0x1d8] sm:$0xff]   ;;  %v5301_v40 = vld [vmem:[%s6700_s3 + $0x1e0] sm:$0xff]  }
 0xc22   :  { %v1801_v28 = vadd.f32 %v4599_v1, %v4150_v34  ;;  %v1804_v33 = vadd.f32 %v1798_v0, %v6005_v47  ;;  %v5276_v47 = vld [vmem:[%s6700_s3 + $0x208] sm:$0xff]   ;;  %v5297_v34 = vld [vmem:[%s6700_s3 + $0x1c0] sm:$0xff]   ;;  %v5303_v1 = vld [vmem:[%s6700_s3 + $0x1f0] sm:$0xff]  }
 0xc23   :  { %4944 = vmatpush3.bf16.msra.mxu1 %v5276_v47  ;;  %v5302_v0 = vld [vmem:[%s6700_s3 + $0x1e8] sm:$0xff]  }
 0xc24   :  { %1810 = vadd.xlane.f32.xlu0 %v1804_v33  ;;  %v1805_v3 = vadd.f32 %v1801_v28, %v6007_v49  ;;  %4945 = vmatprep.subr.bf16.mxu1 %v5491_v4  ;;  %v5304_v28 = vld [vmem:[%s6700_s3 + $0x1f8] sm:$0xff]   ;;  %v5310_v47 = vld [vmem:[%s6700_s3 + $0x2e8] sm:$0xff]  }
 0xc26   :  { %1812 = vadd.xlane.f32.xlu1 %v1805_v3 }
 0xc27   :  { %4946 = vmatpush3.bf16.msra.mxu1 %v5278_v14 }
 0xc28   :  { %4947 = vmatprep.subr.bf16.mxu1 %v5491_v4 }
 0xc2b   :  { %4948 = vmatpush3.bf16.msra.mxu1 %v5280_v16 }
 0xc2c   :  { %4949 = vmatprep.subr.bf16.mxu1 %v5491_v4 }
 0xc2f   :  { %4950 = vmatpush3.bf16.msra.mxu1 %v5282_v17  ;;  %v4188_v17 = vld [vmem:[%s6701_s4 + $0x6] ss:$0 sm:$0xff] }
 0xc30   :  { %4951 = vmatprep.subr.bf16.mxu1 %v5491_v4 }
 0xc33   :  { %4952 = vmatpush3.bf16.msra.mxu1 %v5284_v19 }
 0xc34   :  { %4953 = vmatprep.subr.bf16.mxu1 %v5491_v4 }
 0xc37   :  { %4954 = vmatpush3.bf16.msra.mxu1 %v5286_v56 }
 0xc38   :  { %4955 = vmatprep.subr.bf16.mxu1 %v5491_v4 }
 0xc3b   :  { %4956 = vmatpush3.bf16.msra.mxu1 %v5288_v22 }
 0xc3c   :  { %4981 = vmatprep.subr.bf16.mxu1 %v5491_v4 }
 0xcb1   :  { %v1811_v49 = vpop.xlane.xlu0 %1810 }
 0xcb2   :  { %v1814_v6 = vmul.f32 0.0078125, %v1811_v49  ;;  %v5311_v49 = vld [vmem:[%s6700_s3 + $0x2f0] sm:$0xff]  }
 0xcb3   :  { %v1813_v7 = vpop.xlane.xlu1 %1812 }
 0xcb4   :  { %v1816_v8 = vsub.f32 %v1804_v33, %v1814_v6  ;;  %v1815_v9 = vmul.f32 0.0078125, %v1813_v7  ;;  %v5305_v33 = vld [vmem:[%s6700_s3 + $0x2c0] sm:$0xff]   ;;  %v5312_v6 = vld [vmem:[%s6700_s3 + $0x2f8] sm:$0xff]   ;;  %v4214_v7 = vld [vmem:[%s6701_s4 + $0x8] ss:$0 sm:$0xff] }
 0xcb6   :  { %v1817_v10 = vsub.f32 %v1805_v3, %v1815_v9  ;;  %v1818_v11 = vmul.f32 %v1816_v8, %v1816_v8  ;;  %v5306_v3 = vld [vmem:[%s6700_s3 + $0x2c8] sm:$0xff]  }
 0xcb8   :  { %1820 = vadd.xlane.f32.xlu0 %v1818_v11  ;;  %v1819_v12 = vmul.f32 %v1817_v10, %v1817_v10 }
 0xcba   :  { %1822 = vadd.xlane.f32.xlu1 %v1819_v12 }
 0xd45   :  { %v1821_v24 = vpop.xlane.xlu0 %1820 }
 0xd46   :  { %v1824_v25 = vmul.f32 0.0078125, %v1821_v24 }
 0xd47   :  { %v1823_v26 = vpop.xlane.xlu1 %1822 }
 0xd48   :  { %v1826_v27 = vadd.f32 1e-05, %v1824_v25  ;;  %v1825_v29 = vmul.f32 0.0078125, %v1823_v26  ;;  %v4240_v26 = vld [vmem:[%s6701_s4 + $0xa] ss:$0 sm:$0xff] }
 0xd4a   :  { %5425 = vrsqrt.f32 %v1826_v27  ;;  %v1827_v30 = vadd.f32 1e-05, %v1825_v29 }
 0xd4c   :  { %5427 = vrsqrt.f32 %v1827_v30 }
 0xd54   :  { %v5426_v31 = vpop.eup %5425 }
 0xd55   :  { %v1830_v35 = vmul.f32 %v5426_v31, %v1816_v8 }
 0xd56   :  { %v5428_v37 = vpop.eup %5427 }
 0xd57   :  { %v1838_v39 = vmul.f32 %v4169_v45, %v1830_v35  ;;  %v1831_v44 = vmul.f32 %v5428_v37, %v1817_v10 }
 0xd59   :  { %v1839_v46 = vmul.f32 %v4169_v45, %v1831_v44  ;;  %v6150_v50 = vadd.f32 %v4170_v43, %v1838_v39 }
 0xd5b   :  { %v6152_v51 = vadd.f32 %v4170_v43, %v1839_v46 }
 0xd5d   :  { %v6159_v53 = vpack.c.bf16 %v6152_v51, %v6150_v50 }
 0xd5f   :  { %4938 = vmatmul.mubr.bf16.vlgmr.msra.gmra.mrb[20].mxu0 %v6159_v53  ;;  %4958 = vmatmul.mubr.bf16.vlgmr.msra.gmra.mrb[52].mxu1 %v6159_v53 }
 0xd60   :  { %4962 = vmatpush3.bf16.msra.mxu0 %v5289_v52  ;;  %4977 = vmatprep.mubr.msk.bf16.mxu0 %vm5492_vm0, %v5491_v4 }
 0xd61   :  { %4963 = vmatprep.subr.bf16.mxu0 %v5491_v4  ;;  %4983 = vmatprep.mubr.msk.bf16.mxu1 %vm5492_vm0, %v5491_v4 }
 0xd64   :  { %4964 = vmatpush3.bf16.msra.mxu0 %v5290_v54 }
 0xd65   :  { %4965 = vmatprep.subr.bf16.mxu0 %v5491_v4 }
 0xd68   :  { %4966 = vmatpush3.bf16.msra.mxu0 %v5291_v55 }
 0xd69   :  { %4967 = vmatprep.subr.bf16.mxu0 %v5491_v4 }
 0xd6c   :  { %4968 = vmatpush3.bf16.msra.mxu0 %v5292_v57  ;;  %v6299_v57 = vld [vmem:[%s6701_s4 + $0xb] ss:$0 sm:$0xff] }
 0xd6d   :  { %4969 = vmatprep.subr.bf16.mxu0 %v5491_v4 }
 0xd70   :  { %4970 = vmatpush3.bf16.msra.mxu0 %v5293_v58 }
 0xd71   :  { %4971 = vmatprep.subr.bf16.mxu0 %v5491_v4 }
 0xd74   :  { %4972 = vmatpush3.bf16.msra.mxu0 %v5294_v59 }
 0xd75   :  { %4973 = vmatprep.subr.bf16.mxu0 %v5491_v4 }
 0xd78   :  { %4974 = vmatpush3.bf16.msra.mxu0 %v5295_v60 }
 0xd79   :  { %4975 = vmatprep.subr.bf16.mxu0 %v5491_v4 }
 0xd7c   :  { %4976 = vmatpush3.bf16.msra.mxu0 %v5296_v61 }
 0xd7d   :  { %5005 = vmatprep.subr.bf16.mxu0 %v5491_v4 }
 0xd7f   :  { %4978 = vmatmul.mubr.bf16.vlgmr.msra.gmra.mrb[24].mxu0 %v6159_v53 }
 0xd80   :  { %5006 = vmatpush3.bf16.msra.mxu0 %v5297_v34  ;;  %5021 = vmatprep.mubr.msk.bf16.mxu0 %vm5492_vm0, %v5491_v4 }
 0xd81   :  { %5007 = vmatprep.subr.bf16.mxu0 %v5491_v4 }
 0xd84   :  { %5008 = vmatpush3.bf16.msra.mxu0 %v5298_v62 }
 0xd85   :  { %5009 = vmatprep.subr.bf16.mxu0 %v5491_v4 }
 0xd88   :  { %5010 = vmatpush3.bf16.msra.mxu0 %v5299_v63 }
 0xd89   :  { %5011 = vmatprep.subr.bf16.mxu0 %v5491_v4 }
 0xd8c   :  { %5012 = vmatpush3.bf16.msra.mxu0 %v5300_v38 }
 0xd8d   :  { %5013 = vmatprep.subr.bf16.mxu0 %v5491_v4 }
 0xd90   :  { %5014 = vmatpush3.bf16.msra.mxu0 %v5301_v40  ;;  %v6307_v40 = vld [vmem:[%s6698_s1] ss:$0 sm:$0xff] }
 0xd91   :  { %5015 = vmatprep.subr.bf16.mxu0 %v5491_v4 }
 0xd94   :  { %5016 = vmatpush3.bf16.msra.mxu0 %v5302_v0 }
 0xd95   :  { %5017 = vmatprep.subr.bf16.mxu0 %v5491_v4 }
 0xd98   :  { %5018 = vmatpush3.bf16.msra.mxu0 %v5303_v1 }
 0xd99   :  { %5019 = vmatprep.subr.bf16.mxu0 %v5491_v4 }
 0xd9c   :  { %5020 = vmatpush3.bf16.msra.mxu0 %v5304_v28 }
 0xd9d   :  { %5045 = vmatprep.subr.bf16.mxu0 %v5491_v4 }
 0xd9f   :  { %5022 = vmatmul.mubr.bf16.vlgmr.msra.gmra.mrb[28].mxu0 %v6159_v53 }
 0xda0   :  { %5046 = vmatpush3.bf16.msra.mxu0 %v5305_v33  ;;  %5061 = vmatprep.mubr.msk.bf16.mxu0 %vm5492_vm0, %v5491_v4 }
 0xda1   :  { %5047 = vmatprep.subr.bf16.mxu0 %v5491_v4 }
 0xda4   :  { %5048 = vmatpush3.bf16.msra.mxu0 %v5306_v3 }
 0xda5   :  { %5049 = vmatprep.subr.bf16.mxu0 %v5491_v4 }
 0xda8   :  { %5050 = vmatpush3.bf16.msra.mxu0 %v5307_v5 }
 0xda9   :  { %5051 = vmatprep.subr.bf16.mxu0 %v5491_v4 }
 0xdac   :  { %5052 = vmatpush3.bf16.msra.mxu0 %v5308_v41 }
 0xdad   :  { %5053 = vmatprep.subr.bf16.mxu0 %v5491_v4 }
 0xdb0   :  { %5054 = vmatpush3.bf16.msra.mxu0 %v5309_v42  ;;  %v6314_v42 = vld [vmem:[%s6698_s1 + $0x1] ss:$0 sm:$0xff] }
 0xdb1   :  { %5055 = vmatprep.subr.bf16.mxu0 %v5491_v4 }
 0xdb4   :  { %5056 = vmatpush3.bf16.msra.mxu0 %v5310_v47 }
 0xdb5   :  { %5057 = vmatprep.subr.bf16.mxu0 %v5491_v4 }
 0xdb8   :  { %5058 = vmatpush3.bf16.msra.mxu0 %v5311_v49 }
 0xdb9   :  { %5059 = vmatprep.subr.bf16.mxu0 %v5491_v4 }
 0xdbc   :  { %5060 = vmatpush3.bf16.msra.mxu0 %v5312_v6 }
 0xdbd   :  { %5089 = vmatprep.subr.bf16.mxu0 %v5491_v4 }
 0xdbf   :  { %5062 = vmatmul.mubr.bf16.vlgmr.msra.gmra.mrb[32].mxu0 %v6159_v53 }
 0xdc0   :  { %5097 = vmatprep.mubr.msk.bf16.mxu0 %vm5492_vm0, %v5491_v4 }
 0xe32   :  { %v1956_v8 = vpop.f32.mrb[20].mxu0  ;;  %v2070_v9 = vpop.f32.mrb[52].mxu1 }
 0xe33   :  { %v2071_v10 = vadd.f32 %v4214_v7, %v2070_v9  ;;  %v4939_v11 = vpop.f32.mrb[21].mxu0  ;;  %v4959_v12 = vpop.f32.mrb[53].mxu1  ;;  %v1957_v20 = vadd.f32 %v4188_v17, %v1956_v8 }
 0xe34   :  { %v1959_v13 = vpop.f32.mrb[22].mxu0  ;;  %v2073_v14 = vpop.f32.mrb[54].mxu1 }
 0xe35   :  { %v2193_v15 = vpack.c.bf16 %v2071_v10, %v2071_v10  ;;  %v4940_v16 = vpop.f32.mrb[23].mxu0  ;;  %v4960_v48 = vpop.f32.mrb[55].mxu1  ;;  %v2074_v19 = vadd.f32 %v4214_v7, %v2073_v14  ;;  %v2191_v21 = vpack.c.bf16 %v1957_v20, %v1957_v20  ;;  %v1960_v24 = vadd.f32 %v4188_v17, %v1959_v13 }
 0xe37   :  { %v2201_v18 = vsel %vm442_vm1, %v2193_v15, 0  ;;  %v2194_v56 = vpack.c.bf16 %v2074_v19, %v2074_v19  ;;  %v2192_v25 = vpack.c.bf16 %v1960_v24, %v1960_v24  ;;  %v5313_v24 = vld [vmem:[%s6700_s3 + $0x240] sm:$0xff]  }
 0xe38   :  { %4982 = vmatpush3.bf16.xpose.msra.mxu1 %v2201_v18 }
 0xe39   :  { %4987 = vmatprep.subr.bf16.mxu1 %v5491_v4  ;;  %v2247_v22 = vsel %vm442_vm1, %v2194_v56, 0 }
 0xe3f   :  { %4984 = vmatmul.mubr.msk.bf16.vlgmr.msra.gmra.mrb[56].mxu1 %vm442_vm1, %v2191_v21 }
 0xe40   :  { %4988 = vmatpush3.bf16.xpose.msra.mxu1 %v2247_v22  ;;  %4989 = vmatprep.mubr.msk.bf16.mxu1 %vm5492_vm0, %v5491_v4 }
 0xe41   :  { %4993 = vmatprep.subr.bf16.mxu1 %v5491_v4 }
 0xe47   :  { %4990 = vmatmul.mubr.msk.bf16.vlgmr.msra.gmra.mrb[60].mxu1 %vm442_vm1, %v2192_v25 }
 0xe48   :  { %4995 = vmatprep.mubr.msk.bf16.mxu1 %vm5492_vm0, %v5491_v4 }
 0xe52   :  { %v2184_v27 = vpop.f32.mrb[24].mxu0 }
 0xe53   :  { %v2185_v29 = vadd.f32 %v4240_v26, %v2184_v27  ;;  %v4979_v30 = vpop.f32.mrb[25].mxu0  ;;  %v5315_v27 = vld [vmem:[%s6700_s3 + $0x250] sm:$0xff]  }
 0xe54   :  { %v2187_v31 = vpop.f32.mrb[26].mxu0  ;;  %v5317_v30 = vld [vmem:[%s6700_s3 + $0x260] sm:$0xff]  }
 0xe55   :  { %v2195_v45 = vpack.c.bf16 %v2185_v29, %v2185_v29  ;;  %v2188_v35 = vadd.f32 %v4240_v26, %v2187_v31  ;;  %v4980_v37 = vpop.f32.mrb[27].mxu0  ;;  %v5314_v26 = vld [vmem:[%s6700_s3 + $0x248] sm:$0xff]   ;;  %v5316_v29 = vld [vmem:[%s6700_s3 + $0x258] sm:$0xff]  }
 0xe56   :  { %v5318_v31 = vld [vmem:[%s6700_s3 + $0x268] sm:$0xff]  }
 0xe57   :  { %v2321_v39 = vsel %vm579_vm2, %v2195_v45, 0  ;;  %v2196_v18 = vpack.c.bf16 %v2188_v35, %v2188_v35  ;;  %v5319_v45 = vld [vmem:[%s6700_s3 + $0x270] sm:$0xff]   ;;  %v5320_v35 = vld [vmem:[%s6700_s3 + $0x278] sm:$0xff]  }
 0xe58   :  { %4994 = vmatpush3.bf16.msra.mxu1 %v2321_v39 }
 0xe59   :  { %4999 = vmatprep.subr.bf16.mxu1 %v5491_v4  ;;  %v2367_v56 = vsel %vm579_vm2, %v2196_v18, 0 }
 0xe72   :  { %v6290_v44 = vpop.f32.mrb[28].mxu0 }
 0xe73   :  { %v5023_v43 = vpop.f32.mrb[29].mxu0 }
 0xe74   :  { %v6292_v46 = vpop.f32.mrb[30].mxu0 }
 0xe75   :  { %v5024_v52 = vpop.f32.mrb[31].mxu0 }
 0xe92   :  { %v6294_v54 = vpop.f32.mrb[32].mxu0 }
 0xe93   :  { %v5063_v55 = vpop.f32.mrb[33].mxu0 }
 0xe94   :  { %v2757_v58 = vpop.f32.mrb[34].mxu0 }
 0xe95   :  { %v6302_v59 = vadd.f32 %v6299_v57, %v2757_v58  ;;  %v5064_v60 = vpop.f32.mrb[35].mxu0 }
 0xf12   :  { %v2237_v61 = vpop.f32.mrb[56].mxu1 }
 0xf13   :  { %v2289_v34 = vmul.f32 0.125, %v2237_v61  ;;  %v4985_v62 = vpop.f32.mrb[57].mxu1 }
 0xf14   :  { %v2240_v63 = vpop.f32.mrb[58].mxu1 }
 0xf15   :  { %v4986_v38 = vpop.f32.mrb[59].mxu1  ;;  %v2291_v0 = vadd.f32 %v6307_v40, %v2289_v34 }
 0xf17   :  { %v2293_v1 = vsel %vm551_vm3, %v2291_v0, -inf }
 0xf18   :  { %2294 = vmax.xlane.f32.xlu0 %v2293_v1 }
 0xf1a   :  { %v2283_v28 = vpop.f32.mrb[60].mxu1 }
 0xf1b   :  { %v2290_v33 = vmul.f32 0.125, %v2283_v28  ;;  %v4991_v3 = vpop.f32.mrb[61].mxu1 }
 0xf1c   :  { %v2286_v5 = vpop.f32.mrb[62].mxu1 }
 0xf1d   :  { %v4992_v41 = vpop.f32.mrb[63].mxu1  ;;  %v2292_v47 = vadd.f32 %v6314_v42, %v2290_v33  ;;  %v4278_v33 = vld [vmem:[%s6701_s4 + $0x7] ss:$0 sm:$0xff] }
 0xf1e   :  { %v2527_v41 = vadd.f32 %v4278_v33, %v6290_v44 }
 0xf1f   :  { %v2296_v49 = vsel %vm551_vm3, %v2292_v47, -inf }
 0xf20   :  { %2297 = vmax.xlane.f32.xlu1 %v2296_v49  ;;  %v2761_v49 = vpack.c.bf16 %v2527_v41, %v2527_v41 }
 0xfa5   :  { %v2295_v6 = vpop.xlane.xlu0 %2294 }
 0xfa6   :  { %v2299_v7 = vsub.f32 %v2291_v0, %v2295_v6  ;;  %v2755_v6 = vadd.f32 %v6299_v57, %v6294_v54 }
 0xfa8   :  { %v2301_v8 = vmul.f32 1.442695, %v2299_v7  ;;  %v2765_v44 = vpack.c.bf16 %v2755_v6, %v2755_v6 }
 0xfaa   :  { %5429 = vpow2.f32 %v2301_v8  ;;  %v2530_v8 = vadd.f32 %v4278_v33, %v6292_v46 }
 0xfad   :  { %v2298_v9 = vpop.xlane.xlu1 %2297 }
 0xfae   :  { %v2300_v10 = vsub.f32 %v2292_v47, %v2298_v9  ;;  %v2762_v9 = vpack.c.bf16 %v2530_v8, %v2530_v8 }
 0xfb0   :  { %v2303_v11 = vmul.f32 1.442695, %v2300_v10  ;;  %v2891_v10 = vsel %vm579_vm2, %v2765_v44, 0 }
 0xfb2   :  { %5431 = vpow2.f32 %v2303_v11 }
 0xfb4   :  { %v5430_v12 = vpop.eup %5429 }
 0xfb5   :  { %v2305_v13 = vsel %vm551_vm3, %v5430_v12, 0.0 }
 0xfb6   :  { %2306 = vadd.xlane.f32.xlu0 %v2305_v13 }
 0xfbc   :  { %v5432_v14 = vpop.eup %5431 }
 0xfbd   :  { %v2308_v15 = vsel %vm551_vm3, %v5432_v14, 0.0 }
 0xfbe   :  { %2309 = vadd.xlane.f32.xlu1 %v2308_v15 }
0x1043   :  { %v2307_v16 = vpop.xlane.xlu0 %2306 }
0x1044   :  { %5433 = vrcp.f32 %v2307_v16 }
0x104b   :  { %v2310_v48 = vpop.xlane.xlu1 %2309 }
0x104c   :  { %5435 = vrcp.f32 %v2310_v48 }
0x104e   :  { %v5434_v17 = vpop.eup %5433 }
0x104f   :  { %v2313_v19 = vmul.f32 %v5434_v17, %v5430_v12 }
0x1051   :  { %v2315_v20 = vpack.c.bf16 %v2313_v19, %v2313_v19 }
0x1053   :  { %4996 = vmatmul.mubr.msk.bf16.vlgmr.msra.gmra.mrb[64].mxu1 %vm551_vm3, %v2315_v20 }
0x1054   :  { %5000 = vmatpush3.bf16.msra.mxu1 %v2367_v56  ;;  %5001 = vmatprep.mubr.msk.bf16.mxu1 %vm5492_vm0, %v5491_v4 }
0x1055   :  { %5025 = vmatprep.subr.bf16.mxu1 %v5491_v4 }
0x1056   :  { %v5436_v21 = vpop.eup %5435 }
0x1057   :  { %v2314_v22 = vmul.f32 %v5436_v21, %v5432_v14 }
0x1059   :  { %v2316_v25 = vpack.c.bf16 %v2314_v22, %v2314_v22 }
0x105b   :  { %5002 = vmatmul.mubr.msk.bf16.vlgmr.msra.gmra.mrb[68].mxu1 %vm551_vm3, %v2316_v25 }
0x105c   :  { %5026 = vmatpush3.bf16.msra.mxu1 %v5313_v24  ;;  %5041 = vmatprep.mubr.msk.bf16.mxu1 %vm5492_vm0, %v5491_v4 }
0x105d   :  { %5027 = vmatprep.subr.bf16.mxu1 %v5491_v4 }
0x1060   :  { %5028 = vmatpush3.bf16.msra.mxu1 %v5314_v26 }
0x1061   :  { %5029 = vmatprep.subr.bf16.mxu1 %v5491_v4 }
0x1064   :  { %5030 = vmatpush3.bf16.msra.mxu1 %v5315_v27 }
0x1065   :  { %5031 = vmatprep.subr.bf16.mxu1 %v5491_v4 }
0x1068   :  { %5032 = vmatpush3.bf16.msra.mxu1 %v5316_v29 }
0x1069   :  { %5033 = vmatprep.subr.bf16.mxu1 %v5491_v4 }
0x106c   :  { %5034 = vmatpush3.bf16.msra.mxu1 %v5317_v30 }
0x106d   :  { %5035 = vmatprep.subr.bf16.mxu1 %v5491_v4 }
0x1070   :  { %5036 = vmatpush3.bf16.msra.mxu1 %v5318_v31 }
0x1071   :  { %5037 = vmatprep.subr.bf16.mxu1 %v5491_v4 }
0x1074   :  { %5038 = vmatpush3.bf16.msra.mxu1 %v5319_v45 }
0x1075   :  { %5039 = vmatprep.subr.bf16.mxu1 %v5491_v4 }
0x1078   :  { %5040 = vmatpush3.bf16.msra.mxu1 %v5320_v35 }
0x1079   :  { %5065 = vmatprep.subr.bf16.mxu1 %v5491_v4 }
0x107b   :  { %5042 = vmatmul.mubr.bf16.vlgmr.msra.gmra.mrb[72].mxu1 %v6159_v53  ;;  %v4304_v53 = vld [vmem:[%s6701_s4 + $0x9] ss:$0 sm:$0xff] }
0x107c   :  { %5067 = vmatprep.mubr.msk.bf16.mxu1 %vm5492_vm0, %v5491_v4 }
0x1126   :  { %v6363_v37 = vpop.f32.mrb[64].mxu1 }
0x1127   :  { %v4997_v39 = vpop.f32.mrb[65].mxu1 }
0x1128   :  { %v2360_v43 = vpop.f32.mrb[66].mxu1  ;;  %v2766_v39 = vpack.c.bf16 %v6302_v59, %v6302_v59  ;;  %v5322_v59 = vld [vmem:[%s6702_s5 + $0x48] sm:$0xff]  }
0x1129   :  { %v4998_v52 = vpop.f32.mrb[67].mxu1 }
0x112e   :  { %v6365_v55 = vpop.f32.mrb[68].mxu1 }
0x112f   :  { %v2409_v58 = vpack.c.bf16 %v6365_v55, %v6363_v37  ;;  %v5003_v60 = vpop.f32.mrb[69].mxu1  ;;  %v5328_v37 = vld [vmem:[%s6702_s5 + $0x78] sm:$0xff]  }
0x1130   :  { %v2406_v61 = vpop.f32.mrb[70].mxu1  ;;  %v2937_v60 = vsel %vm579_vm2, %v2766_v39, 0  ;;  %v5352_v39 = vld [vmem:[%s6704_s7 + $0xf4] ss:$8 sps:$4 sm:$0xff]  }
0x1131   :  { %v5004_v34 = vpop.f32.mrb[71].mxu1 }
0x114e   :  { %v2640_v62 = vpop.f32.mrb[72].mxu1 }
0x114f   :  { %v2641_v63 = vadd.f32 %v4304_v53, %v2640_v62  ;;  %v5043_v38 = vpop.f32.mrb[73].mxu1 }
0x1150   :  { %v2643_v0 = vpop.f32.mrb[74].mxu1  ;;  %v5324_v38 = vld [vmem:[%s6702_s5 + $0x58] sm:$0xff]  }
0x1151   :  { %v2763_v1 = vpack.c.bf16 %v2641_v63, %v2641_v63  ;;  %v5044_v28 = vpop.f32.mrb[75].mxu1  ;;  %v2644_v5 = vadd.f32 %v4304_v53, %v2643_v0  ;;  %v5321_v53 = vld [vmem:[%s6702_s5 + $0x40] sm:$0xff]   ;;  %v5323_v63 = vld [vmem:[%s6702_s5 + $0x50] sm:$0xff]   ;;  %v5326_v0 = vld [vmem:[%s6702_s5 + $0x68] sm:$0xff]  }
0x1153   :  { %v2771_v3 = vsel %vm442_vm1, %v2763_v1, 0  ;;  %v2764_v47 = vpack.c.bf16 %v2644_v5, %v2644_v5  ;;  %v5327_v1 = vld [vmem:[%s6702_s5 + $0x70] sm:$0xff]  }
0x1154   :  { %5066 = vmatpush3.bf16.xpose.msra.mxu1 %v2771_v3 }
0x1155   :  { %5071 = vmatprep.subr.bf16.mxu1 %v5491_v4  ;;  %v2817_v7 = vsel %vm442_vm1, %v2764_v47, 0 }
0x115b   :  { %5068 = vmatmul.mubr.msk.bf16.vlgmr.msra.gmra.mrb[76].mxu1 %vm442_vm1, %v2761_v49 }
0x115c   :  { %5072 = vmatpush3.bf16.xpose.msra.mxu1 %v2817_v7  ;;  %5073 = vmatprep.mubr.msk.bf16.mxu1 %vm5492_vm0, %v5491_v4 }
0x115d   :  { %5077 = vmatprep.subr.bf16.mxu1 %v5491_v4 }
0x1163   :  { %5074 = vmatmul.mubr.msk.bf16.vlgmr.msra.gmra.mrb[80].mxu1 %vm442_vm1, %v2762_v9 }
0x1164   :  { %5078 = vmatpush3.bf16.msra.mxu1 %v2891_v10  ;;  %5079 = vmatprep.mubr.msk.bf16.mxu1 %vm5492_vm0, %v5491_v4  ;;  %v4362_v10 = vld [vmem:[%s6703_s6 + $0x6] ss:$0 sm:$0xff] }
0x1165   :  { %5083 = vmatprep.subr.bf16.mxu1 %v5491_v4 }
0x122e   :  { %v2807_v54 = vpop.f32.mrb[76].mxu1 }
0x122f   :  { %v2859_v57 = vmul.f32 0.125, %v2807_v54  ;;  %v5069_v11 = vpop.f32.mrb[77].mxu1 }
0x1230   :  { %v2810_v12 = vpop.f32.mrb[78].mxu1 }
0x1231   :  { %v5070_v13 = vpop.f32.mrb[79].mxu1  ;;  %v2861_v46 = vadd.f32 %v6307_v40, %v2859_v57 }
0x1233   :  { %v2863_v14 = vsel %vm551_vm3, %v2861_v46, -inf }
0x1234   :  { %2864 = vmax.xlane.f32.xlu0 %v2863_v14 }
0x1236   :  { %v2853_v15 = vpop.f32.mrb[80].mxu1 }
0x1237   :  { %v2860_v16 = vmul.f32 0.125, %v2853_v15  ;;  %v5075_v48 = vpop.f32.mrb[81].mxu1 }
0x1238   :  { %v2856_v17 = vpop.f32.mrb[82].mxu1  ;;  %v5331_v48 = vld [vmem:[%s6704_s7 + $0x84] ss:$8 sps:$4 sm:$0xff]  }
0x1239   :  { %v5076_v18 = vpop.f32.mrb[83].mxu1  ;;  %v2862_v19 = vadd.f32 %v6314_v42, %v2860_v16  ;;  %v5325_v42 = vld [vmem:[%s6702_s5 + $0x60] sm:$0xff]   ;;  %v5334_v17 = vld [vmem:[%s6704_s7 + $0x94] ss:$8 sps:$4 sm:$0xff]  }
0x123a   :  { %5090 = vmatpush3.bf16.msra.mxu0 %v5325_v42  ;;  %v5329_v16 = vld [vmem:[%s6704_s7 + $0x80] ss:$8 sps:$4 sm:$0xff]   ;;  %v5346_v42 = vld [vmem:[%s6704_s7 + $0xd4] ss:$8 sps:$4 sm:$0xff]  }
0x123b   :  { %v2866_v20 = vsel %vm551_vm3, %v2862_v19, -inf  ;;  %5091 = vmatprep.subr.bf16.mxu0 %v5491_v4 }
0x123c   :  { %2867 = vmax.xlane.f32.xlu1 %v2866_v20 }
0x123e   :  { %5092 = vmatpush3.bf16.msra.mxu0 %v5326_v0 }
0x123f   :  { %5093 = vmatprep.subr.bf16.mxu0 %v5491_v4 }
0x1242   :  { %5094 = vmatpush3.bf16.msra.mxu0 %v5327_v1 }
0x1243   :  { %5095 = vmatprep.subr.bf16.mxu0 %v5491_v4 }
0x1246   :  { %5096 = vmatpush3.bf16.msra.mxu0 %v5328_v37 }
0x1247   :  { %3290 = vmatprep.subr.bf16.mxu0 %v5331_v48 }
0x12c1   :  { %v2865_v56 = vpop.xlane.xlu0 %2864 }
0x12c2   :  { %v2869_v21 = vsub.f32 %v2861_v46, %v2865_v56 }
0x12c4   :  { %v2871_v22 = vmul.f32 1.442695, %v2869_v21 }
0x12c6   :  { %5437 = vpow2.f32 %v2871_v22 }
0x12c9   :  { %v2868_v24 = vpop.xlane.xlu1 %2867 }
0x12ca   :  { %v2870_v25 = vsub.f32 %v2862_v19, %v2868_v24 }
0x12cc   :  { %v2873_v40 = vmul.f32 1.442695, %v2870_v25  ;;  %v5337_v25 = vld [vmem:[%s6704_s7 + $0xa4] ss:$8 sps:$4 sm:$0xff]  }
0x12ce   :  { %5439 = vpow2.f32 %v2873_v40  ;;  %v5335_v40 = vld [vmem:[%s6704_s7 + $0xa0] ss:$8 sps:$4 sm:$0xff]  }
0x12d0   :  { %v5438_v26 = vpop.eup %5437 }
0x12d1   :  { %v2875_v27 = vsel %vm551_vm3, %v5438_v26, 0.0 }
0x12d2   :  { %2876 = vadd.xlane.f32.xlu0 %v2875_v27  ;;  %v5338_v27 = vld [vmem:[%s6704_s7 + $0xb0] ss:$8 sps:$4 sm:$0xff]  }
0x12d8   :  { %v5440_v29 = vpop.eup %5439 }
0x12d9   :  { %v2878_v30 = vsel %vm551_vm3, %v5440_v29, 0.0 }
0x12da   :  { %2879 = vadd.xlane.f32.xlu1 %v2878_v30  ;;  %v5341_v30 = vld [vmem:[%s6704_s7 + $0xc0] ss:$8 sps:$4 sm:$0xff]  }
0x135f   :  { %v2877_v31 = vpop.xlane.xlu0 %2876 }
0x1360   :  { %5441 = vrcp.f32 %v2877_v31  ;;  %v5344_v31 = vld [vmem:[%s6704_s7 + $0xd0] ss:$8 sps:$4 sm:$0xff]  }
0x1367   :  { %v2880_v45 = vpop.xlane.xlu1 %2879 }
0x1368   :  { %5443 = vrcp.f32 %v2880_v45  ;;  %v5349_v45 = vld [vmem:[%s6704_s7 + $0xe4] ss:$8 sps:$4 sm:$0xff]  }
0x136a   :  { %v5442_v35 = vpop.eup %5441 }
0x136b   :  { %v2883_v43 = vmul.f32 %v5442_v35, %v5438_v26  ;;  %v5340_v26 = vld [vmem:[%s6704_s7 + $0xb4] ss:$8 sps:$4 sm:$0xff]   ;;  %v5347_v35 = vld [vmem:[%s6704_s7 + $0xe0] ss:$8 sps:$4 sm:$0xff]  }
0x136d   :  { %v2885_v52 = vpack.c.bf16 %v2883_v43, %v2883_v43  ;;  %v5350_v43 = vld [vmem:[%s6704_s7 + $0xf0] ss:$8 sps:$4 sm:$0xff]  }
0x136f   :  { %5080 = vmatmul.mubr.msk.bf16.vlgmr.msra.gmra.mrb[84].mxu1 %vm551_vm3, %v2885_v52 }
0x1370   :  { %5084 = vmatpush3.bf16.msra.mxu1 %v2937_v60  ;;  %5085 = vmatprep.mubr.msk.bf16.mxu1 %vm5492_vm0, %v5491_v4 }
0x1371   :  { %5101 = vmatprep.subr.bf16.mxu1 %v5491_v4 }
0x1372   :  { %v5444_v61 = vpop.eup %5443 }
0x1373   :  { %v2884_v34 = vmul.f32 %v5444_v61, %v5440_v29  ;;  %v5343_v29 = vld [vmem:[%s6704_s7 + $0xc4] ss:$8 sps:$4 sm:$0xff]  }
0x1375   :  { %v2886_v62 = vpack.c.bf16 %v2884_v34, %v2884_v34 }
0x1377   :  { %5086 = vmatmul.mubr.msk.bf16.vlgmr.msra.gmra.mrb[88].mxu1 %vm551_vm3, %v2886_v62 }
0x1378   :  { %5102 = vmatpush3.bf16.msra.mxu1 %v5321_v53  ;;  %5109 = vmatprep.mubr.msk.bf16.mxu1 %vm5492_vm0, %v5491_v4 }
0x1379   :  { %5103 = vmatprep.subr.bf16.mxu1 %v5491_v4 }
0x137c   :  { %5104 = vmatpush3.bf16.msra.mxu1 %v5322_v59 }
0x137d   :  { %5105 = vmatprep.subr.bf16.mxu1 %v5491_v4 }
0x1380   :  { %5106 = vmatpush3.bf16.msra.mxu1 %v5323_v63  ;;  %v4365_v63 = vld [vmem:[%s6703_s6 + $0x7] ss:$0 sm:$0xff] }
0x1381   :  { %5107 = vmatprep.subr.bf16.mxu1 %v5491_v4 }
0x1384   :  { %5108 = vmatpush3.bf16.msra.mxu1 %v5324_v38 }
0x1387   :  { %5110 = vmatmul.mubr.msk.bf16.vlgmr.msra.gmra.mrb[92].mxu1 %vm442_vm1, %v2409_v58 }
0x1442   :  { %v2927_v55 = vpop.f32.mrb[84].mxu1 }
0x1443   :  { %v5081_v58 = vpop.f32.mrb[85].mxu1 }
0x1444   :  { %v2930_v28 = vpop.f32.mrb[86].mxu1 }
0x1445   :  { %v5082_v33 = vpop.f32.mrb[87].mxu1 }
0x144a   :  { %v2973_v3 = vpop.f32.mrb[88].mxu1 }
0x144b   :  { %v2979_v5 = vpack.c.bf16 %v2973_v3, %v2927_v55  ;;  %v5087_v41 = vpop.f32.mrb[89].mxu1  ;;  %v4366_v55 = vld [vmem:[%s6703_s6 + $0x8] ss:$0 sm:$0xff] }
0x144c   :  { %v2976_v47 = vpop.f32.mrb[90].mxu1  ;;  %v5354_v41 = vld [vmem:[%s6706_s9 + $0x80] sm:$0xff]  }
0x144d   :  { %v5088_v49 = vpop.f32.mrb[91].mxu1  ;;  %5098 = vmatmul.mubr.msk.bf16.vlgmr.msra.gmra.mrb[36].mxu0 %vm442_vm1, %v2979_v5  ;;  %v5353_v5 = vld [vmem:[%s6706_s9 + $0xc0] sm:$0xff]   ;;  %v5355_v47 = vld [vmem:[%s6706_s9 + $0xc8] sm:$0xff]  }
0x144e   :  { %3322 = vmatprep.mubr.bf16.mxu0 %v5493_v23  ;;  %3291 = vmatpush1.bf16.msra.mxu0 %v5329_v16  ;;  %v5356_v49 = vld [vmem:[%s6706_s9 + $0x88] sm:$0xff]  }
0x144f   :  { %3292 = vmatprep.subr.bf16.mxu0 %v5334_v17  ;;  %4680 = vmatprep.subr.bf16.mxu1 %v5353_v5 }
0x1450   :  { %4681 = vmatpush3.bf16.msra.mxu1 %v5354_v41 }
0x1451   :  { %4682 = vmatprep.subr.bf16.mxu1 %v5355_v47 }
0x1454   :  { %4683 = vmatpush3.bf16.msra.mxu1 %v5356_v49 }
0x145a   :  { %v3118_v6 = vpop.f32.mrb[92].mxu1 }
0x145b   :  { %v5111_v7 = vpop.f32.mrb[93].mxu1 }
0x145c   :  { %v3121_v8 = vpop.f32.mrb[94].mxu1  ;;  %v5358_v7 = vld [vmem:[%s6706_s9 + $0x90] sm:$0xff]  }
0x145d   :  { %v5112_v44 = vpop.f32.mrb[95].mxu1 }
0x145e   :  { %v5360_v44 = vld [vmem:[%s6706_s9 + $0x98] sm:$0xff]  }
0x1520   :  { %v3050_v9 = vpop.f32.mrb[36].mxu0 }
0x1521   :  { %v3119_v54 = vadd.f32 %v3118_v6, %v3050_v9  ;;  %v5099_v57 = vpop.f32.mrb[37].mxu0  ;;  %v5357_v6 = vld [vmem:[%s6706_s9 + $0xd0] sm:$0xff]   ;;  %v5361_v9 = vld [vmem:[%s6706_s9 + $0xe0] sm:$0xff]  }
0x1522   :  { %v3053_v11 = vpop.f32.mrb[38].mxu0  ;;  %4684 = vmatprep.subr.bf16.mxu1 %v5357_v6  ;;  %v5364_v57 = vld [vmem:[%s6706_s9 + $0xa8] sm:$0xff]  }
0x1523   :  { %v3133_v12 = vadd.f32 %v4362_v10, %v3119_v54  ;;  %v3122_v13 = vadd.f32 %v3121_v8, %v3053_v11  ;;  %v5100_v46 = vpop.f32.mrb[39].mxu0  ;;  %4685 = vmatpush3.bf16.msra.mxu1 %v5358_v7  ;;  %v5359_v8 = vld [vmem:[%s6706_s9 + $0xd8] sm:$0xff]   ;;  %v5363_v54 = vld [vmem:[%s6706_s9 + $0xe8] sm:$0xff]   ;;  %v5365_v11 = vld [vmem:[%s6706_s9 + $0xf0] sm:$0xff]  }
0x1524   :  { %4686 = vmatprep.subr.bf16.mxu1 %v5359_v8  ;;  %v5368_v46 = vld [vmem:[%s6706_s9 + $0xb8] sm:$0xff]   ;;  %v4433_v7 = vld [vmem:[%s6703_s6 + $0x9] ss:$0 sm:$0xff] }
0x1525   :  { %v3134_v14 = vadd.f32 %v4362_v10, %v3122_v13  ;;  %v3135_v15 = vadd.f32 %v3133_v12, %v6150_v50  ;;  %v5332_v50 = vld [vmem:[%s6704_s7 + $0x90] ss:$8 sps:$4 sm:$0xff]   ;;  %v5362_v10 = vld [vmem:[%s6706_s9 + $0xa0] sm:$0xff]  }
0x1526   :  { %3293 = vmatpush1.bf16.msra.mxu0 %v5332_v50  ;;  %v5366_v12 = vld [vmem:[%s6706_s9 + $0xb0] sm:$0xff]   ;;  %v5367_v13 = vld [vmem:[%s6706_s9 + $0xf8] sm:$0xff]  }
0x1527   :  { %3141 = vadd.xlane.f32.xlu0 %v3135_v15  ;;  %v3136_v23 = vadd.f32 %v3134_v14, %v6152_v51  ;;  %3294 = vmatprep.subr.bf16.mxu0 %v5337_v25  ;;  %v4383_v14 = vld [vmem:[%s6705_s8 + $0x2] sm:$0x3] }
0x1528   :  { %4687 = vmatpush3.bf16.msra.mxu1 %v5360_v44 }
0x1529   :  { %3143 = vadd.xlane.f32.xlu1 %v3136_v23  ;;  %4688 = vmatprep.subr.bf16.mxu1 %v5361_v9 }
0x152a   :  { %3295 = vmatpush1.bf16.msra.mxu0 %v5335_v40 }
0x152b   :  { %3296 = vmatprep.subr.bf16.mxu0 %v5340_v26 }
0x152c   :  { %4689 = vmatpush3.bf16.msra.mxu1 %v5362_v10 }
0x152d   :  { %4690 = vmatprep.subr.bf16.mxu1 %v5363_v54 }
0x152e   :  { %3297 = vmatpush1.bf16.msra.mxu0 %v5338_v27 }
0x152f   :  { %3298 = vmatprep.subr.bf16.mxu0 %v5343_v29 }
0x1530   :  { %4691 = vmatpush3.bf16.msra.mxu1 %v5364_v57 }
0x1531   :  { %4692 = vmatprep.subr.bf16.mxu1 %v5365_v11 }
0x1532   :  { %3299 = vmatpush1.bf16.msra.mxu0 %v5341_v30 }
0x1533   :  { %3300 = vmatprep.subr.bf16.mxu0 %v5346_v42 }
0x1534   :  { %4693 = vmatpush3.bf16.msra.mxu1 %v5366_v12 }
0x1535   :  { %4694 = vmatprep.subr.bf16.mxu1 %v5367_v13 }
0x1536   :  { %3301 = vmatpush1.bf16.msra.mxu0 %v5344_v31 }
0x1537   :  { %3302 = vmatprep.subr.bf16.mxu0 %v5349_v45 }
0x1538   :  { %4695 = vmatpush3.bf16.msra.mxu1 %v5368_v46 }
0x1539   :  { %5133 = vmatprep.subr.bf16.mxu1 %v5491_v4 }
0x153a   :  { %3303 = vmatpush1.bf16.msra.mxu0 %v5347_v35 }
0x153b   :  { %3304 = vmatprep.subr.bf16.mxu0 %v5352_v39 }
0x153e   :  { %3305 = vmatpush1.bf16.msra.mxu0 %v5350_v43 }
0x153f   :  { %5113 = vmatprep.subr.bf16.mxu0 %v5491_v4 }
0x15b4   :  { %v3142_v51 = vpop.xlane.xlu0 %3141 }
0x15b5   :  { %v3145_v18 = vmul.f32 0.0078125, %v3142_v51 }
0x15b6   :  { %v3144_v19 = vpop.xlane.xlu1 %3143 }
0x15b7   :  { %v3147_v20 = vsub.f32 %v3135_v15, %v3145_v18  ;;  %v3146_v56 = vmul.f32 0.0078125, %v3144_v19  ;;  %v3203_v15 = vrot.slane %v4383_v14, %v1458_v36 }
0x15b9   :  { %v3148_v21 = vsub.f32 %v3136_v23, %v3146_v56  ;;  %v3149_v22 = vmul.f32 %v3147_v20, %v3147_v20  ;;  %v3207_v23 = vrot.slane %v4383_v14, %v1462_v32 }
0x15bb   :  { %3151 = vadd.xlane.f32.xlu0 %v3149_v22  ;;  %v3150_v24 = vmul.f32 %v3148_v21, %v3148_v21 }
0x15bd   :  { %3153 = vadd.xlane.f32.xlu1 %v3150_v24 }
0x1648   :  { %v3152_v52 = vpop.xlane.xlu0 %3151 }
0x1649   :  { %v3155_v60 = vmul.f32 0.0078125, %v3152_v52 }
0x164a   :  { %v3154_v61 = vpop.xlane.xlu1 %3153 }
0x164b   :  { %v3157_v34 = vadd.f32 1e-05, %v3155_v60  ;;  %v3156_v53 = vmul.f32 0.0078125, %v3154_v61 }
0x164d   :  { %5445 = vrsqrt.f32 %v3157_v34  ;;  %v3158_v62 = vadd.f32 1e-05, %v3156_v53 }
0x164f   :  { %5447 = vrsqrt.f32 %v3158_v62 }
0x1657   :  { %v5446_v59 = vpop.eup %5445 }
0x1658   :  { %v3161_v38 = vmul.f32 %v5446_v59, %v3147_v20 }
0x1659   :  { %v5448_v0 = vpop.eup %5447 }
0x165a   :  { %v3162_v1 = vmul.f32 %v5448_v0, %v3148_v21  ;;  %v3169_v37 = vmul.f32 %v4365_v63, %v3161_v38 }
0x165c   :  { %v3170_v58 = vmul.f32 %v4365_v63, %v3162_v1  ;;  %v6503_v28 = vadd.f32 %v4366_v55, %v3169_v37 }
0x165e   :  { %v6505_v33 = vadd.f32 %v4366_v55, %v3170_v58 }
0x1660   :  { %v3179_v3 = vpack.c.bf16 %v6505_v33, %v6503_v28 }
0x1662   :  { %3323 = vmatmul.mubr.bf16.vlgmr.msra.gmra.mrb[40].mxu0 %v3179_v3 }
0x1663   :  { %5129 = vmatprep.mubr.msk.bf16.mxu0 %vm5492_vm0, %v5491_v4 }
0x1735   :  { %v3324_v16 = vpop.f32.mrb[40].mxu0 }
0x1736   :  { %v3325_v48 = vadd.f32 %v3324_v16, %v3203_v15  ;;  %v3326_v17 = vpop.f32.mrb[41].mxu0 }
0x1737   :  { %v3327_v50 = vadd.f32 %v3326_v17, %v3207_v23  ;;  %v3328_v51 = vpop.f32.mrb[42].mxu0 }
0x1738   :  { %v3333_v18 = vmul.f32 %v3325_v48, %v3325_v48  ;;  %v3329_v19 = vadd.f32 %v3328_v51, %v3203_v15  ;;  %v3330_v20 = vpop.f32.mrb[43].mxu0  ;;  %v5369_v51 = vld [vmem:[%s6707_s10] sm:$0xff]  }
0x1739   :  { %v3334_v56 = vmul.f32 %v3327_v50, %v3327_v50  ;;  %v3331_v21 = vadd.f32 %v3330_v20, %v3207_v23  ;;  %5114 = vmatpush3.bf16.msra.mxu0 %v5369_v51  ;;  %v5374_v20 = vld [vmem:[%s6707_s10 + $0x28] sm:$0xff]  }
0x173a   :  { %v3337_v22 = vmul.f32 %v3333_v18, %v3325_v48  ;;  %v3335_v24 = vmul.f32 %v3329_v19, %v3329_v19  ;;  %5115 = vmatprep.subr.bf16.mxu0 %v5491_v4  ;;  %v5372_v18 = vld [vmem:[%s6707_s10 + $0x18] sm:$0xff]  }
0x173b   :  { %v3338_v25 = vmul.f32 %v3334_v56, %v3327_v50  ;;  %v3336_v40 = vmul.f32 %v3331_v21, %v3331_v21  ;;  %v5375_v56 = vld [vmem:[%s6707_s10 + $0x30] sm:$0xff]  }
0x173c   :  { %v3341_v26 = vmul.f32 0.044715, %v3337_v22  ;;  %v3339_v27 = vmul.f32 %v3335_v24, %v3329_v19  ;;  %v5377_v22 = vld [vmem:[%s6707_s10 + $0x40] sm:$0xff]   ;;  %v5378_v24 = vld [vmem:[%s6707_s10 + $0x48] sm:$0xff]  }
0x173d   :  { %v3342_v36 = vmul.f32 0.044715, %v3338_v25  ;;  %v3340_v29 = vmul.f32 %v3336_v40, %v3331_v21  ;;  %v5379_v25 = vld [vmem:[%s6707_s10 + $0x50] sm:$0xff]   ;;  %v5380_v40 = vld [vmem:[%s6707_s10 + $0x58] sm:$0xff]  }
0x173e   :  { %v3345_v2 = vadd.f32 %v3341_v26, %v3325_v48  ;;  %v3343_v32 = vmul.f32 0.044715, %v3339_v27 }
0x173f   :  { %v3346_v30 = vadd.f32 %v3342_v36, %v3327_v50  ;;  %v3344_v42 = vmul.f32 0.044715, %v3340_v29 }
0x1740   :  { %v3349_v31 = vmul.f32 0.7978846, %v3345_v2  ;;  %v3347_v45 = vadd.f32 %v3343_v32, %v3329_v19 }
0x1741   :  { %v3350_v35 = vmul.f32 0.7978846, %v3346_v30  ;;  %v3348_v39 = vadd.f32 %v3344_v42, %v3331_v21  ;;  %v4452_v42 = vld [vmem:[%s6703_s6 + $0xa] ss:$0 sm:$0xff] }
0x1742   :  { %5449 = vtanh.f32 %v3349_v31  ;;  %v3351_v43 = vmul.f32 0.7978846, %v3347_v45 }
0x1743   :  { %5451 = vtanh.f32 %v3350_v35  ;;  %v3352_v52 = vmul.f32 0.7978846, %v3348_v39  ;;  %v4453_v35 = vld [vmem:[%s6703_s6 + $0xb] ss:$0 sm:$0xff] }
0x1744   :  { %5453 = vtanh.f32 %v3351_v43 }
0x1745   :  { %5455 = vtanh.f32 %v3352_v52 }
0x174c   :  { %v5450_v60 = vpop.eup %5449 }
0x174d   :  { %v5452_v61 = vpop.eup %5451  ;;  %v3357_v34 = vadd.f32 1.0, %v5450_v60 }
0x174e   :  { %v5454_v53 = vpop.eup %5453  ;;  %v3358_v62 = vadd.f32 1.0, %v5452_v61 }
0x174f   :  { %v5456_v59 = vpop.eup %5455  ;;  %v3361_v63 = vmul.f32 0.5, %v3357_v34  ;;  %v3359_v38 = vadd.f32 1.0, %v5454_v53 }
0x1750   :  { %v3360_v0 = vadd.f32 1.0, %v5456_v59  ;;  %v3362_v1 = vmul.f32 0.5, %v3358_v62 }
0x1751   :  { %v3363_v37 = vmul.f32 0.5, %v3359_v38  ;;  %v3365_v58 = vmul.f32 %v3361_v63, %v3325_v48 }
0x1752   :  { %v3364_v55 = vmul.f32 0.5, %v3360_v0  ;;  %v3366_v5 = vmul.f32 %v3362_v1, %v3327_v50  ;;  %v5381_v1 = vld [vmem:[%s6707_s10 + $0x60] sm:$0xff]  }
0x1753   :  { %v3367_v3 = vmul.f32 %v3363_v37, %v3329_v19  ;;  %v5373_v19 = vld [vmem:[%s6707_s10 + $0x20] sm:$0xff]   ;;  %v5382_v37 = vld [vmem:[%s6707_s10 + $0x68] sm:$0xff]  }
0x1754   :  { %v3368_v41 = vmul.f32 %v3364_v55, %v3331_v21  ;;  %v5376_v21 = vld [vmem:[%s6707_s10 + $0x38] sm:$0xff]   ;;  %v5383_v55 = vld [vmem:[%s6707_s10 + $0x70] sm:$0xff]  }
0x1755   :  { %v3369_v47 = vpack.c.bf16 %v3367_v3, %v3365_v58  ;;  %v5384_v58 = vld [vmem:[%s6707_s10 + $0x78] sm:$0xff]   ;;  %v5385_v3 = vld [vmem:[%s6709_s12] sm:$0xff]  }
0x1756   :  { %v3370_v49 = vpack.c.bf16 %v3368_v41, %v3366_v5  ;;  %v5386_v5 = vld [vmem:[%s6709_s12 + $0x8] sm:$0xff]   ;;  %v5387_v41 = vld [vmem:[%s6709_s12 + $0x10] sm:$0xff]  }
0x1758   :  { %3540 = vmatprep.mubr.bf16.mxu1 %v3370_v49  ;;  %v4454_v49 = vld [vmem:[%s6708_s11] ss:$0 sm:$0xff] }
0x1759   :  { %3541 = vmatmul.mubr.bf16.vlgmr.msra.gmra.mrb[96].mxu1 %v3369_v47  ;;  %v5388_v47 = vld [vmem:[%s6709_s12 + $0x18] sm:$0xff]  }
0x175a   :  { %5149 = vmatprep.mubr.msk.bf16.mxu1 %vm5492_vm0, %v5491_v4  ;;  %5134 = vmatpush3.bf16.msra.mxu1 %v5377_v22 }
0x175b   :  { %5135 = vmatprep.subr.bf16.mxu1 %v5491_v4 }
0x175e   :  { %5136 = vmatpush3.bf16.msra.mxu1 %v5378_v24 }
0x175f   :  { %5137 = vmatprep.subr.bf16.mxu1 %v5491_v4 }
0x1762   :  { %5138 = vmatpush3.bf16.msra.mxu1 %v5379_v25 }
0x1763   :  { %5139 = vmatprep.subr.bf16.mxu1 %v5491_v4 }
0x1766   :  { %5140 = vmatpush3.bf16.msra.mxu1 %v5380_v40 }
0x1767   :  { %5141 = vmatprep.subr.bf16.mxu1 %v5491_v4 }
0x176a   :  { %5142 = vmatpush3.bf16.msra.mxu1 %v5381_v1 }
0x176b   :  { %5143 = vmatprep.subr.bf16.mxu1 %v5491_v4 }
0x176e   :  { %5144 = vmatpush3.bf16.msra.mxu1 %v5382_v37 }
0x176f   :  { %5145 = vmatprep.subr.bf16.mxu1 %v5491_v4 }
0x1772   :  { %5146 = vmatpush3.bf16.msra.mxu1 %v5383_v55 }
0x1773   :  { %5147 = vmatprep.subr.bf16.mxu1 %v5491_v4 }
0x1776   :  { %5148 = vmatpush3.bf16.msra.mxu1 %v5384_v58 }
0x182c   :  { %v4696_v6 = vpop.f32.mrb[96].mxu1 }
0x182d   :  { %v4697_v8 = vpop.f32.mrb[97].mxu1 }
0x182e   :  { %v4698_v44 = vadd.f32 %v4697_v8, %v4696_v6  ;;  %v4699_v9 = vpop.f32.mrb[98].mxu1 }
0x182f   :  { %v4700_v10 = vpop.f32.mrb[99].mxu1 }
0x1830   :  { %v3543_v54 = vadd.f32 %v4698_v44, %v4433_v7  ;;  %v4701_v57 = vadd.f32 %v4700_v10, %v4699_v9 }
0x1832   :  { %v3546_v11 = vadd.f32 %v4701_v57, %v4433_v7  ;;  %v3549_v12 = vadd.f32 %v3543_v54, %v6503_v28  ;;  %v5370_v28 = vld [vmem:[%s6707_s10 + $0x8] sm:$0xff]   ;;  %v5389_v57 = vld [vmem:[%s6709_s12 + $0x20] sm:$0xff]  }
0x1833   :  { %5116 = vmatpush3.bf16.msra.mxu0 %v5370_v28 }
0x1834   :  { %3555 = vadd.xlane.f32.xlu1 %v3549_v12  ;;  %v3550_v13 = vadd.f32 %v3546_v11, %v6505_v33  ;;  %5117 = vmatprep.subr.bf16.mxu0 %v5491_v4  ;;  %v5371_v33 = vld [vmem:[%s6707_s10 + $0x10] sm:$0xff]   ;;  %v5390_v11 = vld [vmem:[%s6709_s12 + $0x28] sm:$0xff]  }
0x1836   :  { %3557 = vadd.xlane.f32.xlu0 %v3550_v13 }
0x1837   :  { %5118 = vmatpush3.bf16.msra.mxu0 %v5371_v33 }
0x1838   :  { %5119 = vmatprep.subr.bf16.mxu0 %v5491_v4 }
0x183b   :  { %5120 = vmatpush3.bf16.msra.mxu0 %v5372_v18 }
0x183c   :  { %5121 = vmatprep.subr.bf16.mxu0 %v5491_v4 }
0x183f   :  { %5122 = vmatpush3.bf16.msra.mxu0 %v5373_v19 }
0x1840   :  { %5123 = vmatprep.subr.bf16.mxu0 %v5491_v4 }
0x1843   :  { %5124 = vmatpush3.bf16.msra.mxu0 %v5374_v20 }
0x1844   :  { %5125 = vmatprep.subr.bf16.mxu0 %v5491_v4 }
0x1847   :  { %5126 = vmatpush3.bf16.msra.mxu0 %v5375_v56 }
0x1848   :  { %5127 = vmatprep.subr.bf16.mxu0 %v5491_v4 }
0x184b   :  { %5128 = vmatpush3.bf16.msra.mxu0 %v5376_v21 }
0x184c   :  { %5153 = vmatprep.subr.bf16.mxu0 %v5491_v4 }
0x18c1   :  { %v3556_v46 = vpop.xlane.xlu1 %3555 }
0x18c2   :  { %v3559_v14 = vmul.f32 0.0078125, %v3556_v46  ;;  %v4480_v46 = vld [vmem:[%s6708_s11 + $0x1] ss:$0 sm:$0xff] }
0x18c3   :  { %v3558_v15 = vpop.xlane.xlu0 %3557 }
0x18c4   :  { %v3561_v23 = vsub.f32 %v3549_v12, %v3559_v14  ;;  %v3560_v16 = vmul.f32 0.0078125, %v3558_v15  ;;  %v5391_v12 = vld [vmem:[%s6709_s12 + $0x30] sm:$0xff]  }
0x18c6   :  { %v3562_v48 = vsub.f32 %v3550_v13, %v3560_v16  ;;  %v3563_v17 = vmul.f32 %v3561_v23, %v3561_v23  ;;  %v5392_v13 = vld [vmem:[%s6709_s12 + $0x38] sm:$0xff]   ;;  %s3950_s12 = sshll.u32 %s5494_s16, 4  ;;  %s3951_s12 = int_to_ptr.vmem [resolvable:$true] %s3950_s12 }
0x18c7   :  { %s5467_s11 = scalar_lea.vmem %s3951_s12, 32  ;;  %p5472_p1 = scmp.lt.s32.totalorder %s3951_s12, %s3951_s12 }
0x18c8   :  { %3565 = vadd.xlane.f32.xlu1 %v3563_v17  ;;  %v3564_v50 = vmul.f32 %v3562_v48, %v3562_v48  ;;  %p5468_p0 = scmp.ne.s32.totalorder %s3951_s12, %s5467_s11  ;;  %p5473_p2 = scmp.lt.s32.totalorder %s5467_s11, %s5467_s11 }
0x18ca   :  { %3567 = vadd.xlane.f32.xlu0 %v3564_v50  ;;  %p5474_p3 = por %p5473_p2, %p5472_p1 }
0x18cc   :  { %p5475_p4 = pnand %p5474_p3, %p5468_p0 }
0x1955   :  { %v3566_v26 = vpop.xlane.xlu1 %3565 }
0x1956   :  { %v3569_v27 = vmul.f32 0.0078125, %v3566_v26 }
0x1957   :  { %v3568_v36 = vpop.xlane.xlu0 %3567 }
0x1958   :  { %v3571_v29 = vadd.f32 1e-05, %v3569_v27  ;;  %v3570_v2 = vmul.f32 0.0078125, %v3568_v36 }
0x195a   :  { %5457 = vrsqrt.f32 %v3571_v29  ;;  %v3572_v32 = vadd.f32 1e-05, %v3570_v2 }
0x195c   :  { %5459 = vrsqrt.f32 %v3572_v32 }
0x1964   :  { %v5458_v30 = vpop.eup %5457 }
0x1965   :  { %v3575_v31 = vmul.f32 %v5458_v30, %v3561_v23 }
0x1966   :  { %v5460_v45 = vpop.eup %5459 }
0x1967   :  { %v3583_v39 = vmul.f32 %v4452_v42, %v3575_v31  ;;  %v3576_v43 = vmul.f32 %v5460_v45, %v3562_v48 }
0x1969   :  { %v3584_v52 = vmul.f32 %v4452_v42, %v3576_v43  ;;  %v3591_v60 = vadd.f32 %v4453_v35, %v3583_v39 }
0x196b   :  { %v3592_v61 = vadd.f32 %v4453_v35, %v3584_v52  ;;  %v3593_v34 = vpack.c.bf16 %v3591_v60, %v3591_v60 }
0x196d   :  { %v3594_v53 = vpack.c.bf16 %v3592_v61, %v3592_v61  ;;  %v3620_v59 = vunpack.c.l.b16 %v3593_v34 }
0x196f   :  { %v3621_v62 = vunpack.c.l.b16 %v3594_v53 }
0x1971   :  { %v3622_v63 = vrot.slane %v3621_v62, 7 }
0x1973   :  { %v3624_v38 = vsel %vm3623_vm4, %v3622_v63, %v3620_v59 }
0x1974   :  { %v3625_v0 = vpack.c.b16 %v3624_v38, %v3624_v38 }
0x1976   :  { %5130 = vmatmul.mubr.bf16.vlgmr.msra.gmra.mrb[44].mxu0 %v3625_v0 }
0x1977   :  { %5169 = vmatprep.mubr.msk.bf16.mxu0 %vm5492_vm0, %v5491_v4  ;;  %5154 = vmatpush3.bf16.msra.mxu0 %v5385_v3 }
0x1978   :  { %5155 = vmatprep.subr.bf16.mxu0 %v5491_v4 }
0x197b   :  { %5156 = vmatpush3.bf16.msra.mxu0 %v5386_v5 }
0x197c   :  { %5157 = vmatprep.subr.bf16.mxu0 %v5491_v4 }
0x197f   :  { %5158 = vmatpush3.bf16.msra.mxu0 %v5387_v41 }
0x1980   :  { %5159 = vmatprep.subr.bf16.mxu0 %v5491_v4 }
0x1983   :  { %5160 = vmatpush3.bf16.msra.mxu0 %v5388_v47 }
0x1984   :  { %5161 = vmatprep.subr.bf16.mxu0 %v5491_v4 }
0x1987   :  { %5162 = vmatpush3.bf16.msra.mxu0 %v5389_v57 }
0x1988   :  { %5163 = vmatprep.subr.bf16.mxu0 %v5491_v4 }
0x198b   :  { %5164 = vmatpush3.bf16.msra.mxu0 %v5390_v11 }
0x198c   :  { %5165 = vmatprep.subr.bf16.mxu0 %v5491_v4 }
0x198f   :  { %5166 = vmatpush3.bf16.msra.mxu0 %v5391_v12 }
0x1990   :  { %5167 = vmatprep.subr.bf16.mxu0 %v5491_v4  ;;  %v4489_v4 = vld [vmem:[%s6710_s13] ss:$0 sm:$0xff] }
0x1993   :  { %5168 = vmatpush3.bf16.msra.mxu0 %v5392_v13 }
0x1a49   :  { %v3709_v6 = vpop.f32.mrb[44].mxu0 }
0x1a4a   :  { %v3710_v7 = vadd.f32 %v4454_v49, %v3709_v6  ;;  %v5131_v8 = vpop.f32.mrb[45].mxu0 }
0x1a4b   :  { %v3712_v44 = vpop.f32.mrb[46].mxu0 }
0x1a4c   :  { %5461 = vtanh.f32 %v3710_v7  ;;  %v5132_v9 = vpop.f32.mrb[47].mxu0 }
0x1a56   :  { %v5462_v10 = vpop.eup %5461 }
0x1a57   :  { %v3716_v54 = vpack.c.bf16 %v5462_v10, %v5462_v10 }
0x1a59   :  { %5150 = vmatmul.mubr.bf16.vlgmr.msra.gmra.mrb[100].mxu1 %v3716_v54 }
0x1b2c   :  { %v3824_v14 = vpop.f32.mrb[100].mxu1 }
0x1b2d   :  { %v3825_v15 = vadd.f32 %v4480_v46, %v3824_v14  ;;  %v5151_v23 = vpop.f32.mrb[101].mxu1 }
0x1b2e   :  { %v3827_v16 = vpop.f32.mrb[102].mxu1 }
0x1b2f   :  { %5463 = vtanh.f32 %v3825_v15  ;;  %v5152_v48 = vpop.f32.mrb[103].mxu1 }
0x1b39   :  { %v5464_v17 = vpop.eup %5463 }
0x1b3a   :  { %v3831_v50 = vpack.c.bf16 %v5464_v17, %v5464_v17 }
0x1b3c   :  { %5170 = vmatmul.mubr.bf16.vlgmr.msra.gmra.mrb[48].mxu0 %v3831_v50 }
0x1c0f   :  { %v3937_v51 = vpop.f32.mrb[48].mxu0 }
0x1c10   :  { %v3938_v28 = vadd.f32 %v4489_v4, %v3937_v51  ;;  %v5171_v33 = vpop.f32.mrb[49].mxu0 }
0x1c11   :  { %v3940_v18 = vpop.f32.mrb[50].mxu0 }
0x1c12   :  { %3943 = vst [vmem:[#allocation2] sm:$0x3] %v3938_v28  ;;  %v5172_v19 = vpop.f32.mrb[51].mxu0 }
0x1c13   :  { %5478 = shalt.err (!%p5475_p4)
}
0x1c14   :  { %s5479_s13 = scalar_lea.hbm %s6711_s14, 32 }
0x1c15   :  { %p5480_p5 = scmp.ne.s32.totalorder %s6711_s14, %s5479_s13  ;;  %p5483_p6 = scmp.lt.u32.totalorder %s5479_s13, %s6711_s14 }
0x1c17   :  { %p5485_p7 = pnand %p5483_p6, %p5480_p5 }
0x1c19   :  { %5488 = shalt.err (!%p5485_p7)
}
0x1c1a   :  { %3953 = dma.vmem_to_hbm [thread:$0]  %s3951_s12, 32, %s6711_s14, [#allocation3]  }
0x1c1b   :  { %5489 = dma.done.wait [#allocation3], 32  }
0x1c1c   :  { %5490 = vsyncadd [#allocation3], 4294967264 }
0x1c1d   :  { %3957 = vsyncpa [#allocation3], 1 }

</bundles_post_ra>
